<compile_context>
chip_gen: v7x
topology: tpu7x:2x2x1
jax: 0.10.0
libtpu: 0.0.40
codegen_flags: <defaults>
</compile_context>

<pallas_src>
import numpy as np
import jax
import jax.numpy as jnp
from jax.experimental import pallas as pl
from jax.experimental.pallas import tpu as pltpu


# ----------------------------------------------------------------------------
# Recurrent Pallas kernel: grid = (batch_blocks, T); one grid step == one timestep
# ----------------------------------------------------------------------------
def make_decoder_kernel(Dd, P):
    f32 = jnp.float32
    bf16 = jnp.bfloat16

    def kernel(enc_ref, xe_ref, dl_ref,
               w_ea_ref, b_ea_ref, w_da_ref, b_da_ref, w_fa_ref, b_fa_ref,
               w_ih_ref, b_ih_ref, w_ic_ref, b_ic_ref,
               w_fb_ref, b_fb_ref, w_ah_ref,
               hseq_ref, alphas_ref,
               h_sc, c_sc, att1_sc):
        t = pl.program_id(1)

        # ---- once per batch block: init_hidden_state + hoisted encoder-side attention ----
        @pl.when(t == 0)
        def _init():
            enc0 = enc_ref[...]                                       # (tb, Pp, E) bf16
            # padded pixel rows are zero, so sum/P == true mean over the P real pixels
            mean_enc = (jnp.sum(enc0.astype(f32), axis=1) * (1.0 / P)).astype(bf16)
            h_sc[...] = (jnp.dot(mean_enc, w_ih_ref[...],
                                 preferred_element_type=f32) + b_ih_ref[...])
            c_sc[...] = (jnp.dot(mean_enc, w_ic_ref[...],
                                 preferred_element_type=f32) + b_ic_ref[...])
            # att1 depends only on enc -> compute once, store bf16, reuse every timestep
            att1_sc[...] = (jnp.einsum('bpe,ea->bpa', enc0, w_ea_ref[...],
                                       preferred_element_type=f32)
                            + b_ea_ref[...]).astype(bf16)

        h = h_sc[...]                                                 # (tb, Dd) f32
        c = c_sc[...]
        h_bf = h.astype(bf16)

        # ---- Attention (decoder side only, per step) ----
        att2 = (jnp.dot(h_bf, w_da_ref[...],
                        preferred_element_type=f32) + b_da_ref[...])  # (tb, A)
        # TODO(synk): for very large P_pad*A the next two lines could be chunked over
        # pixel tiles (rev #5); kept fused here for compile-path simplicity.
        act = jnp.maximum(att1_sc[...].astype(f32) + att2[:, None, :], 0.0)  # (tb, Pp, A)
        # full_att as VPU multiply + lane reduction (no N=1 MXU matmul)
        e = jnp.sum(act * w_fa_ref[...], axis=-1) + b_fa_ref[...]     # (tb, Pp)
        tb_, Pp = e.shape
        pix = jax.lax.broadcasted_iota(jnp.int32, (tb_, Pp), 1)
        e = jnp.where(pix < P, e, -1e30)                              # mask padded pixels
        e_max = jnp.max(e, axis=1, keepdims=True)
        p_un = jnp.exp(e - e_max)
        inv_den = pl.reciprocal(jnp.sum(p_un, axis=1, keepdims=True), approx=True)
        alpha = p_un * inv_den                                        # (tb, Pp); 0 on pads

        # awe on the MXU: (tb, 1, Pp) x (tb, Pp, E) batched contraction, f32 accumulate
        awe = jax.lax.dot_general(
            alpha.astype(bf16)[:, None, :], enc_ref[...],
            dimension_numbers=(((2,), (1,)), ((0,), (0,))),
            preferred_element_type=f32)[:, 0, :]                      # (tb, E) f32

        # ---- gating: sigmoid(f_beta(h)) ----
        gate = jax.nn.sigmoid(jnp.dot(h_bf, w_fb_ref[...],
                                      preferred_element_type=f32) + b_fb_ref[...])
        awe = gate * awe

        # ---- LSTMCell; gate order i,f,g,o ----
        # xe_ref already contains emb_t @ W_xe + b_x + b_hh (hoisted out of the loop)
        xh = jnp.concatenate([awe.astype(bf16), h_bf], axis=1)        # (tb, E+Dd) bf16
        gates = xe_ref[0] + jnp.dot(xh, w_ah_ref[...],
                                    preferred_element_type=f32)       # (tb, 4*Dd) f32
        # NOTE: real model has Dd=512 -> these slices are 128-lane aligned.
        i_g = jax.nn.sigmoid(gates[:, 0:Dd])
        f_g = jax.nn.sigmoid(gates[:, Dd:2 * Dd])
        g_g = jnp.tanh(gates[:, 2 * Dd:3 * Dd])
        o_g = jax.nn.sigmoid(gates[:, 3 * Dd:4 * Dd])
        c_new = f_g * c + i_g * g_g
        h_new = o_g * jnp.tanh(c_new)
        h_sc[...] = h_new
        c_sc[...] = c_new

        # shrinking batch_size_t of the PyTorch loop == mask the per-step writes
        mask = dl_ref[...] > t                                        # (tb, 1)
        hseq_ref[0] = jnp.where(mask, h_new, 0.0).astype(bf16)        # preds done later
        alphas_ref[0] = jnp.where(mask, alpha, 0.0)

    return kernel


# ----------------------------------------------------------------------------
# Vocabulary projection kernel: big-M matmul over (t, b) rows, tiled rows x vocab
# ----------------------------------------------------------------------------
def fc_kernel(h_ref, mask_ref, w_ref, b_ref, out_ref):
    preds = (jnp.dot(h_ref[...], w_ref[...],
                     preferred_element_type=jnp.float32) + b_ref[...])
    out_ref[...] = jnp.where(mask_ref[...] > 0, preds, 0.0).astype(out_ref.dtype)


# ----------------------------------------------------------------------------
# Wrapper: glue (sort, embedding lookup, layout, padding) + pallas_calls
# ----------------------------------------------------------------------------
def decoder_with_attention_forward(params, encoder_out, encoded_captions, caption_lengths):
    f32, bf16 = jnp.float32, jnp.bfloat16
    B = encoder_out.shape[0]
    E = encoder_out.shape[-1]
    enc = encoder_out.reshape(B, -1, E)                      # (B, P, E)
    P = enc.shape[1]
    P_pad = ((P + 127) // 128) * 128                         # lane-dense alphas / att1

    # sort by caption length, descending
    cap_len = caption_lengths.reshape(B)
    sort_ind = jnp.argsort(-cap_len)
    cap_len_sorted = cap_len[sort_ind]
    enc = enc[sort_ind]
    caps_sorted = encoded_captions[sort_ind]
    decode_lengths = cap_len_sorted - 1

    emb_table = params['embedding']
    Demb = emb_table.shape[1]
    Dd = params['w_hh'].shape[0]
    V = params['w_fc'].shape[1]
    A = params['w_ea'].shape[1]

    # static decode horizon (no host sync / per-batch recompiles); masking handles short rows
    T = encoded_captions.shape[1] - 1

    embeddings = emb_table[caps_sorted][:, :T, :]                        # (B, T, Demb) f32
    dl = decode_lengths.reshape(B, 1).astype(jnp.int32)
    enc_p = jnp.pad(enc.astype(f32), ((0, 0), (0, P_pad - P), (0, 0))).astype(bf16)

    bf = lambda x: jnp.asarray(x).astype(bf16)
    w_ea, w_da = bf(params['w_ea']), bf(params['w_da'])
    w_ih, w_ic = bf(params['w_init_h']), bf(params['w_init_c'])
    w_fb = bf(params['w_fb'])
    w_fa_row = params['w_fa'].reshape(1, A).astype(f32)      # VPU operand, keep f32
    # fused recurrent gate weight: [W_xa ; W_hh] -> one MXU weight per step
    w_ah = jnp.concatenate([params['w_xa'], params['w_hh']], axis=0).astype(bf16)  # (E+Dd,4Dd)

    # hoisted input projection: one big-M matmul, streamed per step into the recurrence
    xe_seq = (jnp.einsum('btd,dk->btk', embeddings.astype(bf16), bf(params['w_xe']),
                         preferred_element_type=f32)
              + params['b_x'] + params['b_hh'])                          # (B, T, 4Dd) f32
    xe_seq = jnp.transpose(xe_seq, (1, 0, 2))                            # (T, B, 4Dd)

    # batch blocking: only split when the chip has two TensorCores per device (v7x);
    # on single-TC v5e/v6e larger tb == better MXU M-occupancy.
    try:
        kind = str(jax.devices()[0].device_kind).lower()
    except Exception:
        kind = ""
    multi_tc = "v7" in kind
    tb = B // 2 if (multi_tc and B % 16 == 0) else B
    nb = B // tb

    kernel = make_decoder_kernel(Dd, P)

    # loop-invariant operands: single-buffered (no wasted VMEM copy)
    def inv(shape):
        nd = len(shape)
        return pl.BlockSpec(shape, lambda bi, t, nd=nd: (0,) * nd,
                            pipeline_mode=pl.Buffered(1))

    in_specs = [
        pl.BlockSpec((tb, P_pad, E), lambda bi, t: (bi, 0, 0),
                     pipeline_mode=pl.Buffered(1)),                   # encoder_out (padded)
        pl.BlockSpec((1, tb, 4 * Dd), lambda bi, t: (t, bi, 0)),      # xe_seq (per-step)
        pl.BlockSpec((tb, 1), lambda bi, t: (bi, 0),
                     pipeline_mode=pl.Buffered(1)),                   # decode lengths
        inv((E, A)), inv((1, A)),                                     # encoder_att
        inv((Dd, A)), inv((1, A)),                                    # decoder_att
        inv((1, A)), inv((1, 1)),                                     # full_att (row) + bias
        inv((E, Dd)), inv((1, Dd)),                                   # init_h
        inv((E, Dd)), inv((1, Dd)),                                   # init_c
        inv((Dd, E)), inv((1, E)),                                    # f_beta
        inv((E + Dd, 4 * Dd)),                                        # fused [W_xa; W_hh]
    ]
    out_specs = [
        pl.BlockSpec((1, tb, Dd), lambda bi, t: (t, bi, 0)),          # h_t sequence
        pl.BlockSpec((1, tb, P_pad), lambda bi, t: (t, bi, 0)),       # alphas (lane-dense)
    ]

    h_seq, alphas_t = pl.pallas_call(
        kernel,
        out_shape=(jax.ShapeDtypeStruct((T, B, Dd), bf16),
                   jax.ShapeDtypeStruct((T, B, P_pad), f32)),
        grid_spec=pltpu.PrefetchScalarGridSpec(
            num_scalar_prefetch=0,
            grid=(nb, T),
            in_specs=in_specs,
            out_specs=out_specs,
            scratch_shapes=[pltpu.VMEM((tb, Dd), f32),                # h
                            pltpu.VMEM((tb, Dd), f32),                # c
                            pltpu.VMEM((tb, P_pad, A), bf16)],        # hoisted att1 (bf16)
        ),
        compiler_params=pltpu.CompilerParams(
            dimension_semantics=("parallel", "arbitrary"),
            vmem_limit_bytes=48 * 1024 * 1024),                       # fits v5e/v6e/v7x
    )(enc_p, xe_seq, dl,
      w_ea, params['b_ea'], w_da, params['b_da'], w_fa_row, params['b_fa'],
      w_ih, params['b_init_h'], w_ic, params['b_init_c'],
      w_fb, params['b_fb'], w_ah)

    # ---- vocabulary projection: (T*B, Dd) x (Dd, V_pad), tiled rows x vocab, bf16 out ----
    TB = T * B
    V_pad = ((V + 127) // 128) * 128
    tv = next(c for c in (2048, 1024, 512, 256, 128) if V_pad % c == 0)
    trow = TB if TB <= 1024 else 1024
    TB_pad = pl.cdiv(TB, trow) * trow

    h_flat = h_seq.reshape(TB, Dd)                                          # bf16
    mask_flat = (decode_lengths[None, :] > jnp.arange(T)[:, None]
                 ).astype(jnp.int32).reshape(TB, 1)
    if TB_pad != TB:
        h_flat = jnp.pad(h_flat, ((0, TB_pad - TB), (0, 0)))
        mask_flat = jnp.pad(mask_flat, ((0, TB_pad - TB), (0, 0)))
    w_fc_p = jnp.pad(params['w_fc'], ((0, 0), (0, V_pad - V))).astype(bf16)
    b_fc_p = jnp.pad(params['b_fc'], ((0, 0), (0, V_pad - V))).astype(f32)

    preds_flat = pl.pallas_call(
        fc_kernel,
        out_shape=jax.ShapeDtypeStruct((TB_pad, V_pad), bf16),              # bf16 HBM writes
        grid_spec=pltpu.PrefetchScalarGridSpec(
            num_scalar_prefetch=0,
            grid=(TB_pad // trow, V_pad // tv),
            in_specs=[pl.BlockSpec((trow, Dd), lambda i, j: (i, 0)),
                      pl.BlockSpec((trow, 1), lambda i, j: (i, 0)),
                      pl.BlockSpec((Dd, tv), lambda i, j: (0, j)),
                      pl.BlockSpec((1, tv), lambda i, j: (0, j))],
            out_specs=pl.BlockSpec((trow, tv), lambda i, j: (i, j)),
        ),
        compiler_params=pltpu.CompilerParams(
            dimension_semantics=("parallel", "parallel"),
            vmem_limit_bytes=48 * 1024 * 1024),
    )(h_flat, mask_flat, w_fc_p, b_fc_p)

    predictions = jnp.transpose(
        preds_flat[:TB].reshape(T, B, V_pad)[:, :, :V], (1, 0, 2))          # (B, T, V) bf16
    alphas = jnp.transpose(alphas_t[:, :, :P], (1, 0, 2))
    return predictions, caps_sorted, decode_lengths, alphas, sort_ind


# ----------------------------------------------------------------------------
# Pure-JAX f32 reference (same math as the PyTorch module) for correctness check
# ----------------------------------------------------------------------------
def reference_forward(params, encoder_out, encoded_captions, caption_lengths):
    B = encoder_out.shape[0]
    E = encoder_out.shape[-1]
    enc = encoder_out.reshape(B, -1, E)
    P = enc.shape[1]
    cap_len = caption_lengths.reshape(B)
    sort_ind = jnp.argsort(-cap_len)
    cap_len_sorted = cap_len[sort_ind]
    enc = enc[sort_ind].astype(jnp.float32)
    caps_sorted = encoded_captions[sort_ind]
    embeddings = params['embedding'][caps_sorted]
    decode_lengths = cap_len_sorted - 1
    T = encoded_captions.shape[1] - 1
    Dd = params['w_hh'].shape[0]
    V = params['w_fc'].shape[1]

    mean_enc = jnp.sum(enc, axis=1) * (1.0 / P)
    h = mean_enc @ params['w_init_h'] + params['b_init_h']
    c = mean_enc @ params['w_init_c'] + params['b_init_c']

    predictions = np.zeros((B, T, V), np.float32)
    alphas = np.zeros((B, T, P), np.float32)
    dl = np.asarray(decode_lengths)
    for t in range(T):
        att1 = jnp.einsum('bpe,ea->bpa', enc, params['w_ea']) + params['b_ea']
        att2 = h @ params['w_da'] + params['b_da']
        act = jnp.maximum(att1 + att2[:, None, :], 0.0)
        e = jnp.einsum('bpa,ao->bpo', act, params['w_fa'])[..., 0] + params['b_fa']
        alpha = jax.nn.softmax(e, axis=1)
        awe = jnp.sum(enc * alpha[:, :, None], axis=1)
        gate = jax.nn.sigmoid(h @ params['w_fb'] + params['b_fb'])
        awe = gate * awe
        emb_t = embeddings[:, t, :]
        gates = (emb_t @ params['w_xe'] + awe @ params['w_xa'] + params['b_x']
                 + h @ params['w_hh'] + params['b_hh'])
        i_g = jax.nn.sigmoid(gates[:, 0:Dd])
        f_g = jax.nn.sigmoid(gates[:, Dd:2 * Dd])
        g_g = jnp.tanh(gates[:, 2 * Dd:3 * Dd])
        o_g = jax.nn.sigmoid(gates[:, 3 * Dd:4 * Dd])
        c = f_g * c + i_g * g_g
        h = o_g * jnp.tanh(c)
        preds = h @ params['w_fc'] + params['b_fc']
        active = dl > t
        predictions[active, t, :] = np.asarray(preds)[active]
        alphas[active, t, :] = np.asarray(alpha)[active]
    return predictions, alphas


# ----------------------------------------------------------------------------
# Deterministic parameter init (shapes follow the module's __init__)
# ----------------------------------------------------------------------------
def init_params(key, *, attention_dim, embed_dim, decoder_dim, vocab_size, encoder_dim):
    A, Demb, Dd, V, E = attention_dim, embed_dim, decoder_dim, vocab_size, encoder_dim
    ks = jax.random.split(key, 16)
    u = lambda k, shape, a: jax.random.uniform(k, shape, jnp.float32, -a, a)
    p = {}
    p['embedding'] = u(ks[0], (V, Demb), 0.1)                       # init_weights()
    p['w_ea'] = u(ks[1], (E, A), 0.1);   p['b_ea'] = jnp.zeros((1, A), jnp.float32)
    p['w_da'] = u(ks[2], (Dd, A), 0.1);  p['b_da'] = u(ks[3], (1, A), 0.1)
    p['w_fa'] = u(ks[4], (A, 1), 0.1);   p['b_fa'] = u(ks[5], (1, 1), 0.1)
    p['w_init_h'] = u(ks[6], (E, Dd), 0.1); p['b_init_h'] = u(ks[7], (1, Dd), 0.1)
    p['w_init_c'] = u(ks[8], (E, Dd), 0.1); p['b_init_c'] = u(ks[9], (1, Dd), 0.1)
    p['w_fb'] = u(ks[10], (Dd, E), 0.1); p['b_fb'] = u(ks[11], (1, E), 0.1)
    # LSTMCell: weight_ih (4*Dd, Demb+E) stored transposed and split into [emb | awe] halves
    w_ih_full = u(ks[12], (Demb + E, 4 * Dd), 0.1)
    p['w_xe'] = w_ih_full[:Demb]
    p['w_xa'] = w_ih_full[Demb:]
    p['b_x'] = u(ks[13], (1, 4 * Dd), 0.1)
    p['w_hh'] = u(ks[14], (Dd, 4 * Dd), 0.1)
    p['b_hh'] = u(ks[15], (1, 4 * Dd), 0.1)
    p['w_fc'] = u(jax.random.fold_in(key, 99), (Dd, V), 0.1)        # init_weights()
    p['b_fc'] = jnp.zeros((1, V), jnp.float32)                      # init_weights()
    return p


if __name__ == "__main__":
    B, enc_size = 4, 4                 # num_pixels P = 16
    encoder_dim, attention_dim, embed_dim, decoder_dim, vocab_size = 32, 32, 16, 32, 64
    max_cap_len = 8

    key = jax.random.PRNGKey(0)
    k_p, k_enc, k_cap = jax.random.split(key, 3)
    params = init_params(k_p, attention_dim=attention_dim, embed_dim=embed_dim,
                         decoder_dim=decoder_dim, vocab_size=vocab_size,
                         encoder_dim=encoder_dim)

    encoder_out = jax.random.normal(k_enc, (B, enc_size, enc_size, encoder_dim), jnp.float32)
    encoded_captions = jax.random.randint(k_cap, (B, max_cap_len), 0, vocab_size, jnp.int32)
    caption_lengths = jnp.array([[5], [8], [3], [7]], jnp.int32)

    preds, caps_sorted, dec_lens, alphas, sort_ind = decoder_with_attention_forward(
        params, encoder_out, encoded_captions, caption_lengths)
    jax.block_until_ready((preds, alphas))

    ref_preds, ref_alphas = reference_forward(params, encoder_out, encoded_captions,
                                              caption_lengths)
    # bf16 MXU operands, bf16 att1/preds storage + approx reciprocal -> small deviation
    preds_f32 = np.asarray(jnp.asarray(preds, jnp.float32))
    alphas_f32 = np.asarray(jnp.asarray(alphas, jnp.float32))
    np.testing.assert_allclose(preds_f32, ref_preds, rtol=3e-2, atol=3e-2)
    np.testing.assert_allclose(alphas_f32, ref_alphas, rtol=3e-2, atol=3e-2)

    print("KERNEL_OK")
</pallas_src>

<mosaic_0001>
module attributes {stable_mosaic.version = 11 : i64} {
  func.func @kernel(%arg0: i32, %arg1: i32, %arg2: memref<4x128x32xbf16, #tpu.memory_space<vmem>>, %arg3: memref<1x4x128xf32, #tpu.memory_space<vmem>>, %arg4: memref<4x1xi32, #tpu.memory_space<vmem>>, %arg5: memref<32x32xbf16, #tpu.memory_space<vmem>>, %arg6: memref<1x32xf32, #tpu.memory_space<vmem>>, %arg7: memref<32x32xbf16, #tpu.memory_space<vmem>>, %arg8: memref<1x32xf32, #tpu.memory_space<vmem>>, %arg9: memref<1x32xf32, #tpu.memory_space<vmem>>, %arg10: memref<1x1xf32, #tpu.memory_space<vmem>>, %arg11: memref<32x32xbf16, #tpu.memory_space<vmem>>, %arg12: memref<1x32xf32, #tpu.memory_space<vmem>>, %arg13: memref<32x32xbf16, #tpu.memory_space<vmem>>, %arg14: memref<1x32xf32, #tpu.memory_space<vmem>>, %arg15: memref<32x32xbf16, #tpu.memory_space<vmem>>, %arg16: memref<1x32xf32, #tpu.memory_space<vmem>>, %arg17: memref<64x128xbf16, #tpu.memory_space<vmem>>, %arg18: memref<1x4x32xbf16, #tpu.memory_space<vmem>>, %arg19: memref<1x4x128xf32, #tpu.memory_space<vmem>>, %arg20: memref<4x32xf32, #tpu.memory_space<vmem>>, %arg21: memref<4x32xf32, #tpu.memory_space<vmem>>, %arg22: memref<4x128x32xbf16, #tpu.memory_space<vmem>>) attributes {dimension_semantics = [#tpu.dimension_semantics<parallel>, #tpu.dimension_semantics<arbitrary>], iteration_bounds = array<i64: 1, 7>, scalar_prefetch = 0 : i64, scratch_operands = 3 : i64, tpu.core_type = #tpu.core_type<tc>, window_params = [{pipeline_mode = #tpu.pipeline_mode<synchronous>, transform_indices = @transform_0, window_bounds = array<i64: 4, 128, 32>}, {transform_indices = @transform_1, window_bounds = array<i64: 1, 4, 128>}, {pipeline_mode = #tpu.pipeline_mode<synchronous>, transform_indices = @transform_2, window_bounds = array<i64: 4, 1>}, {pipeline_mode = #tpu.pipeline_mode<synchronous>, transform_indices = @transform_3, window_bounds = array<i64: 32, 32>}, {pipeline_mode = #tpu.pipeline_mode<synchronous>, transform_indices = @transform_4, window_bounds = array<i64: 1, 32>}, {pipeline_mode = #tpu.pipeline_mode<synchronous>, transform_indices = @transform_5, window_bounds = array<i64: 32, 32>}, {pipeline_mode = #tpu.pipeline_mode<synchronous>, transform_indices = @transform_6, window_bounds = array<i64: 1, 32>}, {pipeline_mode = #tpu.pipeline_mode<synchronous>, transform_indices = @transform_7, window_bounds = array<i64: 1, 32>}, {pipeline_mode = #tpu.pipeline_mode<synchronous>, transform_indices = @transform_8, window_bounds = array<i64: 1, 1>}, {pipeline_mode = #tpu.pipeline_mode<synchronous>, transform_indices = @transform_9, window_bounds = array<i64: 32, 32>}, {pipeline_mode = #tpu.pipeline_mode<synchronous>, transform_indices = @transform_10, window_bounds = array<i64: 1, 32>}, {pipeline_mode = #tpu.pipeline_mode<synchronous>, transform_indices = @transform_11, window_bounds = array<i64: 32, 32>}, {pipeline_mode = #tpu.pipeline_mode<synchronous>, transform_indices = @transform_12, window_bounds = array<i64: 1, 32>}, {pipeline_mode = #tpu.pipeline_mode<synchronous>, transform_indices = @transform_13, window_bounds = array<i64: 32, 32>}, {pipeline_mode = #tpu.pipeline_mode<synchronous>, transform_indices = @transform_14, window_bounds = array<i64: 1, 32>}, {pipeline_mode = #tpu.pipeline_mode<synchronous>, transform_indices = @transform_15, window_bounds = array<i64: 64, 128>}, {transform_indices = @transform_16, window_bounds = array<i64: 1, 4, 32>}, {transform_indices = @transform_17, window_bounds = array<i64: 1, 4, 128>}]} {
    %c0_i32 = arith.constant 0 : i32
    %0 = arith.cmpi eq, %arg1, %c0_i32 : i32
    %1 = arith.extui %0 : i1 to i32
    %c0_i32_0 = arith.constant 0 : i32
    %2 = arith.cmpi ne, %1, %c0_i32_0 : i32
    scf.if %2 {
      %c0_53 = arith.constant 0 : index
      %c0_54 = arith.constant 0 : index
      %c0_55 = arith.constant 0 : index
      %109 = vector.load %arg2[%c0_53, %c0_54, %c0_55] : memref<4x128x32xbf16, #tpu.memory_space<vmem>>, vector<4x128x32xbf16>
      %110 = arith.extf %109 : vector<4x128x32xbf16> to vector<4x128x32xf32>
      %cst_56 = arith.constant dense<0.000000e+00> : vector<4x32xf32>
      %111 = vector.multi_reduction <add>, %110, %cst_56 [1] : vector<4x128x32xf32> to vector<4x32xf32>
      %cst_57 = arith.constant 6.250000e-02 : f32
      %112 = vector.broadcast %cst_57 : f32 to vector<4x32xf32>
      %113 = arith.mulf %111, %112 : vector<4x32xf32>
      %114 = arith.truncf %113 : vector<4x32xf32> to vector<4x32xbf16>
      %c0_58 = arith.constant 0 : index
      %c0_59 = arith.constant 0 : index
      %115 = vector.load %arg11[%c0_58, %c0_59] : memref<32x32xbf16, #tpu.memory_space<vmem>>, vector<32x32xbf16>
      %cst_60 = arith.constant dense<0.000000e+00> : vector<4x32xf32>
      %116 = tpu.matmul %114, %115, %cst_60 {dimension_numbers = #tpu.dot_dimension_numbers<[1], [0], [0], [1], [0, 0, 1, 1], [], []>} : vector<4x32xbf16>, vector<32x32xbf16>, vector<4x32xf32> -> vector<4x32xf32>
      %c0_61 = arith.constant 0 : index
      %c0_62 = arith.constant 0 : index
      %117 = vector.load %arg12[%c0_61, %c0_62] : memref<1x32xf32, #tpu.memory_space<vmem>>, vector<1x32xf32>
      %118 = vector.broadcast %117 : vector<1x32xf32> to vector<4x32xf32>
      %119 = arith.addf %116, %118 : vector<4x32xf32>
      %c0_63 = arith.constant 0 : index
      %c0_64 = arith.constant 0 : index
      %120 = vector.load %arg20[%c0_63, %c0_64] : memref<4x32xf32, #tpu.memory_space<vmem>>, vector<4x32xf32>
      tpu.vector_store %arg20[%c0_63, %c0_64], %119 {strides = array<i32>} : memref<4x32xf32, #tpu.memory_space<vmem>>, vector<4x32xf32>,
      %c0_65 = arith.constant 0 : index
      %c0_66 = arith.constant 0 : index
      %121 = vector.load %arg13[%c0_65, %c0_66] : memref<32x32xbf16, #tpu.memory_space<vmem>>, vector<32x32xbf16>
      %cst_67 = arith.constant dense<0.000000e+00> : vector<4x32xf32>
      %122 = tpu.matmul %114, %121, %cst_67 {dimension_numbers = #tpu.dot_dimension_numbers<[1], [0], [0], [1], [0, 0, 1, 1], [], []>} : vector<4x32xbf16>, vector<32x32xbf16>, vector<4x32xf32> -> vector<4x32xf32>
      %c0_68 = arith.constant 0 : index
      %c0_69 = arith.constant 0 : index
      %123 = vector.load %arg14[%c0_68, %c0_69] : memref<1x32xf32, #tpu.memory_space<vmem>>, vector<1x32xf32>
      %124 = vector.broadcast %123 : vector<1x32xf32> to vector<4x32xf32>
      %125 = arith.addf %122, %124 : vector<4x32xf32>
      %c0_70 = arith.constant 0 : index
      %c0_71 = arith.constant 0 : index
      %126 = vector.load %arg21[%c0_70, %c0_71] : memref<4x32xf32, #tpu.memory_space<vmem>>, vector<4x32xf32>
      tpu.vector_store %arg21[%c0_70, %c0_71], %125 {strides = array<i32>} : memref<4x32xf32, #tpu.memory_space<vmem>>, vector<4x32xf32>,
      %c0_72 = arith.constant 0 : index
      %c0_73 = arith.constant 0 : index
      %127 = vector.load %arg5[%c0_72, %c0_73] : memref<32x32xbf16, #tpu.memory_space<vmem>>, vector<32x32xbf16>
      "tpu.trace_start"() <{level = 10 : i32, message = "bpe,ea->bpa"}> : () -> ()
      %cst_74 = arith.constant dense<0.000000e+00> : vector<4x128x32xf32>
      %128 = tpu.matmul %109, %127, %cst_74 {dimension_numbers = #tpu.dot_dimension_numbers<[2], [0], [0, 1], [1], [0, 0, 0, 1, 1, 1], [], []>} : vector<4x128x32xbf16>, vector<32x32xbf16>, vector<4x128x32xf32> -> vector<4x128x32xf32>
      "tpu.trace_stop"() : () -> ()
      %c0_75 = arith.constant 0 : index
      %c0_76 = arith.constant 0 : index
      %129 = vector.load %arg6[%c0_75, %c0_76] : memref<1x32xf32, #tpu.memory_space<vmem>>, vector<1x32xf32>
      %130 = vector.shape_cast %129 : vector<1x32xf32> to vector<1x1x32xf32>
      %131 = vector.broadcast %130 : vector<1x1x32xf32> to vector<4x128x32xf32>
      %132 = arith.addf %128, %131 : vector<4x128x32xf32>
      %133 = arith.truncf %132 : vector<4x128x32xf32> to vector<4x128x32xbf16>
      %c0_77 = arith.constant 0 : index
      %c0_78 = arith.constant 0 : index
      %c0_79 = arith.constant 0 : index
      %134 = vector.load %arg22[%c0_77, %c0_78, %c0_79] : memref<4x128x32xbf16, #tpu.memory_space<vmem>>, vector<4x128x32xbf16>
      tpu.vector_store %arg22[%c0_77, %c0_78, %c0_79], %133 {strides = array<i32>} : memref<4x128x32xbf16, #tpu.memory_space<vmem>>, vector<4x128x32xbf16>,
    } else {
    }
    %c0 = arith.constant 0 : index
    %c0_1 = arith.constant 0 : index
    %3 = vector.load %arg20[%c0, %c0_1] : memref<4x32xf32, #tpu.memory_space<vmem>>, vector<4x32xf32>
    %c0_2 = arith.constant 0 : index
    %c0_3 = arith.constant 0 : index
    %4 = vector.load %arg21[%c0_2, %c0_3] : memref<4x32xf32, #tpu.memory_space<vmem>>, vector<4x32xf32>
    %5 = arith.truncf %3 : vector<4x32xf32> to vector<4x32xbf16>
    %c0_4 = arith.constant 0 : index
    %c0_5 = arith.constant 0 : index
    %6 = vector.load %arg7[%c0_4, %c0_5] : memref<32x32xbf16, #tpu.memory_space<vmem>>, vector<32x32xbf16>
    %cst = arith.constant dense<0.000000e+00> : vector<4x32xf32>
    %7 = tpu.matmul %5, %6, %cst {dimension_numbers = #tpu.dot_dimension_numbers<[1], [0], [0], [1], [0, 0, 1, 1], [], []>} : vector<4x32xbf16>, vector<32x32xbf16>, vector<4x32xf32> -> vector<4x32xf32>
    %c0_6 = arith.constant 0 : index
    %c0_7 = arith.constant 0 : index
    %8 = vector.load %arg8[%c0_6, %c0_7] : memref<1x32xf32, #tpu.memory_space<vmem>>, vector<1x32xf32>
    %9 = vector.broadcast %8 : vector<1x32xf32> to vector<4x32xf32>
    %10 = arith.addf %7, %9 : vector<4x32xf32>
    %c0_8 = arith.constant 0 : index
    %c0_9 = arith.constant 0 : index
    %c0_10 = arith.constant 0 : index
    %11 = vector.load %arg22[%c0_8, %c0_9, %c0_10] : memref<4x128x32xbf16, #tpu.memory_space<vmem>>, vector<4x128x32xbf16>
    %12 = arith.extf %11 : vector<4x128x32xbf16> to vector<4x128x32xf32>
    %13 = vector.shape_cast %10 : vector<4x32xf32> to vector<4x1x32xf32>
    %14 = vector.broadcast %13 : vector<4x1x32xf32> to vector<4x128x32xf32>
    %15 = arith.addf %12, %14 : vector<4x128x32xf32>
    %cst_11 = arith.constant 0.000000e+00 : f32
    %16 = vector.broadcast %cst_11 : f32 to vector<4x128x32xf32>
    %17 = arith.maximumf %15, %16 : vector<4x128x32xf32>
    %c0_12 = arith.constant 0 : index
    %c0_13 = arith.constant 0 : index
    %18 = vector.load %arg9[%c0_12, %c0_13] : memref<1x32xf32, #tpu.memory_space<vmem>>, vector<1x32xf32>
    %19 = vector.shape_cast %18 : vector<1x32xf32> to vector<1x1x32xf32>
    %20 = vector.broadcast %19 : vector<1x1x32xf32> to vector<4x128x32xf32>
    %21 = arith.mulf %17, %20 : vector<4x128x32xf32>
    %cst_14 = arith.constant dense<0.000000e+00> : vector<4x128xf32>
    %22 = vector.multi_reduction <add>, %21, %cst_14 [2] : vector<4x128x32xf32> to vector<4x128xf32>
    %c0_15 = arith.constant 0 : index
    %c0_16 = arith.constant 0 : index
    %23 = vector.load %arg10[%c0_15, %c0_16] : memref<1x1xf32, #tpu.memory_space<vmem>>, vector<1x1xf32>
    %24 = vector.broadcast %23 : vector<1x1xf32> to vector<4x128xf32>
    %25 = arith.addf %22, %24 : vector<4x128xf32>
    %26 = tpu.iota {dimensions = array<i32: 1>} : vector<4x128xi32>
    %c16_i32 = arith.constant 16 : i32
    %27 = vector.broadcast %c16_i32 : i32 to vector<4x128xi32>
    %28 = arith.cmpi slt, %26, %27 : vector<4x128xi32>
    %cst_17 = arith.constant -1.000000e+30 : f32
    %29 = vector.broadcast %cst_17 : f32 to vector<4x128xf32>
    %30 = arith.select %28, %25, %29 : vector<4x128xi1>, vector<4x128xf32>
    %cst_18 = arith.constant dense<0xFF800000> : vector<4xf32>
    %31 = vector.multi_reduction <maximumf>, %30, %cst_18 [1] : vector<4x128xf32> to vector<4xf32>
    %32 = vector.shape_cast %31 : vector<4xf32> to vector<4x1xf32>
    %33 = vector.broadcast %32 : vector<4x1xf32> to vector<4x128xf32>
    %34 = arith.subf %30, %33 : vector<4x128xf32>
    %35 = math.exp %34 : vector<4x128xf32>
    %cst_19 = arith.constant dense<0.000000e+00> : vector<4xf32>
    %36 = vector.multi_reduction <add>, %35, %cst_19 [1] : vector<4x128xf32> to vector<4xf32>
    %37 = vector.shape_cast %36 : vector<4xf32> to vector<4x1xf32>
    %38 = tpu.reciprocal %37 {approx = true} : vector<4x1xf32> -> vector<4x1xf32>
    %39 = vector.broadcast %38 : vector<4x1xf32> to vector<4x128xf32>
    %40 = arith.mulf %35, %39 : vector<4x128xf32>
    %41 = arith.truncf %40 : vector<4x128xf32> to vector<4x128xbf16>
    %42 = vector.shape_cast %41 : vector<4x128xbf16> to vector<4x1x128xbf16>
    %c0_20 = arith.constant 0 : index
    %c0_21 = arith.constant 0 : index
    %c0_22 = arith.constant 0 : index
    %43 = vector.load %arg2[%c0_20, %c0_21, %c0_22] : memref<4x128x32xbf16, #tpu.memory_space<vmem>>, vector<4x128x32xbf16>
    %cst_23 = arith.constant dense<0.000000e+00> : vector<4x1x32xf32>
    %44 = tpu.matmul %42, %43, %cst_23 {dimension_numbers = #tpu.dot_dimension_numbers<[2], [1], [1], [2], [0, 0, 0, 1, 1, 2], [0], [0]>} : vector<4x1x128xbf16>, vector<4x128x32xbf16>, vector<4x1x32xf32> -> vector<4x1x32xf32>
    %45 = vector.shape_cast %44 : vector<4x1x32xf32> to vector<4x32xf32>
    %c0_24 = arith.constant 0 : index
    %c0_25 = arith.constant 0 : index
    %46 = vector.load %arg15[%c0_24, %c0_25] : memref<32x32xbf16, #tpu.memory_space<vmem>>, vector<32x32xbf16>
    %cst_26 = arith.constant dense<0.000000e+00> : vector<4x32xf32>
    %47 = tpu.matmul %5, %46, %cst_26 {dimension_numbers = #tpu.dot_dimension_numbers<[1], [0], [0], [1], [0, 0, 1, 1], [], []>} : vector<4x32xbf16>, vector<32x32xbf16>, vector<4x32xf32> -> vector<4x32xf32>
    %c0_27 = arith.constant 0 : index
    %c0_28 = arith.constant 0 : index
    %48 = vector.load %arg16[%c0_27, %c0_28] : memref<1x32xf32, #tpu.memory_space<vmem>>, vector<1x32xf32>
    %49 = vector.broadcast %48 : vector<1x32xf32> to vector<4x32xf32>
    %50 = arith.addf %47, %49 : vector<4x32xf32>
    %51 = arith.negf %50 : vector<4x32xf32>
    %52 = math.exp %51 : vector<4x32xf32>
    %cst_29 = arith.constant 1.000000e+00 : f32
    %53 = vector.broadcast %cst_29 : f32 to vector<4x32xf32>
    %54 = arith.addf %53, %52 : vector<4x32xf32>
    %55 = arith.divf %53, %54 : vector<4x32xf32>
    %56 = arith.mulf %55, %45 : vector<4x32xf32>
    %57 = arith.truncf %56 : vector<4x32xf32> to vector<4x32xbf16>
    %58 = tpu.concatenate %57, %5 in 1 : vector<4x32xbf16>, vector<4x32xbf16> -> vector<4x64xbf16>
    %c0_30 = arith.constant 0 : index
    %c0_31 = arith.constant 0 : index
    %c0_32 = arith.constant 0 : index
    %59 = vector.load %arg3[%c0_30, %c0_31, %c0_32] : memref<1x4x128xf32, #tpu.memory_space<vmem>>, vector<1x4x128xf32>
    %60 = vector.shape_cast %59 : vector<1x4x128xf32> to vector<4x128xf32>
    %c0_33 = arith.constant 0 : index
    %c0_34 = arith.constant 0 : index
    %61 = vector.load %arg17[%c0_33, %c0_34] : memref<64x128xbf16, #tpu.memory_space<vmem>>, vector<64x128xbf16>
    %cst_35 = arith.constant dense<0.000000e+00> : vector<4x128xf32>
    %62 = tpu.matmul %58, %61, %cst_35 {dimension_numbers = #tpu.dot_dimension_numbers<[1], [0], [0], [1], [0, 0, 1, 1], [], []>} : vector<4x64xbf16>, vector<64x128xbf16>, vector<4x128xf32> -> vector<4x128xf32>
    %63 = arith.addf %60, %62 : vector<4x128xf32>
    %64 = vector.extract_strided_slice %63 {offsets = [0, 0], sizes = [4, 32], strides = [1, 1]} : vector<4x128xf32> to vector<4x32xf32>
    %65 = arith.negf %64 : vector<4x32xf32>
    %66 = math.exp %65 : vector<4x32xf32>
    %cst_36 = arith.constant 1.000000e+00 : f32
    %67 = vector.broadcast %cst_36 : f32 to vector<4x32xf32>
    %68 = arith.addf %67, %66 : vector<4x32xf32>
    %69 = arith.divf %67, %68 : vector<4x32xf32>
    %70 = vector.extract_strided_slice %63 {offsets = [0, 32], sizes = [4, 32], strides = [1, 1]} : vector<4x128xf32> to vector<4x32xf32>
    %71 = arith.negf %70 : vector<4x32xf32>
    %72 = math.exp %71 : vector<4x32xf32>
    %cst_37 = arith.constant 1.000000e+00 : f32
    %73 = vector.broadcast %cst_37 : f32 to vector<4x32xf32>
    %74 = arith.addf %73, %72 : vector<4x32xf32>
    %75 = arith.divf %73, %74 : vector<4x32xf32>
    %76 = vector.extract_strided_slice %63 {offsets = [0, 64], sizes = [4, 32], strides = [1, 1]} : vector<4x128xf32> to vector<4x32xf32>
    %77 = math.tanh %76 : vector<4x32xf32>
    %78 = vector.extract_strided_slice %63 {offsets = [0, 96], sizes = [4, 32], strides = [1, 1]} : vector<4x128xf32> to vector<4x32xf32>
    %79 = arith.negf %78 : vector<4x32xf32>
    %80 = math.exp %79 : vector<4x32xf32>
    %cst_38 = arith.constant 1.000000e+00 : f32
    %81 = vector.broadcast %cst_38 : f32 to vector<4x32xf32>
    %82 = arith.addf %81, %80 : vector<4x32xf32>
    %83 = arith.divf %81, %82 : vector<4x32xf32>
    %84 = arith.mulf %75, %4 : vector<4x32xf32>
    %85 = arith.mulf %69, %77 : vector<4x32xf32>
    %86 = arith.addf %84, %85 : vector<4x32xf32>
    %87 = math.tanh %86 : vector<4x32xf32>
    %88 = arith.mulf %83, %87 : vector<4x32xf32>
    %c0_39 = arith.constant 0 : index
    %c0_40 = arith.constant 0 : index
    %89 = vector.load %arg20[%c0_39, %c0_40] : memref<4x32xf32, #tpu.memory_space<vmem>>, vector<4x32xf32>
    tpu.vector_store %arg20[%c0_39, %c0_40], %88 {strides = array<i32>} : memref<4x32xf32, #tpu.memory_space<vmem>>, vector<4x32xf32>,
    %c0_41 = arith.constant 0 : index
    %c0_42 = arith.constant 0 : index
    %90 = vector.load %arg21[%c0_41, %c0_42] : memref<4x32xf32, #tpu.memory_space<vmem>>, vector<4x32xf32>
    tpu.vector_store %arg21[%c0_41, %c0_42], %86 {strides = array<i32>} : memref<4x32xf32, #tpu.memory_space<vmem>>, vector<4x32xf32>,
    %c0_43 = arith.constant 0 : index
    %c0_44 = arith.constant 0 : index
    %91 = vector.load %arg4[%c0_43, %c0_44] : memref<4x1xi32, #tpu.memory_space<vmem>>, vector<4x1xi32>
    %92 = vector.broadcast %arg1 : i32 to vector<4x1xi32>
    %93 = arith.cmpi sgt, %91, %92 : vector<4x1xi32>
    %cst_45 = arith.constant 0.000000e+00 : f32
    %94 = vector.shape_cast %93 : vector<4x1xi1> to vector<4x1xi1>
    %95 = vector.broadcast %94 : vector<4x1xi1> to vector<4x32xi1>
    %96 = vector.broadcast %cst_45 : f32 to vector<4x32xf32>
    %97 = arith.select %95, %88, %96 : vector<4x32xi1>, vector<4x32xf32>
    %98 = arith.truncf %97 : vector<4x32xf32> to vector<4x32xbf16>
    %c0_46 = arith.constant 0 : index
    %c0_47 = arith.constant 0 : index
    %c0_48 = arith.constant 0 : index
    %99 = vector.load %arg18[%c0_46, %c0_47, %c0_48] : memref<1x4x32xbf16, #tpu.memory_space<vmem>>, vector<1x4x32xbf16>
    %100 = vector.shape_cast %99 : vector<1x4x32xbf16> to vector<4x32xbf16>
    %101 = vector.shape_cast %98 : vector<4x32xbf16> to vector<1x4x32xbf16>
    tpu.vector_store %arg18[%c0_46, %c0_47, %c0_48], %101 {strides = array<i32>} : memref<1x4x32xbf16, #tpu.memory_space<vmem>>, vector<1x4x32xbf16>,
    %cst_49 = arith.constant 0.000000e+00 : f32
    %102 = vector.shape_cast %93 : vector<4x1xi1> to vector<4x1xi1>
    %103 = vector.broadcast %102 : vector<4x1xi1> to vector<4x128xi1>
    %104 = vector.broadcast %cst_49 : f32 to vector<4x128xf32>
    %105 = arith.select %103, %40, %104 : vector<4x128xi1>, vector<4x128xf32>
    %c0_50 = arith.constant 0 : index
    %c0_51 = arith.constant 0 : index
    %c0_52 = arith.constant 0 : index
    %106 = vector.load %arg19[%c0_50, %c0_51, %c0_52] : memref<1x4x128xf32, #tpu.memory_space<vmem>>, vector<1x4x128xf32>
    %107 = vector.shape_cast %106 : vector<1x4x128xf32> to vector<4x128xf32>
    %108 = vector.shape_cast %105 : vector<4x128xf32> to vector<1x4x128xf32>
    tpu.vector_store %arg19[%c0_50, %c0_51, %c0_52], %108 {strides = array<i32>} : memref<1x4x128xf32, #tpu.memory_space<vmem>>, vector<1x4x128xf32>,
    return
  }
  func.func @transform_0(%arg0: i32, %arg1: i32) -> (i32, i32, i32) {
    %c0_i32 = arith.constant 0 : i32
    %c0_i32_0 = arith.constant 0 : i32
    %c0_i32_1 = arith.constant 0 : i32
    return %arg0, %c0_i32, %c0_i32_0 : i32, i32, i32
  }
  func.func @transform_1(%arg0: i32, %arg1: i32) -> (i32, i32, i32) {
    %c0_i32 = arith.constant 0 : i32
    %c0_i32_0 = arith.constant 0 : i32
    return %arg1, %arg0, %c0_i32 : i32, i32, i32
  }
  func.func @transform_2(%arg0: i32, %arg1: i32) -> (i32, i32) {
    %c0_i32 = arith.constant 0 : i32
    %c0_i32_0 = arith.constant 0 : i32
    return %arg0, %c0_i32 : i32, i32
  }
  func.func @transform_3(%arg0: i32, %arg1: i32) -> (i32, i32) {
    %c0_i32 = arith.constant 0 : i32
    %c0_i32_0 = arith.constant 0 : i32
    %c0_i32_1 = arith.constant 0 : i32
    return %c0_i32, %c0_i32_0 : i32, i32
  }
  func.func @transform_4(%arg0: i32, %arg1: i32) -> (i32, i32) {
    %c0_i32 = arith.constant 0 : i32
    %c0_i32_0 = arith.constant 0 : i32
    %c0_i32_1 = arith.constant 0 : i32
    return %c0_i32, %c0_i32_0 : i32, i32
  }
  func.func @transform_5(%arg0: i32, %arg1: i32) -> (i32, i32) {
    %c0_i32 = arith.constant 0 : i32
    %c0_i32_0 = arith.constant 0 : i32
    %c0_i32_1 = arith.constant 0 : i32
    return %c0_i32, %c0_i32_0 : i32, i32
  }
  func.func @transform_6(%arg0: i32, %arg1: i32) -> (i32, i32) {
    %c0_i32 = arith.constant 0 : i32
    %c0_i32_0 = arith.constant 0 : i32
    %c0_i32_1 = arith.constant 0 : i32
    return %c0_i32, %c0_i32_0 : i32, i32
  }
  func.func @transform_7(%arg0: i32, %arg1: i32) -> (i32, i32) {
    %c0_i32 = arith.constant 0 : i32
    %c0_i32_0 = arith.constant 0 : i32
    %c0_i32_1 = arith.constant 0 : i32
    return %c0_i32, %c0_i32_0 : i32, i32
  }
  func.func @transform_8(%arg0: i32, %arg1: i32) -> (i32, i32) {
    %c0_i32 = arith.constant 0 : i32
    %c0_i32_0 = arith.constant 0 : i32
    %c0_i32_1 = arith.constant 0 : i32
    return %c0_i32, %c0_i32_0 : i32, i32
  }
  func.func @transform_9(%arg0: i32, %arg1: i32) -> (i32, i32) {
    %c0_i32 = arith.constant 0 : i32
    %c0_i32_0 = arith.constant 0 : i32
    %c0_i32_1 = arith.constant 0 : i32
    return %c0_i32, %c0_i32_0 : i32, i32
  }
  func.func @transform_10(%arg0: i32, %arg1: i32) -> (i32, i32) {
    %c0_i32 = arith.constant 0 : i32
    %c0_i32_0 = arith.constant 0 : i32
    %c0_i32_1 = arith.constant 0 : i32
    return %c0_i32, %c0_i32_0 : i32, i32
  }
  func.func @transform_11(%arg0: i32, %arg1: i32) -> (i32, i32) {
    %c0_i32 = arith.constant 0 : i32
    %c0_i32_0 = arith.constant 0 : i32
    %c0_i32_1 = arith.constant 0 : i32
    return %c0_i32, %c0_i32_0 : i32, i32
  }
  func.func @transform_12(%arg0: i32, %arg1: i32) -> (i32, i32) {
    %c0_i32 = arith.constant 0 : i32
    %c0_i32_0 = arith.constant 0 : i32
    %c0_i32_1 = arith.constant 0 : i32
    return %c0_i32, %c0_i32_0 : i32, i32
  }
  func.func @transform_13(%arg0: i32, %arg1: i32) -> (i32, i32) {
    %c0_i32 = arith.constant 0 : i32
    %c0_i32_0 = arith.constant 0 : i32
    %c0_i32_1 = arith.constant 0 : i32
    return %c0_i32, %c0_i32_0 : i32, i32
  }
  func.func @transform_14(%arg0: i32, %arg1: i32) -> (i32, i32) {
    %c0_i32 = arith.constant 0 : i32
    %c0_i32_0 = arith.constant 0 : i32
    %c0_i32_1 = arith.constant 0 : i32
    return %c0_i32, %c0_i32_0 : i32, i32
  }
  func.func @transform_15(%arg0: i32, %arg1: i32) -> (i32, i32) {
    %c0_i32 = arith.constant 0 : i32
    %c0_i32_0 = arith.constant 0 : i32
    %c0_i32_1 = arith.constant 0 : i32
    return %c0_i32, %c0_i32_0 : i32, i32
  }
  func.func @transform_16(%arg0: i32, %arg1: i32) -> (i32, i32, i32) {
    %c0_i32 = arith.constant 0 : i32
    %c0_i32_0 = arith.constant 0 : i32
    return %arg1, %arg0, %c0_i32 : i32, i32, i32
  }
  func.func @transform_17(%arg0: i32, %arg1: i32) -> (i32, i32, i32) {
    %c0_i32 = arith.constant 0 : i32
    %c0_i32_0 = arith.constant 0 : i32
    return %arg1, %arg0, %c0_i32 : i32, i32, i32
  }
}

</mosaic_0001>

<bundles_post_ra>
// kernel: tpu_custom_call.1
= control target key start
LH: loop header
LB: loop body
LE: loop exit
PB: predicated region body
PF: predicated region fallthrough
CT: control target
= control target key end

     0   :  { %s5973_s0 = inlined_call_operand.vmem [shape: bf16[4,128,32], index: 0, kind: input, shape index: {}]   ;;  %s5974_s1 = inlined_call_operand.vmem [shape: f32[7,4,128], index: 1, kind: input, shape index: {}]   ;;  %s5975_s2 = inlined_call_operand.vmem [shape: s32[4,1], index: 2, kind: input, shape index: {}]   ;;  %s5976_s3 = inlined_call_operand.vmem [shape: bf16[32,32], index: 3, kind: input, shape index: {}]   ;;  %s5977_s4 = inlined_call_operand.vmem [shape: f32[1,32], index: 4, kind: input, shape index: {}]   ;;  %s5978_s5 = inlined_call_operand.vmem [shape: bf16[32,32], index: 5, kind: input, shape index: {}]   ;;  %s5979_s6 = inlined_call_operand.vmem [shape: f32[1,32], index: 6, kind: input, shape index: {}]   ;;  %s5980_s7 = inlined_call_operand.vmem [shape: f32[1,32], index: 7, kind: input, shape index: {}]   ;;  %s5981_s8 = inlined_call_operand.<no memory space> [shape: f32[1,1], index: 8, kind: input, shape index: {}]   ;;  %s5982_s9 = inlined_call_operand.vmem [shape: bf16[32,32], index: 9, kind: input, shape index: {}]   ;;  %s5983_s10 = inlined_call_operand.vmem [shape: f32[1,32], index: 10, kind: input, shape index: {}]   ;;  %s5984_s11 = inlined_call_operand.vmem [shape: bf16[32,32], index: 11, kind: input, shape index: {}]   ;;  %s5985_s12 = inlined_call_operand.vmem [shape: f32[1,32], index: 12, kind: input, shape index: {}]   ;;  %s5986_s13 = inlined_call_operand.vmem [shape: bf16[32,32], index: 13, kind: input, shape index: {}]   ;;  %s5987_s14 = inlined_call_operand.vmem [shape: f32[1,32], index: 14, kind: input, shape index: {}]   ;;  %s5988_s15 = inlined_call_operand.vmem [shape: bf16[64,128], index: 15, kind: input, shape index: {}]   ;;  %s5989_s16 = inlined_call_operand.hbm [shape: bf16[7,4,32], index: 16, kind: output, shape index: {0}]   ;;  %s5990_s17 = inlined_call_operand.hbm [shape: f32[7,4,128], index: 17, kind: output, shape index: {1}]  }
   0x1   :  { %6005 = sst [smem:[#allocation20_spill]] %s5973_s0  ;;  %v23_v0 = vstv %s5981_s8 }
   0x2   :  { %6006 = sst [smem:[#allocation21_spill]] %s5974_s1  ;;  %24 = vst [vmem:[#allocation5] sm:$0x1] %v23_v0 }
   0x3   :  { %6007 = sst [smem:[#allocation22_spill]] %s5982_s9 }
   0x4   :  { %25 = vsyncpa [#allocation7], 0 }
   0x5   :  { %27 = vsyncpa [#allocation7 + $0x1], 0 }
   0x6   :  { %28 = vsyncpa [#allocation9], 0 }
   0x7   :  { %30 = vsyncpa [#allocation9 + $0x1], 0  ;;  %s4510_s26 = smov 0   ;;  %s4512_s27 = smov 0  }
   0x8   :  { %s4514_s28 = smov 0   ;;  %s4516_s29 = smov 0  }
   0x9   :  { %s4518_s0 = smov 0   ;;  %s4520_s30 = smov 0  }
   0xa LB: > { %6008 = sst [smem:[#allocation12_spill]] %s4383_s26  ;;  %s3669_s8 = sadd.s32 4294967295, %s4403_s30   ;;  %s4403_s30 = sphi %s4520_s30, %s36_s30   ;;  %s4399_s0 = sphi %s4518_s0, %s6057_s0   ;;  %s4395_s29 = sphi %s4516_s29, %s6056_s29   ;;  %s4391_s28 = sphi %s4514_s28, %s6055_s28   ;;  %s4387_s27 = sphi %s4512_s27, %s6054_s27   ;;  %s4383_s26 = sphi %s4510_s26, %s6053_s26  }
   0xb   : > { %6009 = sst [smem:[#allocation13_spill]] %s4387_s27  ;;  %s3670_s18 = sadd.s32 4294967294, %s4403_s30  }
   0xc   : > { %6010 = sst [smem:[#allocation14_spill]] %s4391_s28  ;;  %s45_s19 = sadd.s32 1, %s4399_s0 }
   0xd   : > { %6011 = sst [smem:[#allocation15_spill]] %s4399_s0  ;;  %s410_s1 = sadd.s32 1, %s4391_s28 }
   0xe   : > { %6012 = sst [smem:[#allocation16_spill]] %s4403_s30  ;;  %p46_p0 = scmp.ge.s32.totalorder %s45_s19, 7 }
   0xf   : > { %p420_p1 = scmp.ne.s32.totalorder %s4391_s28, %s4387_s27  ;;  %p421_p2 = scmp.eq.s32.totalorder %s3669_s8, 6 }
  0x10   : > { %p426_p3 = scmp.ne.s32.totalorder %s4387_s27, %s4383_s26  ;;  %s6059_s19 = smov (%p46_p0, %s45_s19), 0 }
  0x11   : > { %6013 = sst [smem:[#allocation17_spill]] %s6059_s19  ;;  %p4550_p4 = por %p421_p2, %p420_p1 }
  0x12   : > { %p427_p5 = scmp.eq.s32.totalorder %s3670_s18, 6  ;;  %s405_s21 = ssub.s32 %s4399_s0, %s6059_s19 }
  0x13   : > { %p3675_p6 = scmp.ge.s32.totalorder %s4403_s30, 1  ;;  %p408_p7 = scmp.eq.s32.totalorder %s405_s21, 0 }
  0x14   : > { %p4557_p8 = por %p427_p5, %p426_p3  ;;  %p539_p9 = scmp.lt.s32.totalorder %s4403_s30, 8 }
  0x15   : > { %s4563_s23 = scalar_select %p408_p7, %s4391_s28, %s410_s1  }
  0x16   : > { %s6015_s22 = scalar_select %p4557_p8, 1, 0 }
  0x17   : > { %6017 = sst [smem:[#allocation19_spill]] %s4563_s23  ;;  %p540_p10 = pnand %p3675_p6, %p539_p9 }
  0x18   : > { %6016 = sst [smem:[#allocation18_spill]] %s6015_s22  ;;  %s4566_s24 = sand.u32 (!%p540_p10), 1, %s4387_s27  }
  0x19   : > { %543 = sbr.rel (%p540_p10) target bundleno = 2279 (0x8e7), region = 84  ;;  %p615_p11 = scmp.lt.s32.totalorder (!%p540_p10), %s4395_s29, 6 }
  0x1a   : > { %s3676_s25 = sshll.u32 (!%p540_p10), %s4566_s24, 1  ;;  %s3677_s8 = sshll.u32 (!%p540_p10), %s4566_s24, 2 }
  0x1b   : > { %s6018_s22 = sld [smem:[#allocation21_spill]] (!%p540_p10)  ;;  %s4577_s1 = scalar_lea.vmem (!%p540_p10), [#allocation6], %s3676_s25 }
  0x1c   : > { %s4579_s23 = scalar_lea.vmem (!%p540_p10), [#allocation8], %s3677_s8  ;;  %p3679_p12 = scmp.ne.s32.totalorder (!%p540_p10), %s4395_s29, 0 }
  0x20   : > { %s616_s18 = scalar_select %p615_p11, %s4395_s29, 6 }
  0x21   : > { %630 = sbr.rel (%p3679_p12) target bundleno = 403 (0x193), region = 88  ;;  %s6019_s9 = sld [smem:[#allocation22_spill]] (!%p3679_p12)  ;;  %v4405_v2 = vmov (!%p3679_p12), 0.0   ;;  %v4166_v3 = vld [vmem:[%s5984_s11] sm:$0xff] (!%p3679_p12)   ;;  %vm4406_vm0 = vmmov (!%p3679_p12), 0   ;;  %v4168_v5 = vld [vmem:[%s5984_s11 + $0x8] sm:$0xff] (!%p3679_p12)  }
  0x22   : > { %s3678_s21 = sshll.u32 %s616_s18, 2  ;;  %3899 = vmatprep.subr.bf16.mxu0 (!%p3679_p12), %v4405_v2  ;;  %3907 = vmatprep.subr.bf16.mxu1 (!%p3679_p12), %v4405_v2  ;;  %v4597_v6 = vld [vmem:[%s5976_s3] sm:$0xff] (!%p3679_p12)   ;;  %vm759_vm1 = vcmask (!%p3679_p12), 261120   ;;  %vm935_vm2 = vcmask (!%p3679_p12), 1041409   ;;  %vm937_vm3 = vcmask (!%p3679_p12), 1042434   ;;  %vm939_vm4 = vcmask (!%p3679_p12), 1043459  }
  0x23   : > { %s4575_s26 = scalar_lea.vmem %s6018_s22, %s3678_s21  ;;  %3903 = vmatprep.mubr.msk.bf16.mxu0 (!%p3679_p12), %vm4406_vm0, %v4405_v2  ;;  %3908 = vmatpush3.bf16.msra.mxu1 (!%p3679_p12), %v4166_v3  ;;  %s6020_s21 = sld [smem:[#allocation20_spill]] (!%p3679_p12)  ;;  %vm997_vm5 = vcmask (!%p3679_p12), 257024  }
  0x24   : > { %3909 = vmatprep.subr.bf16.mxu1 (!%p3679_p12), %v4405_v2  ;;  %3911 = vmatprep.mubr.msk.bf16.mxu1 (!%p3679_p12), %vm4406_vm0, %v4405_v2 }
  0x27   : > { %v4165_v1 = vld [vmem:[%s6019_s9] sm:$0xff] (!%p3679_p12)   ;;  %v4167_v4 = vld [vmem:[%s6019_s9 + $0x8] sm:$0xff] (!%p3679_p12)   ;;  %3910 = vmatpush3.bf16.msra.mxu1 (!%p3679_p12), %v4168_v5 }
  0x28   : > { %3900 = vmatpush3.bf16.msra.mxu0 %v4165_v1  ;;  %4091 = vmatprep.subr.bf16.mxu1 %v4597_v6 }
  0x29   : > { %3901 = vmatprep.subr.bf16.mxu0 %v4405_v2  ;;  %v4604_v7 = vld [vmem:[%s6020_s21] sm:$0xff]   ;;  %v4609_v8 = vld [vmem:[%s6020_s21 + $0x8] sm:$0xff]   ;;  %v4614_v9 = vld [vmem:[%s6020_s21 + $0x10] sm:$0xff]  }
  0x2a   : > { %v4619_v10 = vld [vmem:[%s6020_s21 + $0x18] sm:$0xff]   ;;  %v4624_v11 = vld [vmem:[%s6020_s21 + $0x20] sm:$0xff]   ;;  %v4629_v12 = vld [vmem:[%s6020_s21 + $0x28] sm:$0xff]   ;;  %v695_v15 = vunpack.c.l.bf16 %v4604_v7  ;;  %v696_v16 = vunpack.c.h.bf16 %v4604_v7  ;;  %v697_v17 = vunpack.c.l.bf16 %v4609_v8  ;;  %v698_v20 = vunpack.c.h.bf16 %v4609_v8 }
  0x2b   : > { %v4634_v13 = vld [vmem:[%s6020_s21 + $0x30] sm:$0xff]   ;;  %v4639_v14 = vld [vmem:[%s6020_s21 + $0x38] sm:$0xff]   ;;  %v4647_v18 = vld [vmem:[%s6020_s21 + $0x40] sm:$0xff]   ;;  %v699_v21 = vunpack.c.l.bf16 %v4614_v9  ;;  %v700_v22 = vunpack.c.h.bf16 %v4614_v9  ;;  %v701_v23 = vunpack.c.l.bf16 %v4619_v10  ;;  %v702_v26 = vunpack.c.h.bf16 %v4619_v10 }
  0x2c   : > { %3902 = vmatpush3.bf16.msra.mxu0 %v4167_v4  ;;  %v4652_v19 = vld [vmem:[%s6020_s21 + $0x48] sm:$0xff]   ;;  %v4661_v24 = vld [vmem:[%s6020_s21 + $0x50] sm:$0xff]   ;;  %v4666_v25 = vld [vmem:[%s6020_s21 + $0x58] sm:$0xff]   ;;  %v703_v27 = vunpack.c.l.bf16 %v4624_v11  ;;  %v704_v28 = vunpack.c.h.bf16 %v4624_v11  ;;  %v705_v29 = vunpack.c.l.bf16 %v4629_v12  ;;  %v711_v39 = vunpack.c.l.bf16 %v4647_v18 }
  0x2d   : > { %3915 = vmatprep.subr.bf16.mxu0 %v4597_v6  ;;  %v4675_v30 = vld [vmem:[%s6020_s21 + $0x60] sm:$0xff]   ;;  %v4680_v31 = vld [vmem:[%s6020_s21 + $0x68] sm:$0xff]   ;;  %v4689_v36 = vld [vmem:[%s6020_s21 + $0x70] sm:$0xff]   ;;  %v712_v40 = vunpack.c.h.bf16 %v4647_v18  ;;  %v713_v41 = vunpack.c.l.bf16 %v4652_v19  ;;  %v714_v44 = vunpack.c.h.bf16 %v4652_v19  ;;  %v715_v45 = vunpack.c.l.bf16 %v4661_v24 }
  0x2e   : > { %v4694_v37 = vld [vmem:[%s6020_s21 + $0x78] sm:$0xff]   ;;  %v4703_v42 = vld [vmem:[%s6020_s21 + $0x80] sm:$0xff]   ;;  %v4708_v43 = vld [vmem:[%s6020_s21 + $0x88] sm:$0xff]   ;;  %v716_v46 = vunpack.c.h.bf16 %v4661_v24  ;;  %v717_v47 = vunpack.c.l.bf16 %v4666_v25  ;;  %v718_v48 = vunpack.c.h.bf16 %v4666_v25  ;;  %v760_v2 = vsel %vm759_vm1, %v695_v15, 0.0 }
  0x2f   : > { %v4721_v52 = vld [vmem:[%s6020_s21 + $0x90] sm:$0xff]   ;;  %v4726_v53 = vld [vmem:[%s6020_s21 + $0x98] sm:$0xff]   ;;  %v4735_v58 = vld [vmem:[%s6020_s21 + $0xa0] sm:$0xff]   ;;  %v727_v60 = vunpack.c.l.bf16 %v4703_v42  ;;  %v728_v61 = vunpack.c.h.bf16 %v4703_v42  ;;  %v729_v62 = vunpack.c.l.bf16 %v4708_v43  ;;  %v730_v1 = vunpack.c.h.bf16 %v4708_v43 }
  0x30   : > { %v4744_v63 = vld [vmem:[%s6020_s21 + $0xa8] sm:$0xff]   ;;  %v4749_v0 = vld [vmem:[%s6020_s21 + $0xb0] sm:$0xff]   ;;  %v761_v3 = vsel %vm759_vm1, %v696_v16, 0.0  ;;  %v763_v4 = vsel %vm759_vm1, %v697_v17, 0.0  ;;  %v731_v5 = vunpack.c.l.bf16 %v4721_v52  ;;  %v4761_v38 = vld [vmem:[%s6020_s21 + $0xb8] sm:$0xff]   ;;  %v765_v17 = vsel %vm759_vm1, %v698_v20, 0.0 }
  0x31   : > { %v762_v56 = vadd.f32 %v761_v3, %v760_v2  ;;  %v4770_v35 = vld [vmem:[%s6020_s21 + $0xc0] sm:$0xff]   ;;  %v4778_v15 = vld [vmem:[%s6020_s21 + $0xc8] sm:$0xff]   ;;  %v767_v20 = vsel %vm759_vm1, %v699_v21, 0.0  ;;  %v797_v55 = vsel %vm759_vm1, %v711_v39, 0.0  ;;  %v798_v2 = vsel %vm759_vm1, %v712_v40, 0.0  ;;  %v4789_v54 = vld [vmem:[%s6020_s21 + $0xd0] sm:$0xff]  }
  0x32   : > { %v799_v3 = vadd.f32 %v798_v2, %v797_v55  ;;  %v800_v51 = vsel %vm759_vm1, %v713_v41, 0.0  ;;  %v4796_v16 = vld [vmem:[%s6020_s21 + $0xd8] sm:$0xff]   ;;  %v743_v21 = vunpack.c.l.bf16 %v4770_v35  ;;  %v744_v39 = vunpack.c.h.bf16 %v4770_v35 }
  0x33   : > { %v764_v34 = vadd.f32 %v763_v4, %v762_v56  ;;  %v769_v40 = vsel %vm759_vm1, %v700_v22, 0.0  ;;  %v802_v33 = vsel %vm759_vm1, %v714_v44, 0.0  ;;  %v746_v55 = vunpack.c.h.bf16 %v4778_v15  ;;  %v4815_v22 = vld [vmem:[%s6020_s21 + $0xe0] sm:$0xff]  }
  0x34   : > { %v747_v2 = vunpack.c.l.bf16 %v4789_v54  ;;  %v748_v56 = vunpack.c.h.bf16 %v4789_v54  ;;  %v771_v57 = vsel %vm759_vm1, %v701_v23, 0.0  ;;  %v804_v50 = vsel %vm759_vm1, %v715_v45, 0.0 }
  0x35   : > { %v766_v4 = vadd.f32 %v765_v17, %v764_v34  ;;  %v745_v34 = vunpack.c.l.bf16 %v4778_v15  ;;  %v801_v17 = vadd.f32 %v800_v51, %v799_v3  ;;  %v773_v51 = vsel %vm759_vm1, %v702_v26, 0.0 }
  0x36   : > { %v834_v23 = vsel %vm759_vm1, %v727_v60, 0.0  ;;  %v835_v45 = vsel %vm759_vm1, %v728_v61, 0.0  ;;  %v750_v59 = vunpack.c.h.bf16 %v4796_v16  ;;  %v775_v26 = vsel %vm759_vm1, %v703_v27, 0.0 }
  0x37   : > { %v768_v41 = vadd.f32 %v767_v20, %v766_v4  ;;  %v803_v3 = vadd.f32 %v802_v33, %v801_v17  ;;  %v806_v20 = vsel %vm759_vm1, %v716_v46, 0.0  ;;  %v837_v4 = vsel %vm759_vm1, %v729_v62, 0.0 }
  0x38   : > { %v808_v33 = vsel %vm759_vm1, %v717_v47, 0.0  ;;  %v839_v46 = vsel %vm759_vm1, %v730_v1, 0.0  ;;  %v752_v60 = vunpack.c.h.bf16 %v4815_v22  ;;  %v810_v27 = vsel %vm759_vm1, %v718_v48, 0.0 }
  0x39   : > { %v770_v32 = vadd.f32 %v769_v40, %v768_v41  ;;  %v805_v44 = vadd.f32 %v804_v50, %v803_v3  ;;  %v836_v40 = vadd.f32 %v835_v45, %v834_v23  ;;  %v751_v41 = vunpack.c.l.bf16 %v4815_v22 }
  0x3a   : > { %v779_v50 = vsel %vm759_vm1, %v705_v29, 0.0  ;;  %v841_v47 = vsel %vm759_vm1, %v731_v5, 0.0  ;;  %v6022_v3 = vunpack.c.h.bf16 %v4721_v52  ;;  %v872_v29 = vsel %vm759_vm1, %v744_v39, 0.0 }
  0x3b   : > { %v772_v49 = vadd.f32 %v771_v57, %v770_v32  ;;  %v807_v62 = vadd.f32 %v806_v20, %v805_v44  ;;  %v838_v17 = vadd.f32 %v837_v4, %v836_v40  ;;  %v777_v32 = vsel %vm759_vm1, %v704_v28, 0.0 }
  0x3c   : > { %v843_v28 = vsel %vm759_vm1, %v6022_v3, 0.0  ;;  %v871_v20 = vsel %vm759_vm1, %v743_v21, 0.0  ;;  %v874_v23 = vsel %vm759_vm1, %v745_v34, 0.0  ;;  %v6023_v40 = vunpack.c.h.bf16 %v4629_v12 }
  0x3d   : > { %v774_v61 = vadd.f32 %v773_v51, %v772_v49  ;;  %v809_v1 = vadd.f32 %v808_v33, %v807_v62  ;;  %v6021_v49 = vunpack.c.l.bf16 %v4675_v30  ;;  %v840_v51 = vadd.f32 %v839_v46, %v838_v17 }
  0x3e   : > { %v873_v4 = vadd.f32 %v872_v29, %v871_v20  ;;  %v6024_v33 = vunpack.c.h.bf16 %v4675_v30  ;;  %v876_v39 = vsel %vm759_vm1, %v746_v55, 0.0  ;;  %v878_v3 = vsel %vm759_vm1, %v747_v2, 0.0 }
  0x3f   : > { %v776_v57 = vadd.f32 %v775_v26, %v774_v61  ;;  %v812_v44 = vsel %vm759_vm1, %v6021_v49, 0.0  ;;  %v811_v45 = vadd.f32 %v810_v27, %v809_v1  ;;  %v842_v5 = vadd.f32 %v841_v47, %v840_v51 }
  0x40   : > { %v781_v26 = vsel %vm759_vm1, %v6023_v40, 0.0  ;;  %v814_v46 = vsel %vm759_vm1, %v6024_v33, 0.0  ;;  %v6025_v61 = vunpack.c.l.bf16 %v4726_v53  ;;  %v6026_v27 = vunpack.c.l.bf16 %v4634_v13 }
  0x41   : > { %v778_v48 = vadd.f32 %v777_v32, %v776_v57  ;;  %v813_v34 = vadd.f32 %v812_v44, %v811_v45  ;;  %v844_v17 = vadd.f32 %v843_v28, %v842_v5  ;;  %v875_v32 = vadd.f32 %v874_v23, %v873_v4 }
  0x42   : > { %v845_v21 = vsel %vm759_vm1, %v6025_v61, 0.0  ;;  %v783_v47 = vsel %vm759_vm1, %v6026_v27, 0.0  ;;  %v6027_v57 = vunpack.c.l.bf16 %v4680_v31  ;;  %v6028_v49 = vunpack.c.h.bf16 %v4726_v53 }
  0x43   : > { %v780_v62 = vadd.f32 %v779_v50, %v778_v48  ;;  %v815_v55 = vadd.f32 %v814_v46, %v813_v34  ;;  %v846_v50 = vadd.f32 %v845_v21, %v844_v17  ;;  %v877_v44 = vadd.f32 %v876_v39, %v875_v32  ;;  %v4901_v32 = vld [vmem:[%s6020_s21 + $0xe8] sm:$0xff]  }
  0x44   : > { %v816_v1 = vsel %vm759_vm1, %v6027_v57, 0.0  ;;  %v847_v51 = vsel %vm759_vm1, %v6028_v49, 0.0  ;;  %v6029_v28 = vunpack.c.h.bf16 %v4634_v13  ;;  %v6030_v23 = vunpack.c.h.bf16 %v4680_v31 }
  0x45   : > { %v782_v20 = vadd.f32 %v781_v26, %v780_v62  ;;  %v6031_v45 = vunpack.c.l.bf16 %v4735_v58  ;;  %v880_v4 = vsel %vm759_vm1, %v748_v56, 0.0  ;;  %v817_v2 = vadd.f32 %v816_v1, %v815_v55 }
  0x46   : > { %v785_v29 = vsel %vm759_vm1, %v6029_v28, 0.0  ;;  %v818_v48 = vsel %vm759_vm1, %v6030_v23, 0.0  ;;  %v848_v26 = vadd.f32 %v847_v51, %v846_v50  ;;  %v879_v33 = vadd.f32 %v878_v3, %v877_v44 }
  0x47   : > { %v849_v5 = vsel %vm759_vm1, %v6031_v45, 0.0  ;;  %v784_v40 = vadd.f32 %v783_v47, %v782_v20  ;;  %v6032_v46 = vunpack.c.l.bf16 %v4639_v14  ;;  %v6033_v21 = vunpack.c.l.bf16 %v4689_v36 }
  0x48   : > { %v6034_v62 = vunpack.c.h.bf16 %v4735_v58  ;;  %v6035_v17 = vunpack.c.l.bf16 %v4796_v16  ;;  %v819_v47 = vadd.f32 %v818_v48, %v817_v2  ;;  %v850_v57 = vadd.f32 %v849_v5, %v848_v26 }
  0x49   : > { %v787_v61 = vsel %vm759_vm1, %v6032_v46, 0.0  ;;  %v820_v39 = vsel %vm759_vm1, %v6033_v21, 0.0  ;;  %v786_v27 = vadd.f32 %v785_v29, %v784_v40  ;;  %v881_v1 = vadd.f32 %v880_v4, %v879_v33 }
  0x4a   : > { %v851_v34 = vsel %vm759_vm1, %v6034_v62, 0.0  ;;  %v882_v56 = vsel %vm759_vm1, %v6035_v17, 0.0  ;;  %v6036_v49 = vunpack.c.h.bf16 %v4639_v14  ;;  %v6037_v3 = vunpack.c.h.bf16 %v4689_v36 }
  0x4b   : > { %v6038_v55 = vunpack.c.l.bf16 %v4744_v63  ;;  %v884_v44 = vsel %vm759_vm1, %v750_v59, 0.0  ;;  %v788_v28 = vadd.f32 %v787_v61, %v786_v27  ;;  %v821_v29 = vadd.f32 %v820_v39, %v819_v47  ;;  %v4928_v59 = vld [vmem:[%s6020_s21 + $0xf0] sm:$0xff]  }
  0x4c   : > { %v789_v51 = vsel %vm759_vm1, %v6036_v49, 0.0  ;;  %v822_v20 = vsel %vm759_vm1, %v6037_v3, 0.0  ;;  %v852_v23 = vadd.f32 %v851_v34, %v850_v57  ;;  %v883_v48 = vadd.f32 %v882_v56, %v881_v1 }
  0x4d   : > { %v853_v50 = vsel %vm759_vm1, %v6038_v55, 0.0  ;;  %v753_v45 = vunpack.c.l.bf16 %v4901_v32  ;;  %v6039_v5 = vunpack.c.l.bf16 %v4694_v37  ;;  %v6040_v40 = vunpack.c.h.bf16 %v4744_v63 }
  0x4e   : > { %v886_v26 = vsel %vm759_vm1, %v751_v41, 0.0  ;;  %v790_v33 = vadd.f32 %v789_v51, %v788_v28  ;;  %v823_v46 = vadd.f32 %v822_v20, %v821_v29  ;;  %v854_v61 = vadd.f32 %v853_v50, %v852_v23  ;;  %v4949_v50 = vld [vmem:[%s6020_s21 + $0xf8] sm:$0xff]  }
  0x4f   : > { %v824_v4 = vsel %vm759_vm1, %v6039_v5, 0.0  ;;  %v855_v2 = vsel %vm759_vm1, %v6040_v40, 0.0  ;;  %v885_v21 = vadd.f32 %v884_v44, %v883_v48  ;;  %v754_v39 = vunpack.c.h.bf16 %v4901_v32 }
  0x50   : > { %v6041_v62 = vunpack.c.h.bf16 %v4694_v37  ;;  %v6042_v17 = vunpack.c.l.bf16 %v4749_v0  ;;  %v888_v41 = vsel %vm759_vm1, %v752_v60, 0.0  ;;  %v791_v27 = vrot.slane %v790_v33, 4 }
  0x51   : > { %v825_v47 = vadd.f32 %v824_v4, %v823_v46  ;;  %v856_v57 = vadd.f32 %v855_v2, %v854_v61  ;;  %v887_v1 = vadd.f32 %v886_v26, %v885_v21  ;;  %v742_v49 = vunpack.c.h.bf16 %v4761_v38 }
  0x52   : > { %v826_v34 = vsel %vm759_vm1, %v6041_v62, 0.0  ;;  %v857_v56 = vsel %vm759_vm1, %v6042_v17, 0.0  ;;  %v755_v51 = vunpack.c.l.bf16 %v4928_v59  ;;  %v6043_v3 = vunpack.c.h.bf16 %v4749_v0 }
  0x53   : > { %v890_v55 = vsel %vm759_vm1, %v753_v45, 0.0  ;;  %v792_v60 = vadd.f32 %v791_v27, %v790_v33  ;;  %v827_v44 = vadd.f32 %v826_v34, %v825_v47  ;;  %v858_v28 = vadd.f32 %v857_v56, %v856_v57 }
  0x54   : > { %v859_v20 = vsel %vm759_vm1, %v6043_v3, 0.0  ;;  %v889_v29 = vadd.f32 %v888_v41, %v887_v1  ;;  %v756_v23 = vunpack.c.h.bf16 %v4928_v59  ;;  %v6044_v48 = vunpack.c.l.bf16 %v4761_v38 }
  0x55   : > { %v892_v4 = vsel %vm759_vm1, %v754_v39, 0.0  ;;  %v793_v40 = vrot.slane %v792_v60, 2  ;;  %v828_v2 = vrot.slane %v827_v44, 4  ;;  %v860_v45 = vadd.f32 %v859_v20, %v858_v28 }
  0x56   : > { %v861_v5 = vsel %vm759_vm1, %v6044_v48, 0.0  ;;  %v891_v26 = vadd.f32 %v890_v55, %v889_v29  ;;  %v757_v46 = vunpack.c.l.bf16 %v4949_v50  ;;  %v863_v61 = vsel %vm759_vm1, %v742_v49, 0.0 }
  0x57   : > { %v894_v33 = vsel %vm759_vm1, %v755_v51, 0.0  ;;  %v794_v21 = vadd.f32 %v793_v40, %v792_v60  ;;  %v829_v62 = vadd.f32 %v828_v2, %v827_v44  ;;  %v862_v34 = vadd.f32 %v861_v5, %v860_v45 }
  0x58   : > { %v893_v17 = vadd.f32 %v892_v4, %v891_v26  ;;  %v758_v56 = vunpack.c.h.bf16 %v4949_v50  ;;  %v896_v41 = vsel %vm759_vm1, %v756_v23, 0.0  ;;  %v898_v1 = vsel %vm759_vm1, %v757_v46, 0.0 }
  0x59   : > { %v795_v27 = vrot.slane %v794_v21, 1  ;;  %v830_v39 = vrot.slane %v829_v62, 2  ;;  %v864_v47 = vadd.f32 %v863_v61, %v862_v34 }
  0x5a   : > { %v895_v57 = vadd.f32 %v894_v33, %v893_v17  ;;  %v900_v49 = vsel %vm759_vm1, %v758_v56, 0.0 }
  0x5b   : > { %v831_v3 = vadd.f32 %v830_v39, %v829_v62  ;;  %v865_v20 = vrot.slane %v864_v47, 4  ;;  %v796_v51 = vadd.f32 %v795_v27, %v794_v21 }
  0x5c   : > { %v897_v55 = vadd.f32 %v896_v41, %v895_v57 }
  0x5d   : > { %v832_v60 = vrot.slane %v831_v3, 1  ;;  %v866_v44 = vadd.f32 %v865_v20, %v864_v47  ;;  %v908_v40 = vmul.f32 0.0625, %v796_v51 }
  0x5e   : > { %v899_v28 = vadd.f32 %v898_v1, %v897_v55 }
  0x5f   : > { %v833_v29 = vadd.f32 %v832_v60, %v831_v3  ;;  %v867_v48 = vrot.slane %v866_v44, 2  ;;  %v912_v33 = vpack.c.bf16 %v908_v40, %v908_v40  ;;  %v4170_v60 = vld [vmem:[%s5976_s3 + $0x8] sm:$0xff]  }
  0x60   : > { %v901_v5 = vadd.f32 %v900_v49, %v899_v28 }
  0x61   : > { %v868_v4 = vadd.f32 %v867_v48, %v866_v44  ;;  %v909_v2 = vmul.f32 0.0625, %v833_v29  ;;  %v931_v41 = vunpack.c.l.b16 %v912_v33 }
  0x62   : > { %v902_v23 = vrot.slane %v901_v5, 4 }
  0x63   : > { %v869_v45 = vrot.slane %v868_v4, 1  ;;  %v913_v62 = vpack.c.bf16 %v909_v2, %v909_v2 }
  0x64   : > { %v903_v26 = vadd.f32 %v902_v23, %v901_v5 }
  0x65   : > { %v870_v61 = vadd.f32 %v869_v45, %v868_v4  ;;  %v932_v27 = vunpack.c.l.b16 %v913_v62 }
  0x66   : > { %v904_v46 = vrot.slane %v903_v26, 2 }
  0x67   : > { %v910_v17 = vmul.f32 0.0625, %v870_v61  ;;  %v936_v1 = vsel %vm935_vm2, %v932_v27, %v931_v41 }
  0x68   : > { %v905_v34 = vadd.f32 %v904_v46, %v903_v26 }
  0x69   : > { %v914_v21 = vpack.c.bf16 %v910_v17, %v910_v17 }
  0x6a   : > { %v906_v56 = vrot.slane %v905_v34, 1 }
  0x6b   : > { %v933_v47 = vunpack.c.l.b16 %v914_v21 }
  0x6c   : > { %v907_v39 = vadd.f32 %v906_v56, %v905_v34 }
  0x6d   : > { %v938_v20 = vsel %vm937_vm3, %v933_v47, %v936_v1 }
  0x6e   : > { %v911_v57 = vmul.f32 0.0625, %v907_v39 }
  0x70   : > { %v915_v3 = vpack.c.bf16 %v911_v57, %v911_v57 }
  0x72   : > { %v934_v55 = vunpack.c.l.b16 %v915_v3 }
  0x74   : > { %v940_v49 = vsel %vm939_vm4, %v934_v55, %v938_v20 }
  0x75   : > { %v941_v51 = vpack.c.b16 %v940_v49, %v940_v49 }
  0x77   : > { %3904 = vmatmul.mubr.msk.bf16.vlgmr.msra.gmra.mrb[0].mxu0 %vm759_vm1, %v941_v51  ;;  %3912 = vmatmul.mubr.msk.bf16.vlgmr.msra.gmra.mrb[0].mxu1 %vm759_vm1, %v941_v51 }
  0x78   : > { %3916 = vmatpush3.bf16.msra.mxu0 %v4597_v6  ;;  %4093 = vmatpush3.bf16.msra.mxu1 %v4597_v6  ;;  %v3680_v6 = vld [vmem:[%s5983_s10] ss:$0 sm:$0xff] }
  0x79   : > { %3917 = vmatprep.subr.bf16.mxu0 %v4170_v60  ;;  %4092 = vmatprep.subr.bf16.mxu1 %v4170_v60 }
  0x7a   : > { %3919 = vmatprep.mubr.msk.bf16.mxu0 %vm759_vm1, %v4604_v7  ;;  %3951 = vmatprep.mubr.msk.bf16.mxu1 %vm759_vm1, %v4703_v42  ;;  %v3684_v7 = vld [vmem:[%s5985_s12] ss:$0 sm:$0xff] }
  0x7c   : > { %3918 = vmatpush3.bf16.msra.mxu0 %v4170_v60  ;;  %4094 = vmatpush3.bf16.msra.mxu1 %v4170_v60 }
  0x7f   : > { %3920 = vmatmul.mubr.msk.bf16.vlgmr.msra.gmra.mrb[4].mxu0 %vm759_vm1, %v4609_v8  ;;  %3952 = vmatmul.mubr.msk.bf16.vlgmr.msra.gmra.mrb[4].mxu1 %vm759_vm1, %v4708_v43 }
  0x80   : > { %3923 = vmatprep.mubr.msk.bf16.mxu0 %vm759_vm1, %v4614_v9  ;;  %3955 = vmatprep.mubr.msk.bf16.mxu1 %vm759_vm1, %v4721_v52 }
  0x87   : > { %3924 = vmatmul.mubr.msk.bf16.gmra.mrb[8].mxu0 %vm759_vm1, %v4619_v10  ;;  %3956 = vmatmul.mubr.msk.bf16.gmra.mrb[8].mxu1 %vm759_vm1, %v4726_v53 }
  0x88   : > { %3927 = vmatprep.mubr.msk.bf16.mxu0 %vm759_vm1, %v4624_v11  ;;  %3959 = vmatprep.mubr.msk.bf16.mxu1 %vm759_vm1, %v4735_v58 }
  0x8f   : > { %3928 = vmatmul.mubr.msk.bf16.gmra.mrb[12].mxu0 %vm759_vm1, %v4629_v12  ;;  %3960 = vmatmul.mubr.msk.bf16.gmra.mrb[12].mxu1 %vm759_vm1, %v4744_v63 }
  0x90   : > { %3931 = vmatprep.mubr.msk.bf16.mxu0 %vm759_vm1, %v4634_v13  ;;  %3963 = vmatprep.mubr.msk.bf16.mxu1 %vm759_vm1, %v4749_v0 }
  0x97   : > { %3932 = vmatmul.mubr.msk.bf16.gmra.mrb[16].mxu0 %vm759_vm1, %v4639_v14  ;;  %3964 = vmatmul.mubr.msk.bf16.gmra.mrb[16].mxu1 %vm759_vm1, %v4761_v38 }
  0x98   : > { %3935 = vmatprep.mubr.msk.bf16.mxu0 %vm759_vm1, %v4647_v18  ;;  %3967 = vmatprep.mubr.msk.bf16.mxu1 %vm759_vm1, %v4770_v35 }
  0x9f   : > { %3936 = vmatmul.mubr.msk.bf16.gmra.mrb[20].mxu0 %vm759_vm1, %v4652_v19  ;;  %3968 = vmatmul.mubr.msk.bf16.gmra.mrb[20].mxu1 %vm759_vm1, %v4778_v15 }
  0xa0   : > { %3939 = vmatprep.mubr.msk.bf16.mxu0 %vm759_vm1, %v4661_v24  ;;  %3971 = vmatprep.mubr.msk.bf16.mxu1 %vm759_vm1, %v4789_v54 }
  0xa7   : > { %3940 = vmatmul.mubr.msk.bf16.gmra.mrb[24].mxu0 %vm759_vm1, %v4666_v25  ;;  %3972 = vmatmul.mubr.msk.bf16.gmra.mrb[24].mxu1 %vm759_vm1, %v4796_v16 }
  0xa8   : > { %3943 = vmatprep.mubr.msk.bf16.mxu0 %vm759_vm1, %v4675_v30  ;;  %3975 = vmatprep.mubr.msk.bf16.mxu1 %vm759_vm1, %v4815_v22  ;;  %v5043_v30 = vld [vmem:[%s5977_s4] ss:$0 sm:$0xff] }
  0xaf   : > { %3944 = vmatmul.mubr.msk.bf16.gmra.mrb[28].mxu0 %vm759_vm1, %v4680_v31  ;;  %3976 = vmatmul.mubr.msk.bf16.gmra.mrb[28].mxu1 %vm759_vm1, %v4901_v32 }
  0xb0   : > { %3947 = vmatprep.mubr.msk.bf16.mxu0 %vm759_vm1, %v4689_v36  ;;  %3979 = vmatprep.mubr.msk.bf16.mxu1 %vm759_vm1, %v4928_v59 }
  0xb7   : > { %3948 = vmatmul.mubr.msk.bf16.gmra.mrb[32].mxu0 %vm759_vm1, %v4694_v37  ;;  %3980 = vmatmul.mubr.msk.bf16.gmra.mrb[32].mxu1 %vm759_vm1, %v4949_v50 }
 0x14a   : > { %v991_v8 = vpop.f32.mrb[0].mxu0  ;;  %v1056_v9 = vpop.f32.mrb[0].mxu1 }
 0x14b   : > { %v992_v10 = vadd.f32 %v3680_v6, %v991_v8  ;;  %v1057_v11 = vadd.f32 %v3684_v7, %v1056_v9  ;;  %v3905_v12 = vpop.f32.mrb[1].mxu0  ;;  %v3913_v13 = vpop.f32.mrb[1].mxu1 }
 0x14c   : > { %v994_v14 = vpop.f32.mrb[2].mxu0  ;;  %v1059_v18 = vpop.f32.mrb[2].mxu1 }
 0x14d   : > { %998 = vst.msk [vmem:[#allocation2] sm:$0xf] %vm997_vm5, %v992_v10  ;;  %1062 = vst.msk [vmem:[#allocation3] sm:$0xf] %vm997_vm5, %v1057_v11  ;;  %v3906_v19 = vpop.f32.mrb[3].mxu0  ;;  %v3914_v24 = vpop.f32.mrb[3].mxu1 }
 0x152   : > { %v3921_v25 = vpop.f32.mrb[4].mxu0  ;;  %v3953_v31 = vpop.f32.mrb[4].mxu1 }
 0x153   : > { %v1376_v35 = vpop.f32.mrb[5].mxu0  ;;  %v1504_v36 = vpop.f32.mrb[5].mxu1  ;;  %v1385_v42 = vadd.f32 %v3921_v25, %v5043_v30  ;;  %v1513_v43 = vadd.f32 %v3953_v31, %v5043_v30 }
 0x154   : > { %v3922_v37 = vpop.f32.mrb[6].mxu0  ;;  %v3954_v38 = vpop.f32.mrb[6].mxu1  ;;  %v1377_v63 = vadd.f32 %v5043_v30, %v1376_v35  ;;  %v1505_v0 = vadd.f32 %v5043_v30, %v1504_v36 }
 0x155   : > { %v1388_v52 = vadd.f32 %v3922_v37, %v5043_v30  ;;  %v1516_v53 = vadd.f32 %v3954_v38, %v5043_v30  ;;  %v1379_v54 = vpop.f32.mrb[7].mxu0  ;;  %v1507_v58 = vpop.f32.mrb[7].mxu1 }
 0x156   : > { %v1380_v15 = vadd.f32 %v5043_v30, %v1379_v54  ;;  %v1508_v16 = vadd.f32 %v5043_v30, %v1507_v58 }
 0x157   : > { %v1632_v22 = vpack.c.bf16 %v1388_v52, %v1385_v42  ;;  %v1648_v32 = vpack.c.bf16 %v1516_v53, %v1513_v43 }
 0x158   : > { %v1631_v59 = vpack.c.bf16 %v1380_v15, %v1377_v63  ;;  %v1647_v50 = vpack.c.bf16 %v1508_v16, %v1505_v0 }
 0x159   : > { %1664 = vst.msk [vmem:[#allocation4 + $0x8] sm:$0xff] %vm759_vm1, %v1632_v22  ;;  %1680 = vst.msk [vmem:[#allocation4 + $0x88] sm:$0xff] %vm759_vm1, %v1648_v32 }
 0x15a   : > { %1663 = vst.msk [vmem:[#allocation4] sm:$0xff] %vm759_vm1, %v1631_v59  ;;  %1679 = vst.msk [vmem:[#allocation4 + $0x80] sm:$0xff] %vm759_vm1, %v1647_v50  ;;  %v3925_v44 = vpop.f32.mrb[8].mxu0  ;;  %v3957_v28 = vpop.f32.mrb[8].mxu1 }
 0x15b   : > { %v1392_v29 = vpop.f32.mrb[9].mxu0  ;;  %v1520_v48 = vpop.f32.mrb[9].mxu1  ;;  %v1401_v23 = vadd.f32 %v3925_v44, %v5043_v30  ;;  %v1529_v40 = vadd.f32 %v3957_v28, %v5043_v30 }
 0x15c   : > { %v3926_v5 = vpop.f32.mrb[10].mxu0  ;;  %v3958_v4 = vpop.f32.mrb[10].mxu1  ;;  %v1393_v46 = vadd.f32 %v5043_v30, %v1392_v29  ;;  %v1521_v33 = vadd.f32 %v5043_v30, %v1520_v48 }
 0x15d   : > { %v1404_v2 = vadd.f32 %v3926_v5, %v5043_v30  ;;  %v1532_v45 = vadd.f32 %v3958_v4, %v5043_v30  ;;  %v1395_v26 = vpop.f32.mrb[11].mxu0  ;;  %v1523_v61 = vpop.f32.mrb[11].mxu1 }
 0x15e   : > { %v1396_v62 = vadd.f32 %v5043_v30, %v1395_v26  ;;  %v1524_v34 = vadd.f32 %v5043_v30, %v1523_v61 }
 0x15f   : > { %v1634_v17 = vpack.c.bf16 %v1404_v2, %v1401_v23  ;;  %v1650_v56 = vpack.c.bf16 %v1532_v45, %v1529_v40 }
 0x160   : > { %v1633_v21 = vpack.c.bf16 %v1396_v62, %v1393_v46  ;;  %v1649_v41 = vpack.c.bf16 %v1524_v34, %v1521_v33 }
 0x161   : > { %1666 = vst.msk [vmem:[#allocation4 + $0x18] sm:$0xff] %vm759_vm1, %v1634_v17  ;;  %1682 = vst.msk [vmem:[#allocation4 + $0x98] sm:$0xff] %vm759_vm1, %v1650_v56 }
 0x162   : > { %1665 = vst.msk [vmem:[#allocation4 + $0x10] sm:$0xff] %vm759_vm1, %v1633_v21  ;;  %1681 = vst.msk [vmem:[#allocation4 + $0x90] sm:$0xff] %vm759_vm1, %v1649_v41  ;;  %v3929_v27 = vpop.f32.mrb[12].mxu0  ;;  %v3961_v39 = vpop.f32.mrb[12].mxu1 }
 0x163   : > { %v1408_v47 = vpop.f32.mrb[13].mxu0  ;;  %v1536_v57 = vpop.f32.mrb[13].mxu1  ;;  %v1417_v20 = vadd.f32 %v3929_v27, %v5043_v30  ;;  %v1545_v55 = vadd.f32 %v3961_v39, %v5043_v30 }
 0x164   : > { %v3930_v1 = vpop.f32.mrb[14].mxu0  ;;  %v3962_v3 = vpop.f32.mrb[14].mxu1  ;;  %v1409_v7 = vadd.f32 %v5043_v30, %v1408_v47  ;;  %v1537_v8 = vadd.f32 %v5043_v30, %v1536_v57 }
 0x165   : > { %v1420_v49 = vadd.f32 %v3930_v1, %v5043_v30  ;;  %v1548_v51 = vadd.f32 %v3962_v3, %v5043_v30  ;;  %v1411_v60 = vpop.f32.mrb[15].mxu0  ;;  %v1539_v6 = vpop.f32.mrb[15].mxu1 }
 0x166   : > { %v1412_v9 = vadd.f32 %v5043_v30, %v1411_v60  ;;  %v1540_v10 = vadd.f32 %v5043_v30, %v1539_v6 }
 0x167   : > { %v1636_v11 = vpack.c.bf16 %v1420_v49, %v1417_v20  ;;  %v1652_v12 = vpack.c.bf16 %v1548_v51, %v1545_v55 }
 0x168   : > { %v1635_v13 = vpack.c.bf16 %v1412_v9, %v1409_v7  ;;  %v1651_v14 = vpack.c.bf16 %v1540_v10, %v1537_v8 }
 0x169   : > { %1668 = vst.msk [vmem:[#allocation4 + $0x28] sm:$0xff] %vm759_vm1, %v1636_v11  ;;  %1684 = vst.msk [vmem:[#allocation4 + $0xa8] sm:$0xff] %vm759_vm1, %v1652_v12 }
 0x16a   : > { %1667 = vst.msk [vmem:[#allocation4 + $0x20] sm:$0xff] %vm759_vm1, %v1635_v13  ;;  %1683 = vst.msk [vmem:[#allocation4 + $0xa0] sm:$0xff] %vm759_vm1, %v1651_v14  ;;  %v3933_v18 = vpop.f32.mrb[16].mxu0  ;;  %v3965_v19 = vpop.f32.mrb[16].mxu1 }
 0x16b   : > { %v1424_v24 = vpop.f32.mrb[17].mxu0  ;;  %v1552_v25 = vpop.f32.mrb[17].mxu1  ;;  %v1433_v36 = vadd.f32 %v3933_v18, %v5043_v30  ;;  %v1561_v37 = vadd.f32 %v3965_v19, %v5043_v30 }
 0x16c   : > { %v3934_v31 = vpop.f32.mrb[18].mxu0  ;;  %v3966_v35 = vpop.f32.mrb[18].mxu1  ;;  %v1425_v53 = vadd.f32 %v5043_v30, %v1424_v24  ;;  %v1553_v54 = vadd.f32 %v5043_v30, %v1552_v25 }
 0x16d   : > { %v1436_v38 = vadd.f32 %v3934_v31, %v5043_v30  ;;  %v1564_v42 = vadd.f32 %v3966_v35, %v5043_v30  ;;  %v1427_v43 = vpop.f32.mrb[19].mxu0  ;;  %v1555_v52 = vpop.f32.mrb[19].mxu1 }
 0x16e   : > { %v1428_v58 = vadd.f32 %v5043_v30, %v1427_v43  ;;  %v1556_v63 = vadd.f32 %v5043_v30, %v1555_v52 }
 0x16f   : > { %v1638_v0 = vpack.c.bf16 %v1436_v38, %v1433_v36  ;;  %v1654_v15 = vpack.c.bf16 %v1564_v42, %v1561_v37 }
 0x170   : > { %v1637_v16 = vpack.c.bf16 %v1428_v58, %v1425_v53  ;;  %v1653_v22 = vpack.c.bf16 %v1556_v63, %v1553_v54 }
 0x171   : > { %1670 = vst.msk [vmem:[#allocation4 + $0x38] sm:$0xff] %vm759_vm1, %v1638_v0  ;;  %1686 = vst.msk [vmem:[#allocation4 + $0xb8] sm:$0xff] %vm759_vm1, %v1654_v15 }
 0x172   : > { %1669 = vst.msk [vmem:[#allocation4 + $0x30] sm:$0xff] %vm759_vm1, %v1637_v16  ;;  %1685 = vst.msk [vmem:[#allocation4 + $0xb0] sm:$0xff] %vm759_vm1, %v1653_v22  ;;  %v3937_v32 = vpop.f32.mrb[20].mxu0  ;;  %v3969_v59 = vpop.f32.mrb[20].mxu1 }
 0x173   : > { %v1440_v50 = vpop.f32.mrb[21].mxu0  ;;  %v1568_v44 = vpop.f32.mrb[21].mxu1  ;;  %v1449_v48 = vadd.f32 %v3937_v32, %v5043_v30  ;;  %v1577_v5 = vadd.f32 %v3969_v59, %v5043_v30 }
 0x174   : > { %v3938_v28 = vpop.f32.mrb[22].mxu0  ;;  %v3970_v29 = vpop.f32.mrb[22].mxu1  ;;  %v1441_v45 = vadd.f32 %v5043_v30, %v1440_v50  ;;  %v1569_v26 = vadd.f32 %v5043_v30, %v1568_v44 }
 0x175   : > { %v1452_v4 = vadd.f32 %v3938_v28, %v5043_v30  ;;  %v1580_v23 = vadd.f32 %v3970_v29, %v5043_v30  ;;  %v1443_v40 = vpop.f32.mrb[23].mxu0  ;;  %v1571_v2 = vpop.f32.mrb[23].mxu1 }
 0x176   : > { %v1444_v61 = vadd.f32 %v5043_v30, %v1443_v40  ;;  %v1572_v46 = vadd.f32 %v5043_v30, %v1571_v2 }
 0x177   : > { %v1640_v33 = vpack.c.bf16 %v1452_v4, %v1449_v48  ;;  %v1656_v62 = vpack.c.bf16 %v1580_v23, %v1577_v5 }
 0x178   : > { %v1639_v34 = vpack.c.bf16 %v1444_v61, %v1441_v45  ;;  %v1655_v17 = vpack.c.bf16 %v1572_v46, %v1569_v26 }
 0x179   : > { %1672 = vst.msk [vmem:[#allocation4 + $0x48] sm:$0xff] %vm759_vm1, %v1640_v33  ;;  %1688 = vst.msk [vmem:[#allocation4 + $0xc8] sm:$0xff] %vm759_vm1, %v1656_v62 }
 0x17a   : > { %1671 = vst.msk [vmem:[#allocation4 + $0x40] sm:$0xff] %vm759_vm1, %v1639_v34  ;;  %1687 = vst.msk [vmem:[#allocation4 + $0xc0] sm:$0xff] %vm759_vm1, %v1655_v17  ;;  %v3941_v56 = vpop.f32.mrb[24].mxu0  ;;  %v3973_v21 = vpop.f32.mrb[24].mxu1 }
 0x17b   : > { %v1456_v41 = vpop.f32.mrb[25].mxu0  ;;  %v1584_v27 = vpop.f32.mrb[25].mxu1  ;;  %v1465_v57 = vadd.f32 %v3941_v56, %v5043_v30  ;;  %v1593_v1 = vadd.f32 %v3973_v21, %v5043_v30 }
 0x17c   : > { %v3942_v39 = vpop.f32.mrb[26].mxu0  ;;  %v3974_v47 = vpop.f32.mrb[26].mxu1  ;;  %v1457_v51 = vadd.f32 %v5043_v30, %v1456_v41  ;;  %v1585_v60 = vadd.f32 %v5043_v30, %v1584_v27 }
 0x17d   : > { %v1468_v3 = vadd.f32 %v3942_v39, %v5043_v30  ;;  %v1596_v20 = vadd.f32 %v3974_v47, %v5043_v30  ;;  %v1459_v55 = vpop.f32.mrb[27].mxu0  ;;  %v1587_v49 = vpop.f32.mrb[27].mxu1 }
 0x17e   : > { %v1460_v6 = vadd.f32 %v5043_v30, %v1459_v55  ;;  %v1588_v7 = vadd.f32 %v5043_v30, %v1587_v49 }
 0x17f   : > { %v1642_v8 = vpack.c.bf16 %v1468_v3, %v1465_v57  ;;  %v1658_v9 = vpack.c.bf16 %v1596_v20, %v1593_v1 }
 0x180   : > { %v1641_v10 = vpack.c.bf16 %v1460_v6, %v1457_v51  ;;  %v1657_v11 = vpack.c.bf16 %v1588_v7, %v1585_v60 }
 0x181   : > { %1674 = vst.msk [vmem:[#allocation4 + $0x58] sm:$0xff] %vm759_vm1, %v1642_v8  ;;  %1690 = vst.msk [vmem:[#allocation4 + $0xd8] sm:$0xff] %vm759_vm1, %v1658_v9 }
 0x182   : > { %1673 = vst.msk [vmem:[#allocation4 + $0x50] sm:$0xff] %vm759_vm1, %v1641_v10  ;;  %1689 = vst.msk [vmem:[#allocation4 + $0xd0] sm:$0xff] %vm759_vm1, %v1657_v11  ;;  %v3945_v12 = vpop.f32.mrb[28].mxu0  ;;  %v3977_v13 = vpop.f32.mrb[28].mxu1 }
 0x183   : > { %v1472_v14 = vpop.f32.mrb[29].mxu0  ;;  %v1600_v18 = vpop.f32.mrb[29].mxu1  ;;  %v1481_v25 = vadd.f32 %v3945_v12, %v5043_v30  ;;  %v1609_v31 = vadd.f32 %v3977_v13, %v5043_v30 }
 0x184   : > { %v3946_v19 = vpop.f32.mrb[30].mxu0  ;;  %v3978_v24 = vpop.f32.mrb[30].mxu1  ;;  %v1473_v42 = vadd.f32 %v5043_v30, %v1472_v14  ;;  %v1601_v43 = vadd.f32 %v5043_v30, %v1600_v18 }
 0x185   : > { %v1484_v35 = vadd.f32 %v3946_v19, %v5043_v30  ;;  %v1612_v36 = vadd.f32 %v3978_v24, %v5043_v30  ;;  %v1475_v37 = vpop.f32.mrb[31].mxu0  ;;  %v1603_v38 = vpop.f32.mrb[31].mxu1 }
 0x186   : > { %v1476_v52 = vadd.f32 %v5043_v30, %v1475_v37  ;;  %v1604_v53 = vadd.f32 %v5043_v30, %v1603_v38 }
 0x187   : > { %v1644_v54 = vpack.c.bf16 %v1484_v35, %v1481_v25  ;;  %v1660_v58 = vpack.c.bf16 %v1612_v36, %v1609_v31 }
 0x188   : > { %v1643_v63 = vpack.c.bf16 %v1476_v52, %v1473_v42  ;;  %v1659_v0 = vpack.c.bf16 %v1604_v53, %v1601_v43 }
 0x189   : > { %1676 = vst.msk [vmem:[#allocation4 + $0x68] sm:$0xff] %vm759_vm1, %v1644_v54  ;;  %1692 = vst.msk [vmem:[#allocation4 + $0xe8] sm:$0xff] %vm759_vm1, %v1660_v58 }
 0x18a   : > { %1675 = vst.msk [vmem:[#allocation4 + $0x60] sm:$0xff] %vm759_vm1, %v1643_v63  ;;  %1691 = vst.msk [vmem:[#allocation4 + $0xe0] sm:$0xff] %vm759_vm1, %v1659_v0  ;;  %v3949_v15 = vpop.f32.mrb[32].mxu0  ;;  %v3981_v16 = vpop.f32.mrb[32].mxu1 }
 0x18b   : > { %v1488_v22 = vpop.f32.mrb[33].mxu0  ;;  %v1616_v32 = vpop.f32.mrb[33].mxu1  ;;  %v1497_v44 = vadd.f32 %v3949_v15, %v5043_v30  ;;  %v1625_v28 = vadd.f32 %v3981_v16, %v5043_v30 }
 0x18c   : > { %v3950_v59 = vpop.f32.mrb[34].mxu0  ;;  %v3982_v50 = vpop.f32.mrb[34].mxu1  ;;  %v1489_v23 = vadd.f32 %v5043_v30, %v1488_v22  ;;  %v1617_v40 = vadd.f32 %v5043_v30, %v1616_v32 }
 0x18d   : > { %v1500_v29 = vadd.f32 %v3950_v59, %v5043_v30  ;;  %v1628_v48 = vadd.f32 %v3982_v50, %v5043_v30  ;;  %v1491_v5 = vpop.f32.mrb[35].mxu0  ;;  %v1619_v4 = vpop.f32.mrb[35].mxu1 }
 0x18e   : > { %v1492_v2 = vadd.f32 %v5043_v30, %v1491_v5  ;;  %v1620_v45 = vadd.f32 %v5043_v30, %v1619_v4 }
 0x18f   : > { %v1646_v26 = vpack.c.bf16 %v1500_v29, %v1497_v44  ;;  %v1662_v61 = vpack.c.bf16 %v1628_v48, %v1625_v28 }
 0x190   : > { %v1645_v46 = vpack.c.bf16 %v1492_v2, %v1489_v23  ;;  %v1661_v33 = vpack.c.bf16 %v1620_v45, %v1617_v40 }
 0x191   : > { %1678 = vst.msk [vmem:[#allocation4 + $0x78] sm:$0xff] %vm759_vm1, %v1646_v26  ;;  %1694 = vst.msk [vmem:[#allocation4 + $0xf8] sm:$0xff] %vm759_vm1, %v1662_v61 }
 0x192   : > { %1677 = vst.msk [vmem:[#allocation4 + $0x70] sm:$0xff] %vm759_vm1, %v1645_v46  ;;  %1693 = vst.msk [vmem:[#allocation4 + $0xf0] sm:$0xff] %vm759_vm1, %v1661_v33 }
 0x193 PF: > { %v4237_v62 = vld [vmem:[%s5978_s5] sm:$0xff]   ;;  %v4407_v34 = vmov 0.0   ;;  %v4238_v30 = vld [vmem:[%s5978_s5 + $0x8] sm:$0xff]   ;;  %vm6002_vm6 = vmmov 0   ;;  %vm6001_vm7 = vcmask 261120   ;;  %v4409_v21 = vmov 0  }
 0x194   : > { %3983 = vmatprep.subr.bf16.mxu1 %v4407_v34  ;;  %4011 = vmatprep.subr.bf16.mxu0 %v4407_v34  ;;  %v1695_v17 = vld [vmem:[#allocation2] sm:$0xf]  ;;  %v3760_v56 = vld [vmem:[#allocation5] ss:$0 sm:$0xff]  ;;  %v4410_v27 = vmov 1966171168   ;;  %v1865_v47 = vlaneseq }
 0x195   : > { %3984 = vmatpush3.bf16.msra.mxu1 %v4237_v62  ;;  %3987 = vmatprep.mubr.msk.bf16.mxu1 %vm6002_vm6, %v4407_v34  ;;  %v5155_v41 = vpack.c.bf16 %v1695_v17, %v1695_v17  ;;  %v1863_v39 = vunpack.c.l.s4 %v4410_v27  ;;  %v3755_v3 = vld [vmem:[%s5979_s6] ss:$0 sm:$0xff]  ;;  %v1767_v6 = vld [vmem:[#allocation4 + $0x10] sm:$0xff]  ;;  %v1765_v10 = vld [vmem:[#allocation4] sm:$0xff]  ;;  %vm2447_vm8 = vcmask 130112   ;;  %vm2454_vm9 = vcmask 195712  }
 0x196   : > { %3985 = vmatprep.subr.bf16.mxu1 %v4407_v34  ;;  %4235 = vset.pattern.permute.xlu1 %v4409_v21  ;;  %v5164_v1 = vshrl.u32 %v1865_v47, 7  ;;  %v1768_v11 = vld [vmem:[#allocation4 + $0x18] sm:$0xff]  ;;  %v1801_v13 = vunpack.c.l.bf16 %v1767_v6  ;;  %v1766_v14 = vld [vmem:[#allocation4 + $0x8] sm:$0xff]  ;;  %v1797_v18 = vunpack.c.l.bf16 %v1765_v10  ;;  %v1802_v19 = vunpack.c.h.bf16 %v1767_v6  ;;  %v1769_v63 = vld [vmem:[#allocation4 + $0x20] sm:$0xff]  ;;  %s6046_s30 = sld [smem:[#allocation20_spill]]  ;;  %s4411_s8 = smov 32  }
 0x197   : > { %2304 = vperm.xlu1 %4235, %v3760_v56   ;;  %4027 = vmatprep.mubr.msk.bf16.mxu0 %vm6002_vm6, %v4407_v34  ;;  %v1864_v57 = vunpack.c.0.s8 %v1863_v39  ;;  %v1798_v24 = vunpack.c.h.bf16 %v1765_v10  ;;  %v1803_v31 = vunpack.c.l.bf16 %v1768_v11  ;;  %v1799_v35 = vunpack.c.l.bf16 %v1766_v14  ;;  %v5190_v37 = vld [vmem:[%s5980_s7] ss:$0 sm:$0xff]  ;;  %v1770_v4 = vld [vmem:[#allocation4 + $0x28] sm:$0xff]  ;;  %v1771_v17 = vld [vmem:[#allocation4 + $0x30] sm:$0xff]  ;;  %s4412_s0 = smov 64   ;;  %s3535_s21 = sshll.u32 %s4579_s23, 4  ;;  %s5892_s21 = int_to_ptr.vmem [resolvable:$true] %s3535_s21 }
 0x198   : > { %4236 = vset.pattern.permute.xlu0 %v4409_v21  ;;  %v5176_v8 = vsub.s32 0, %v5164_v1  ;;  %v1804_v54 = vunpack.c.h.bf16 %v1768_v11  ;;  %v1800_v58 = vunpack.c.h.bf16 %v1766_v14  ;;  %v1805_v50 = vunpack.c.l.bf16 %v1769_v63  ;;  %v5218_v11 = vld [vmem:[#allocation4 + $0x38] sm:$0xff]  ;;  %s3507_s25 = scalar_lea.sflag [#allocation9], %s4566_s24 }
 0x199   : > { %3986 = vmatpush3.bf16.msra.mxu1 %v4238_v30  ;;  %v5170_v20 = vsub.s32 %v1864_v57, %v5164_v1  ;;  %v1806_v44 = vunpack.c.h.bf16 %v1769_v63  ;;  %v1807_v26 = vunpack.c.l.bf16 %v1770_v4  ;;  %v1808_v61 = vunpack.c.h.bf16 %v1770_v4 }
 0x19a   : > { %3991 = vmatprep.subr.bf16.mxu1 %v4407_v34  ;;  %vm2461_vm10 = vcmask 261312   ;;  %vm2468_vm11 = vcmask 326912   ;;  %vm2475_vm12 = vcmask 392512   ;;  %vm2482_vm13 = vcmask 458112  }
 0x19b   : > { %vm2489_vm14 = vcmask 523712   ;;  %vm2496_vm15 = vcmask 589312   ;;  %vm2503_vm0 = vcmask 654912   ;;  %vm2510_vm1 = vcmask 720512  }
 0x19c   : > { %3988 = vmatmul.mubr.msk.bf16.vlgmr.msra.gmra.mrb[0].mxu1 %vm6001_vm7, %v5155_v41  ;;  %vm2517_vm2 = vcmask 786112   ;;  %vm6004_vm3 = vcmask 851712   ;;  %vm2531_vm4 = vcmask 917312   ;;  %vm2538_vm5 = vcmask 982912  }
 0x19d   : > { %4007 = vmatprep.mubr.msk.bf16.mxu1 %vm6002_vm6, %v4407_v34  ;;  %vm2784_vm6 = vcmask 1041409  }
 0x26f   : > { %v1759_v55 = vpop.f32.mrb[0].mxu1 }
 0x270   : > { %v1760_v49 = vadd.f32 %v3755_v3, %v1759_v55  ;;  %v3989_v51 = vpop.f32.mrb[1].mxu1 }
 0x271   : > { %v1762_v60 = vpop.f32.mrb[2].mxu1  ;;  %v1809_v51 = vunpack.c.l.bf16 %v1771_v17 }
 0x272   : > { %v5173_v7 = vrot.slane %v1760_v49, %v5170_v20  ;;  %v3990_v9 = vpop.f32.mrb[3].mxu1  ;;  %v1810_v49 = vunpack.c.h.bf16 %v1771_v17 }
 0x274   : > { %v5180_v12 = vrot.slane %v5173_v7, %v5170_v20  ;;  %v1869_v3 = vcombine.high %v5173_v7, %v5173_v7 }
 0x276   : > { %v5184_v25 = vrot.slane %v5180_v12, %v5176_v8  ;;  %v1884_v55 = vcombine.high %v5180_v12, %v5180_v12 }
 0x278   : > { %v1910_v36 = vadd.f32 %v5184_v25, %v1801_v13  ;;  %v1906_v38 = vadd.f32 %v5184_v25, %v1797_v18  ;;  %v1911_v42 = vadd.f32 %v5184_v25, %v1802_v19  ;;  %v1907_v43 = vadd.f32 %v5184_v25, %v1798_v24  ;;  %v5220_v13 = vld [vmem:[#allocation4 + $0x80] sm:$0xff] }
 0x279   : > { %v1912_v53 = vadd.f32 %v5184_v25, %v1803_v31  ;;  %v1908_v22 = vadd.f32 %v5184_v25, %v1799_v35  ;;  %v1913_v5 = vadd.f32 %v5184_v25, %v1804_v54  ;;  %v1909_v45 = vadd.f32 %v5184_v25, %v1800_v58 }
 0x27a   : > { %v1974_v52 = vmax.f32 %v1910_v36, 0.0  ;;  %v1970_v0 = vmax.f32 %v1906_v38, 0.0  ;;  %v1975_v15 = vmax.f32 %v1911_v42, 0.0  ;;  %v1971_v16 = vmax.f32 %v1907_v43, 0.0 }
 0x27b   : > { %v1976_v48 = vmax.f32 %v1912_v53, 0.0  ;;  %v1972_v2 = vmax.f32 %v1908_v22, 0.0  ;;  %v1977_v62 = vmax.f32 %v1913_v5, 0.0  ;;  %v1914_v30 = vadd.f32 %v5184_v25, %v1805_v50  ;;  %v1773_v53 = vld [vmem:[#allocation4 + $0x40] sm:$0xff] }
 0x27c   : > { %v2045_v32 = vmul.f32 %v5190_v37, %v1974_v52  ;;  %v2041_v59 = vmul.f32 %v5190_v37, %v1970_v0  ;;  %v2046_v29 = vmul.f32 %v5190_v37, %v1975_v15  ;;  %v2042_v40 = vmul.f32 %v5190_v37, %v1971_v16  ;;  %v5236_v52 = vld [vmem:[#allocation4 + $0x88] sm:$0xff] }
 0x27d   : > { %v2047_v33 = vmul.f32 %v5190_v37, %v1976_v48  ;;  %v2043_v27 = vmul.f32 %v5190_v37, %v1972_v2  ;;  %v1973_v39 = vmax.f32 %v1909_v45, 0.0  ;;  %v1915_v57 = vadd.f32 %v5184_v25, %v1806_v44 }
 0x27e   : > { %v2117_v28 = vsel %vm6001_vm7, %v2045_v32, 0.0  ;;  %v2105_v23 = vsel %vm6001_vm7, %v2041_v59, 0.0  ;;  %v2120_v46 = vsel %vm6001_vm7, %v2046_v29, 0.0  ;;  %v2108_v56 = vsel %vm6001_vm7, %v2042_v40, 0.0 }
 0x27f   : > { %2118 = vadd.xlane.f32.xlu1 %v2117_v28  ;;  %2106 = vadd.xlane.f32.xlu0 %v2105_v23  ;;  %v2123_v60 = vsel %vm6001_vm7, %v2047_v33, 0.0  ;;  %v2048_v6 = vmul.f32 %v5190_v37, %v1977_v62  ;;  %v1978_v9 = vmax.f32 %v1914_v30, 0.0  ;;  %v1916_v10 = vadd.f32 %v5184_v25, %v1807_v26  ;;  %v1775_v28 = vld [vmem:[#allocation4 + $0x50] sm:$0xff] }
 0x280   : > { %v2111_v14 = vsel %vm6001_vm7, %v2043_v27, 0.0  ;;  %v2044_v7 = vmul.f32 %v5190_v37, %v1973_v39  ;;  %v1979_v18 = vmax.f32 %v1915_v57, 0.0  ;;  %v1917_v12 = vadd.f32 %v5184_v25, %v1808_v61 }
 0x281   : > { %v5226_v19 = vrot.slane %v1869_v3, %v5170_v20  ;;  %v5229_v24 = vrot.slane %v1884_v55, %v5176_v8  ;;  %v1811_v31 = vunpack.c.l.bf16 %v5218_v11  ;;  %v1829_v35 = vunpack.c.l.bf16 %v5220_v13 }
 0x282   : > { %v2126_v36 = vsel %vm6001_vm7, %v2048_v6, 0.0  ;;  %v2049_v38 = vmul.f32 %v5190_v37, %v1978_v9  ;;  %v1980_v42 = vmax.f32 %v1916_v10, 0.0  ;;  %v1919_v43 = vadd.f32 %v5184_v25, %v1810_v49  ;;  %v1776_v49 = vld [vmem:[#allocation4 + $0x58] sm:$0xff] }
 0x283   : > { %2121 = vadd.xlane.f32.xlu1 %v2120_v46  ;;  %2109 = vadd.xlane.f32.xlu0 %v2108_v56  ;;  %v2114_v54 = vsel %vm6001_vm7, %v2044_v7, 0.0  ;;  %v2050_v58 = vmul.f32 %v5190_v37, %v1979_v18  ;;  %v1981_v63 = vmax.f32 %v1917_v12, 0.0  ;;  %v1918_v0 = vadd.f32 %v5184_v25, %v1809_v51  ;;  %v1774_v46 = vld [vmem:[#allocation4 + $0x48] sm:$0xff] }
 0x284   : > { %v5243_v15 = vrot.slane %v5226_v19, %v5176_v8  ;;  %v1831_v16 = vunpack.c.l.bf16 %v5236_v52  ;;  %v1813_v22 = vunpack.c.l.bf16 %v1773_v53  ;;  %v2129_v32 = vsel %vm6001_vm7, %v2049_v38, 0.0 }
 0x285   : > { %v2051_v59 = vmul.f32 %v5190_v37, %v1980_v42  ;;  %v1983_v50 = vmax.f32 %v1919_v43, 0.0  ;;  %v1920_v44 = vadd.f32 %v5184_v25, %v1811_v31  ;;  %v2132_v29 = vsel %vm6001_vm7, %v2050_v58, 0.0 }
 0x286   : > { %v2052_v48 = vmul.f32 %v5190_v37, %v1981_v63  ;;  %v1982_v5 = vmax.f32 %v1918_v0, 0.0  ;;  %v1938_v4 = vadd.f32 %v5229_v24, %v1829_v35  ;;  %v1817_v23 = vunpack.c.l.bf16 %v1775_v28  ;;  %v1777_v0 = vld [vmem:[#allocation4 + $0x60] sm:$0xff] }
 0x287   : > { %2124 = vadd.xlane.f32.xlu1 %v2123_v60  ;;  %2112 = vadd.xlane.f32.xlu0 %v2111_v14  ;;  %v1814_v40 = vunpack.c.h.bf16 %v1773_v53  ;;  %v2135_v2 = vsel %vm6001_vm7, %v2051_v59, 0.0  ;;  %v2054_v45 = vmul.f32 %v5190_v37, %v1983_v50  ;;  %v1984_v26 = vmax.f32 %v1920_v44, 0.0 }
 0x288   : > { %v1922_v61 = vadd.f32 %v5243_v15, %v1813_v22  ;;  %v2138_v33 = vsel %vm6001_vm7, %v2052_v48, 0.0  ;;  %v2053_v62 = vmul.f32 %v5190_v37, %v1982_v5  ;;  %v2002_v30 = vmax.f32 %v1938_v4, 0.0  ;;  %v1783_v4 = vld [vmem:[#allocation4 + $0x90] sm:$0xff] }
 0x289   : > { %v1940_v17 = vadd.f32 %v5229_v24, %v1831_v16  ;;  %v1818_v56 = vunpack.c.h.bf16 %v1775_v28  ;;  %v1815_v27 = vunpack.c.l.bf16 %v1774_v46  ;;  %v2144_v39 = vsel %vm6001_vm7, %v2054_v45, 0.0 }
 0x28a   : > { %v2055_v57 = vmul.f32 %v5190_v37, %v1984_v26  ;;  %v1986_v3 = vmax.f32 %v1922_v61, 0.0  ;;  %v1923_v55 = vadd.f32 %v5243_v15, %v1814_v40  ;;  %v2141_v51 = vsel %vm6001_vm7, %v2053_v62, 0.0 }
 0x28b   : > { %2127 = vadd.xlane.f32.xlu1 %v2126_v36  ;;  %2115 = vadd.xlane.f32.xlu0 %v2114_v54  ;;  %v2073_v60 = vmul.f32 %v5190_v37, %v2002_v30  ;;  %v2004_v6 = vmax.f32 %v1940_v17, 0.0  ;;  %v1926_v9 = vadd.f32 %v5243_v15, %v1817_v23  ;;  %v1819_v10 = vunpack.c.l.bf16 %v1776_v49  ;;  %v1785_v30 = vld [vmem:[#allocation4 + $0xa0] sm:$0xff] }
 0x28c   : > { %v1830_v14 = vunpack.c.h.bf16 %v5220_v13  ;;  %v2147_v7 = vsel %vm6001_vm7, %v2055_v57, 0.0  ;;  %v2057_v18 = vmul.f32 %v5190_v37, %v1986_v3  ;;  %v1987_v12 = vmax.f32 %v1923_v55, 0.0 }
 0x28d   : > { %v1924_v31 = vadd.f32 %v5243_v15, %v1815_v27  ;;  %v2201_v35 = vsel %vm6001_vm7, %v2073_v60, 0.0  ;;  %v2075_v36 = vmul.f32 %v5190_v37, %v2004_v6  ;;  %v1990_v38 = vmax.f32 %v1926_v9, 0.0  ;;  %v1778_v6 = vld [vmem:[#allocation4 + $0x68] sm:$0xff]  ;;  %v1784_v9 = vld [vmem:[#allocation4 + $0x98] sm:$0xff] }
 0x28e   : > { %v1927_v42 = vadd.f32 %v5243_v15, %v1818_v56  ;;  %v1820_v43 = vunpack.c.h.bf16 %v1776_v49  ;;  %v1816_v53 = vunpack.c.h.bf16 %v1774_v46  ;;  %v2153_v13 = vsel %vm6001_vm7, %v2057_v18, 0.0 }
 0x28f   : > { %2130 = vadd.xlane.f32.xlu1 %v2129_v32  ;;  %2133 = vadd.xlane.f32.xlu0 %v2132_v29  ;;  %v2058_v54 = vmul.f32 %v5190_v37, %v1987_v12  ;;  %v1988_v58 = vmax.f32 %v1924_v31, 0.0  ;;  %v1939_v63 = vadd.f32 %v5229_v24, %v1830_v14  ;;  %v2207_v16 = vsel %vm6001_vm7, %v2075_v36, 0.0 }
 0x290   : > { %v2061_v22 = vmul.f32 %v5190_v37, %v1990_v38  ;;  %v1991_v32 = vmax.f32 %v1927_v42, 0.0  ;;  %v1928_v59 = vadd.f32 %v5243_v15, %v1819_v10  ;;  %v1821_v50 = vunpack.c.l.bf16 %v1777_v0 }
 0x291   : > { %v1832_v44 = vunpack.c.h.bf16 %v5236_v52  ;;  %v2156_v28 = vsel %vm6001_vm7, %v2058_v54, 0.0  ;;  %v2059_v29 = vmul.f32 %v5190_v37, %v1988_v58  ;;  %v2003_v48 = vmax.f32 %v1939_v63, 0.0 }
 0x292   : > { %v1925_v5 = vadd.f32 %v5243_v15, %v1816_v53  ;;  %v2165_v23 = vsel %vm6001_vm7, %v2061_v22, 0.0  ;;  %v2062_v40 = vmul.f32 %v5190_v37, %v1991_v32  ;;  %v1929_v45 = vadd.f32 %v5243_v15, %v1820_v43 }
 0x293   : > { %2136 = vadd.xlane.f32.xlu1 %v2135_v2  ;;  %2139 = vadd.xlane.f32.xlu0 %v2138_v33  ;;  %v1992_v2 = vmax.f32 %v1928_v59, 0.0  ;;  %v1822_v26 = vunpack.c.h.bf16 %v1777_v0  ;;  %v1833_v61 = vunpack.c.l.bf16 %v1783_v4  ;;  %v2159_v52 = vsel %vm6001_vm7, %v2059_v29, 0.0  ;;  %v1786_v59 = vld [vmem:[#allocation4 + $0xa8] sm:$0xff] }
 0x294   : > { %v2074_v46 = vmul.f32 %v5190_v37, %v2003_v48  ;;  %v1989_v33 = vmax.f32 %v1925_v5, 0.0  ;;  %v1941_v62 = vadd.f32 %v5229_v24, %v1832_v44  ;;  %v2168_v17 = vsel %vm6001_vm7, %v2062_v40, 0.0 }
 0x295   : > { %v2063_v56 = vmul.f32 %v5190_v37, %v1992_v2  ;;  %v1993_v27 = vmax.f32 %v1929_v45, 0.0  ;;  %v1837_v57 = vunpack.c.l.bf16 %v1785_v30  ;;  %v1834_v3 = vunpack.c.h.bf16 %v1783_v4  ;;  %v1787_v45 = vld [vmem:[#allocation4 + $0xb0] sm:$0xff] }
 0x296   : > { %v2204_v55 = vsel %vm6001_vm7, %v2074_v46, 0.0  ;;  %v2060_v49 = vmul.f32 %v5190_v37, %v1989_v33  ;;  %v1942_v60 = vadd.f32 %v5229_v24, %v1833_v61  ;;  %v1931_v18 = vadd.f32 %v5243_v15, %v1822_v26 }
 0x297   : > { %2145 = vadd.xlane.f32.xlu1 %v2144_v39  ;;  %2142 = vadd.xlane.f32.xlu0 %v2141_v51  ;;  %v1930_v39 = vadd.f32 %v5243_v15, %v1821_v50  ;;  %v2005_v51 = vmax.f32 %v1941_v62, 0.0  ;;  %v2171_v10 = vsel %vm6001_vm7, %v2063_v56, 0.0  ;;  %v2064_v14 = vmul.f32 %v5190_v37, %v1993_v27 }
 0x298   : > { %v1823_v12 = vunpack.c.l.bf16 %v1778_v6  ;;  %v1835_v31 = vunpack.c.l.bf16 %v1784_v9  ;;  %v2006_v38 = vmax.f32 %v1942_v60, 0.0  ;;  %v1943_v42 = vadd.f32 %v5229_v24, %v1834_v3 }
 0x299   : > { %v2076_v36 = vmul.f32 %v5190_v37, %v2005_v51  ;;  %v2174_v43 = vsel %vm6001_vm7, %v2064_v14, 0.0  ;;  %v1946_v54 = vadd.f32 %v5229_v24, %v1837_v57  ;;  %v1838_v58 = vunpack.c.h.bf16 %v1785_v30 }
 0x29a   : > { %v1836_v63 = vunpack.c.h.bf16 %v1784_v9  ;;  %v2007_v22 = vmax.f32 %v1943_v42, 0.0  ;;  %v1944_v32 = vadd.f32 %v5229_v24, %v1835_v31  ;;  %v1932_v29 = vadd.f32 %v5243_v15, %v1823_v12 }
 0x29b   : > { %2148 = vadd.xlane.f32.xlu1 %v2147_v7  ;;  %2202 = vadd.xlane.f32.xlu0 %v2201_v35  ;;  %v1994_v7 = vmax.f32 %v1930_v39, 0.0  ;;  %v2162_v35 = vsel %vm6001_vm7, %v2060_v49, 0.0  ;;  %v2210_v0 = vsel %vm6001_vm7, %v2076_v36, 0.0  ;;  %v1824_v48 = vunpack.c.h.bf16 %v1778_v6  ;;  %v1779_v39 = vld [vmem:[#allocation4 + $0x70] sm:$0xff] }
 0x29c   : > { %v1840_v5 = vunpack.c.h.bf16 %v1786_v59  ;;  %v2008_v40 = vmax.f32 %v1944_v32, 0.0  ;;  %v1945_v2 = vadd.f32 %v5229_v24, %v1836_v63  ;;  %v1947_v46 = vadd.f32 %v5229_v24, %v1838_v58  ;;  %v1780_v58 = vld [vmem:[#allocation4 + $0x78] sm:$0xff] }
 0x29d   : > { %v2065_v53 = vmul.f32 %v5190_v37, %v1994_v7  ;;  %v1839_v33 = vunpack.c.l.bf16 %v1786_v59  ;;  %v1841_v62 = vunpack.c.l.bf16 %v1787_v45  ;;  %v1933_v49 = vadd.f32 %v5243_v15, %v1824_v48  ;;  %v1788_v48 = vld [vmem:[#allocation4 + $0xb8] sm:$0xff] }
 0x29e   : > { %v2009_v56 = vmax.f32 %v1945_v2, 0.0  ;;  %v1949_v27 = vadd.f32 %v5229_v24, %v1840_v5  ;;  %v1885_v51 = vcombine.high %v5226_v19, %v5226_v19  ;;  %v1825_v60 = vunpack.c.l.bf16 %v1779_v39 }
 0x29f   : > { %2154 = vadd.xlane.f32.xlu1 %v2153_v13  ;;  %2208 = vadd.xlane.f32.xlu0 %v2207_v16  ;;  %v1995_v13 = vmax.f32 %v1931_v18, 0.0  ;;  %v2077_v16 = vmul.f32 %v5190_v37, %v2006_v38  ;;  %v2177_v50 = vsel %vm6001_vm7, %v2065_v53, 0.0  ;;  %v1842_v6 = vunpack.c.h.bf16 %v1787_v45  ;;  %v5325_v18 = vld [vmem:[#allocation4 + $0xc0] sm:$0xff] }
 0x2a0   : > { %v2013_v14 = vmax.f32 %v1949_v27, 0.0  ;;  %v1950_v7 = vadd.f32 %v5229_v24, %v1841_v62  ;;  %v1948_v36 = vadd.f32 %v5229_v24, %v1839_v33  ;;  %v5331_v19 = vrot.slane %v1885_v51, %v5176_v8 }
 0x2a1   : > { %v2066_v44 = vmul.f32 %v5190_v37, %v1995_v13  ;;  %v2213_v4 = vsel %vm6001_vm7, %v2077_v16, 0.0  ;;  %v1826_v38 = vunpack.c.h.bf16 %v1779_v39  ;;  %v1845_v42 = vunpack.c.l.bf16 %v5325_v18 }
 0x2a2   : > { %v2084_v53 = vmul.f32 %v5190_v37, %v2013_v14  ;;  %v2014_v13 = vmax.f32 %v1950_v7, 0.0  ;;  %v2012_v16 = vmax.f32 %v1948_v36, 0.0  ;;  %v1827_v32 = vunpack.c.l.bf16 %v1780_v58 }
 0x2a3   : > { %2157 = vadd.xlane.f32.xlu1 %v2156_v28  ;;  %2166 = vadd.xlane.f32.xlu0 %v2165_v23  ;;  %v2010_v28 = vmax.f32 %v1946_v54, 0.0  ;;  %v2078_v23 = vmul.f32 %v5190_v37, %v2007_v22  ;;  %v2180_v26 = vsel %vm6001_vm7, %v2066_v44, 0.0  ;;  %v1951_v54 = vadd.f32 %v5229_v24, %v1842_v6 }
 0x2a4   : > { %v1934_v22 = vadd.f32 %v5243_v15, %v1825_v60  ;;  %v1812_v59 = vunpack.c.h.bf16 %v5218_v11  ;;  %v2085_v44 = vmul.f32 %v5190_v37, %v2014_v13  ;;  %v1828_v2 = vunpack.c.h.bf16 %v1780_v58 }
 0x2a5   : > { %v2081_v61 = vmul.f32 %v5190_v37, %v2010_v28  ;;  %v2216_v30 = vsel %vm6001_vm7, %v2078_v23, 0.0  ;;  %v2015_v28 = vmax.f32 %v1951_v54, 0.0  ;;  %v1843_v45 = vunpack.c.l.bf16 %v1788_v48 }
 0x2a6   : > { %v1998_v23 = vmax.f32 %v1934_v22, 0.0  ;;  %v2237_v11 = vsel %vm6001_vm7, %v2085_v44, 0.0  ;;  %v1937_v6 = vadd.f32 %v5243_v15, %v1828_v2 }
 0x2a7   : > { %2160 = vadd.xlane.f32.xlu1 %v2159_v52  ;;  %2169 = vadd.xlane.f32.xlu0 %v2168_v17  ;;  %v1996_v52 = vmax.f32 %v1932_v29, 0.0  ;;  %v2079_v17 = vmul.f32 %v5190_v37, %v2008_v40  ;;  %v2225_v57 = vsel %vm6001_vm7, %v2081_v61, 0.0  ;;  %v1954_v29 = vadd.f32 %v5331_v19, %v1845_v42 }
 0x2a8   : > { %v1935_v40 = vadd.f32 %v5243_v15, %v1826_v38  ;;  %v2069_v33 = vmul.f32 %v5190_v37, %v1998_v23  ;;  %v2001_v36 = vmax.f32 %v1937_v6, 0.0 }
 0x2a9   : > { %v2067_v3 = vmul.f32 %v5190_v37, %v1996_v52  ;;  %v2219_v9 = vsel %vm6001_vm7, %v2079_v17, 0.0  ;;  %v2018_v61 = vmax.f32 %v1954_v29, 0.0  ;;  %v1921_v52 = vadd.f32 %v5184_v25, %v1812_v59  ;;  %v1790_v25 = vld [vmem:[#allocation4 + $0xc8] sm:$0xff] }
 0x2aa   : > { %v1999_v62 = vmax.f32 %v1935_v40, 0.0  ;;  %v1846_v17 = vunpack.c.h.bf16 %v5325_v18 }
 0x2ab   : > { %2205 = vadd.xlane.f32.xlu1 %v2204_v55  ;;  %2172 = vadd.xlane.f32.xlu0 %v2171_v10  ;;  %v2011_v55 = vmax.f32 %v1947_v46, 0.0  ;;  %v2080_v10 = vmul.f32 %v5190_v37, %v2009_v56  ;;  %v2183_v12 = vsel %vm6001_vm7, %v2067_v3, 0.0  ;;  %v1844_v56 = vunpack.c.h.bf16 %v1788_v48 }
 0x2ac   : > { %v2089_v39 = vmul.f32 %v5190_v37, %v2018_v61  ;;  %v1952_v3 = vadd.f32 %v5229_v24, %v1843_v45  ;;  %v2070_v51 = vmul.f32 %v5190_v37, %v1999_v62  ;;  %v1955_v38 = vadd.f32 %v5331_v19, %v1846_v17 }
 0x2ad   : > { %v2082_v31 = vmul.f32 %v5190_v37, %v2011_v55  ;;  %v5357_v55 = vld [vmem:[#allocation4 + $0xf8] sm:$0xff] }
 0x2ae   : > { %v2249_v14 = vsel %vm6001_vm7, %v2089_v39, 0.0  ;;  %v2016_v18 = vmax.f32 %v1952_v3, 0.0  ;;  %v2019_v58 = vmax.f32 %v1955_v38, 0.0 }
 0x2af   : > { %2163 = vadd.xlane.f32.xlu1 %v2162_v35  ;;  %2175 = vadd.xlane.f32.xlu0 %v2174_v43  ;;  %v1997_v35 = vmax.f32 %v1933_v49, 0.0  ;;  %v2222_v43 = vsel %vm6001_vm7, %v2080_v10, 0.0  ;;  %v2228_v63 = vsel %vm6001_vm7, %v2082_v31, 0.0  ;;  %v2189_v49 = vsel %vm6001_vm7, %v2069_v33, 0.0 }
 0x2b0   : > { %v1860_v10 = vunpack.c.h.bf16 %v5357_v55  ;;  %v2192_v31 = vsel %vm6001_vm7, %v2070_v51, 0.0  ;;  %v2090_v44 = vmul.f32 %v5190_v37, %v2019_v58 }
 0x2b2   : > { %v1969_v13 = vadd.f32 %v5331_v19, %v1860_v10  ;;  %v2252_v23 = vsel %vm6001_vm7, %v2090_v44, 0.0 }
 0x2b3   : > { %2211 = vadd.xlane.f32.xlu1 %v2210_v0  ;;  %2178 = vadd.xlane.f32.xlu0 %v2177_v50  ;;  %v2068_v0 = vmul.f32 %v5190_v37, %v1997_v35  ;;  %v2234_v50 = vsel %vm6001_vm7, %v2084_v53, 0.0 }
 0x2b5   : > { %v2186_v5 = vsel %vm6001_vm7, %v2068_v0, 0.0  ;;  %v1791_v0 = vld [vmem:[#allocation4 + $0xd0] sm:$0xff] }
 0x2b6   : > { %v1849_v59 = vunpack.c.l.bf16 %v1791_v0 }
 0x2b7   : > { %2214 = vadd.xlane.f32.xlu1 %v2213_v4  ;;  %2181 = vadd.xlane.f32.xlu0 %v2180_v26  ;;  %v2083_v4 = vmul.f32 %v5190_v37, %v2012_v16  ;;  %v2086_v26 = vmul.f32 %v5190_v37, %v2015_v28 }
 0x2b8   : > { %v1958_v45 = vadd.f32 %v5331_v19, %v1849_v59 }
 0x2b9   : > { %v2231_v46 = vsel %vm6001_vm7, %v2083_v4, 0.0  ;;  %v2240_v27 = vsel %vm6001_vm7, %v2086_v26, 0.0  ;;  %v1850_v4 = vunpack.c.h.bf16 %v1791_v0 }
 0x2ba   : > { %v2022_v33 = vmax.f32 %v1958_v45, 0.0 }
 0x2bb   : > { %2217 = vadd.xlane.f32.xlu1 %v2216_v30  ;;  %2226 = vadd.xlane.f32.xlu0 %v2225_v57  ;;  %v1936_v30 = vadd.f32 %v5243_v15, %v1827_v32  ;;  %v1985_v57 = vmax.f32 %v1921_v52, 0.0  ;;  %v1848_v15 = vunpack.c.h.bf16 %v1790_v25  ;;  %v2033_v32 = vmax.f32 %v1969_v13, 0.0 }
 0x2bc   : > { %v1959_v62 = vadd.f32 %v5331_v19, %v1850_v4 }
 0x2bd   : > { %v2000_v60 = vmax.f32 %v1936_v30, 0.0  ;;  %v2056_v7 = vmul.f32 %v5190_v37, %v1985_v57  ;;  %v1957_v29 = vadd.f32 %v5331_v19, %v1848_v15  ;;  %v1793_v57 = vld [vmem:[#allocation4 + $0xe0] sm:$0xff] }
 0x2be   : > { %v1853_v3 = vunpack.c.l.bf16 %v1793_v57  ;;  %v1854_v6 = vunpack.c.h.bf16 %v1793_v57 }
 0x2bf   : > { %2220 = vadd.xlane.f32.xlu1 %v2219_v9  ;;  %2184 = vadd.xlane.f32.xlu0 %v2183_v12  ;;  %v1847_v9 = vunpack.c.l.bf16 %v1790_v25  ;;  %v1953_v12 = vadd.f32 %v5229_v24, %v1844_v56  ;;  %v2071_v35 = vmul.f32 %v5190_v37, %v2000_v60  ;;  %v2150_v42 = vsel %vm6001_vm7, %v2056_v7, 0.0 }
 0x2c0   : > { %v2072_v24 = vmul.f32 %v5190_v37, %v2001_v36  ;;  %v2021_v2 = vmax.f32 %v1957_v29, 0.0  ;;  %v2093_v56 = vmul.f32 %v5190_v37, %v2022_v33  ;;  %v1962_v7 = vadd.f32 %v5331_v19, %v1853_v3 }
 0x2c1   : > { %v2017_v53 = vmax.f32 %v1953_v12, 0.0  ;;  %v2195_v54 = vsel %vm6001_vm7, %v2071_v35, 0.0  ;;  %v1963_v38 = vadd.f32 %v5331_v19, %v1854_v6 }
 0x2c2   : > { %v2261_v25 = vsel %vm6001_vm7, %v2093_v56, 0.0  ;;  %v2026_v36 = vmax.f32 %v1962_v7, 0.0 }
 0x2c3   : > { %2223 = vadd.xlane.f32.xlu1 %v2222_v43  ;;  %2229 = vadd.xlane.f32.xlu0 %v2228_v63  ;;  %v2087_v43 = vmul.f32 %v5190_v37, %v2016_v18  ;;  %v1956_v63 = vadd.f32 %v5331_v19, %v1847_v9  ;;  %v2088_v22 = vmul.f32 %v5190_v37, %v2017_v53  ;;  %v1794_v18 = vld [vmem:[#allocation4 + $0xe8] sm:$0xff]  ;;  %v2027_v53 = vmax.f32 %v1963_v38, 0.0 }
 0x2c4   : > { %v1855_v12 = vunpack.c.l.bf16 %v1794_v18  ;;  %v1856_v15 = vunpack.c.h.bf16 %v1794_v18 }
 0x2c5   : > { %v2243_v16 = vsel %vm6001_vm7, %v2087_v43, 0.0  ;;  %v2020_v28 = vmax.f32 %v1956_v63, 0.0  ;;  %v2246_v48 = vsel %vm6001_vm7, %v2088_v22, 0.0  ;;  %v2097_v43 = vmul.f32 %v5190_v37, %v2026_v36 }
 0x2c6   : > { %v1964_v13 = vadd.f32 %v5331_v19, %v1855_v12  ;;  %v2098_v63 = vmul.f32 %v5190_v37, %v2027_v53 }
 0x2c7   : > { %2235 = vadd.xlane.f32.xlu1 %v2234_v50  ;;  %2187 = vadd.xlane.f32.xlu0 %v2186_v5  ;;  %v2198_v50 = vsel %vm6001_vm7, %v2072_v24, 0.0  ;;  %v2104_v5 = vmul.f32 %v5190_v37, %v2033_v32  ;;  %v2091_v40 = vmul.f32 %v5190_v37, %v2020_v28  ;;  %v2273_v58 = vsel %vm6001_vm7, %v2097_v43, 0.0 }
 0x2c8   : > { %v2028_v0 = vmax.f32 %v1964_v13, 0.0  ;;  %v2276_v32 = vsel %vm6001_vm7, %v2098_v63, 0.0  ;;  %v1859_v28 = vunpack.c.l.bf16 %v5357_v55  ;;  %v5420_v55 = vand.u32 127, %v1865_v47 }
 0x2c9   : > { %v2294_v26 = vsel %vm6001_vm7, %v2104_v5, 0.0  ;;  %v2255_v52 = vsel %vm6001_vm7, %v2091_v40, 0.0 }
 0x2ca   : > { %v2099_v59 = vmul.f32 %v5190_v37, %v2028_v0  ;;  %v2442_v33 = vadd.s32 4294967288, %v5420_v55  ;;  %v2463_v3 = vadd.s32 4294967264, %v5420_v55  ;;  %v2484_v18 = vadd.s32 4294967240, %v5420_v55 }
 0x2cb   : > { %2238 = vadd.xlane.f32.xlu1 %v2237_v11  ;;  %2232 = vadd.xlane.f32.xlu0 %v2231_v46  ;;  %v1792_v11 = vld [vmem:[#allocation4 + $0xd8] sm:$0xff]  ;;  %v2092_v46 = vmul.f32 %v5190_v37, %v2021_v2  ;;  %v2491_v38 = vadd.s32 4294967232, %v5420_v55 }
 0x2cc   : > { %v1851_v61 = vunpack.c.l.bf16 %v1792_v11  ;;  %v1852_v30 = vunpack.c.h.bf16 %v1792_v11  ;;  %v2279_v29 = vsel %vm6001_vm7, %v2099_v59, 0.0  ;;  %v1968_v11 = vadd.f32 %v5331_v19, %v1859_v28 }
 0x2cd   : > { %v2258_v17 = vsel %vm6001_vm7, %v2092_v46, 0.0  ;;  %v5475_v59 = vsub.s32 %v2491_v38, %v5164_v1 }
 0x2ce   : > { %v1960_v39 = vadd.f32 %v5331_v19, %v1851_v61  ;;  %v1961_v60 = vadd.f32 %v5331_v19, %v1852_v30 }
 0x2cf   : > { %2241 = vadd.xlane.f32.xlu1 %v2240_v27  ;;  %2190 = vadd.xlane.f32.xlu0 %v2189_v49  ;;  %v2023_v27 = vmax.f32 %v1959_v62, 0.0 }
 0x2d0   : > { %v2024_v51 = vmax.f32 %v1960_v39, 0.0  ;;  %v2449_v39 = vadd.s32 4294967280, %v5420_v55 }
 0x2d1   : > { %v2094_v49 = vmul.f32 %v5190_v37, %v2023_v27  ;;  %v5433_v27 = vsub.s32 %v2442_v33, %v5164_v1  ;;  %v2526_v33 = vadd.s32 4294967192, %v5420_v55 }
 0x2d2   : > { %v2095_v10 = vmul.f32 %v5190_v37, %v2024_v51  ;;  %v2477_v51 = vadd.s32 4294967248, %v5420_v55 }
 0x2d3   : > { %2250 = vadd.xlane.f32.xlu1 %v2249_v14  ;;  %2193 = vadd.xlane.f32.xlu0 %v2192_v31  ;;  %v2264_v9 = vsel %vm6001_vm7, %v2094_v49, 0.0  ;;  %v2025_v14 = vmax.f32 %v1961_v60, 0.0 }
 0x2d4   : > { %v2267_v31 = vsel %vm6001_vm7, %v2095_v10, 0.0  ;;  %v5444_v10 = vsub.s32 %v2449_v39, %v5164_v1 }
 0x2d5   : > { %v2096_v35 = vmul.f32 %v5190_v37, %v2025_v14  ;;  %v2456_v14 = vadd.s32 4294967272, %v5420_v55 }
 0x2d7   : > { %2151 = vadd.xlane.f32.xlu1 %v2150_v42  ;;  %2196 = vadd.xlane.f32.xlu0 %v2195_v54  ;;  %v2270_v42 = vsel %vm6001_vm7, %v2096_v35, 0.0  ;;  %v1795_v54 = vld [vmem:[#allocation4 + $0xf0] sm:$0xff]  ;;  %v5451_v35 = vsub.s32 %v2463_v3, %v5164_v1  ;;  %v5462_v53 = vsub.s32 %v2456_v14, %v5164_v1 }
 0x2d8   : > { %v1857_v24 = vunpack.c.l.bf16 %v1795_v54  ;;  %v1858_v22 = vunpack.c.h.bf16 %v1795_v54  ;;  %v5466_v54 = vsub.s32 %v2484_v18, %v5164_v1 }
 0x2da   : > { %v1966_v44 = vadd.f32 %v5331_v19, %v1857_v24  ;;  %v1967_v4 = vadd.f32 %v5331_v19, %v1858_v22  ;;  %v2505_v22 = vadd.s32 4294967216, %v5420_v55 }
 0x2db   : > { %2244 = vadd.xlane.f32.xlu1 %v2243_v16  ;;  %2199 = vadd.xlane.f32.xlu0 %v2198_v50  ;;  %v1965_v16 = vadd.f32 %v5331_v19, %v1856_v15  ;;  %v5429_v19 = vsub.s32 %v5420_v55, %v5164_v1  ;;  %v5458_v15 = vsub.s32 %v2477_v51, %v5164_v1 }
 0x2dc   : > { %v2030_v5 = vmax.f32 %v1966_v44, 0.0  ;;  %v2031_v45 = vmax.f32 %v1967_v4, 0.0 }
 0x2dd   : > { %v2029_v50 = vmax.f32 %v1965_v16, 0.0 }
 0x2de   : > { %v2101_v2 = vmul.f32 %v5190_v37, %v2030_v5  ;;  %v2102_v61 = vmul.f32 %v5190_v37, %v2031_v45 }
 0x2df   : > { %2247 = vadd.xlane.f32.xlu1 %v2246_v48  ;;  %2253 = vadd.xlane.f32.xlu0 %v2252_v23  ;;  %v2100_v48 = vmul.f32 %v5190_v37, %v2029_v50  ;;  %v5414_v23 = vpop.permute.xlu1 %2304 }
 0x2e0   : > { %v2288_v30 = vsel %vm6001_vm7, %v2102_v61, 0.0 }
 0x2e1   : > { %v2282_v40 = vsel %vm6001_vm7, %v2100_v48, 0.0 }
 0x2e3   : > { %2295 = vadd.xlane.f32.xlu1 %v2294_v26  ;;  %2256 = vadd.xlane.f32.xlu0 %v2255_v52  ;;  %v2285_v26 = vsel %vm6001_vm7, %v2101_v2, 0.0  ;;  %v2032_v52 = vmax.f32 %v1968_v11, 0.0 }
 0x2e7   : > { %2259 = vadd.xlane.f32.xlu0 %v2258_v17  ;;  %v2103_v17 = vmul.f32 %v5190_v37, %v2032_v52  ;;  %v2470_v37 = vadd.s32 4294967256, %v5420_v55 }
 0x2e9   : > { %v2291_v49 = vsel %vm6001_vm7, %v2103_v17, 0.0  ;;  %v5454_v36 = vsub.s32 %v2470_v37, %v5164_v1  ;;  %vm2545_vm7 = vcmask 1048512  }
 0x2eb   : > { %2262 = vadd.xlane.f32.xlu0 %v2261_v25 }
 0x2ef   : > { %2265 = vadd.xlane.f32.xlu0 %v2264_v9 }
 0x2f3   : > { %2268 = vadd.xlane.f32.xlu0 %v2267_v31 }
 0x2f7   : > { %2271 = vadd.xlane.f32.xlu0 %v2270_v42 }
 0x2fb   : > { %2274 = vadd.xlane.f32.xlu0 %v2273_v58  ;;  %v2498_v58 = vadd.s32 4294967224, %v5420_v55 }
 0x2fd   : > { %v5483_v4 = vsub.s32 %v2498_v58, %v5164_v1 }
 0x2ff   : > { %2277 = vadd.xlane.f32.xlu0 %v2276_v32 }
 0x303   : > { %2280 = vadd.xlane.f32.xlu0 %v2279_v29  ;;  %v2512_v29 = vadd.s32 4294967208, %v5420_v55 }
 0x307   : > { %2283 = vadd.xlane.f32.xlu0 %v2282_v40 }
 0x30b   : > { %2286 = vadd.xlane.f32.xlu0 %v2285_v26  ;;  %v5489_v26 = vsub.s32 %v2505_v22, %v5164_v1 }
 0x30c   : > { %v2119_v46 = vpop.xlane.xlu1 %2118  ;;  %v2107_v62 = vpop.xlane.xlu0 %2106 }
 0x30d   : > { %v2307_v47 = vadd.f32 %v5414_v23, %v2107_v62  ;;  %v2311_v13 = vadd.f32 %v5414_v23, %v2119_v46 }
 0x30f   : > { %2289 = vadd.xlane.f32.xlu0 %v2288_v30  ;;  %v2441_v60 = vrot.slane %v2307_v47, %v5429_v19  ;;  %v2467_v48 = vrot.slane %v2311_v13, %v5451_v35  ;;  %v5498_v47 = vsub.s32 %v2512_v29, %v5164_v1 }
 0x310   : > { %v2122_v56 = vpop.xlane.xlu1 %2121  ;;  %v2110_v57 = vpop.xlane.xlu0 %2109 }
 0x311   : > { %v2308_v25 = vadd.f32 %v5414_v23, %v2110_v57  ;;  %v2312_v63 = vadd.f32 %v5414_v23, %v2122_v56  ;;  %v2519_v56 = vadd.s32 4294967200, %v5420_v55 }
 0x313   : > { %v2446_v6 = vrot.slane %v2308_v25, %v5433_v27  ;;  %2292 = vadd.xlane.f32.xlu0 %v2291_v49  ;;  %v2474_v2 = vrot.slane %v2312_v63, %v5454_v36 }
 0x314   : > { %v2125_v9 = vpop.xlane.xlu1 %2124  ;;  %v2113_v7 = vpop.xlane.xlu0 %2112 }
 0x315   : > { %v2448_v12 = vsel %vm2447_vm8, %v2446_v6, %v2441_v60  ;;  %v2309_v31 = vadd.f32 %v5414_v23, %v2113_v7  ;;  %v2313_v32 = vadd.f32 %v5414_v23, %v2125_v9  ;;  %v5509_v6 = vsub.s32 %v2526_v33, %v5164_v1 }
 0x316   : > { %v2533_v9 = vadd.s32 4294967184, %v5420_v55 }
 0x317   : > { %v2453_v42 = vrot.slane %v2309_v31, %v5444_v10  ;;  %v2481_v61 = vrot.slane %v2313_v32, %v5458_v15 }
 0x318   : > { %v2128_v43 = vpop.xlane.xlu1 %2127  ;;  %v2116_v24 = vpop.xlane.xlu0 %2115  ;;  %v5523_v58 = vsub.s32 %v2533_v9, %v5164_v1 }
 0x319   : > { %v2455_v0 = vsel %vm2454_vm9, %v2453_v42, %v2448_v12  ;;  %v2310_v16 = vadd.f32 %v5414_v23, %v2116_v24  ;;  %v2314_v50 = vadd.f32 %v5414_v23, %v2128_v43  ;;  %v5515_v12 = vsub.s32 %v2519_v56, %v5164_v1 }
 0x31b   : > { %v2460_v44 = vrot.slane %v2310_v16, %v5462_v53  ;;  %v2488_v62 = vrot.slane %v2314_v50, %v5466_v54 }
 0x31c   : > { %v2131_v28 = vpop.xlane.xlu1 %2130  ;;  %v2134_v40 = vpop.xlane.xlu0 %2133 }
 0x31d   : > { %v2315_v5 = vadd.f32 %v5414_v23, %v2131_v28  ;;  %v2462_v45 = vsel %vm2461_vm10, %v2460_v44, %v2455_v0  ;;  %v2316_v11 = vadd.f32 %v5414_v23, %v2134_v40 }
 0x31e   : > { %v2469_v52 = vsel %vm2468_vm11, %v2467_v48, %v2462_v45 }
 0x31f   : > { %v2495_v46 = vrot.slane %v2315_v5, %v5475_v59  ;;  %v2476_v30 = vsel %vm2475_vm12, %v2474_v2, %v2469_v52  ;;  %v2502_v37 = vrot.slane %v2316_v11, %v5483_v4 }
 0x320   : > { %v2137_v17 = vpop.xlane.xlu1 %2136  ;;  %v2483_v39 = vsel %vm2482_vm13, %v2481_v61, %v2476_v30  ;;  %v2140_v3 = vpop.xlane.xlu0 %2139 }
 0x321   : > { %v2317_v57 = vadd.f32 %v5414_v23, %v2137_v17  ;;  %v2490_v25 = vsel %vm2489_vm14, %v2488_v62, %v2483_v39  ;;  %v2318_v49 = vadd.f32 %v5414_v23, %v2140_v3 }
 0x322   : > { %v2497_v51 = vsel %vm2496_vm15, %v2495_v46, %v2490_v25 }
 0x323   : > { %v2509_v60 = vrot.slane %v2317_v57, %v5489_v26  ;;  %v2504_v14 = vsel %vm2503_vm0, %v2502_v37, %v2497_v51  ;;  %v2516_v7 = vrot.slane %v2318_v49, %v5498_v47 }
 0x324   : > { %v2146_v18 = vpop.xlane.xlu1 %2145  ;;  %v2143_v42 = vpop.xlane.xlu0 %2142 }
 0x325   : > { %v2511_v31 = vsel %vm2510_vm1, %v2509_v60, %v2504_v14  ;;  %v2320_v38 = vadd.f32 %v5414_v23, %v2146_v18  ;;  %v2319_v13 = vadd.f32 %v5414_v23, %v2143_v42 }
 0x326   : > { %v2518_v43 = vsel %vm2517_vm2, %v2516_v7, %v2511_v31 }
 0x327   : > { %v2530_v24 = vrot.slane %v2320_v38, %v5509_v6  ;;  %v2523_v63 = vrot.slane %v2319_v13, %v5515_v12 }
 0x328   : > { %v2149_v0 = vpop.xlane.xlu1 %2148  ;;  %v2203_v22 = vpop.xlane.xlu0 %2202 }
 0x329   : > { %v2321_v16 = vadd.f32 %v5414_v23, %v2149_v0  ;;  %v2525_v32 = vsel %vm6004_vm3, %v2523_v63, %v2518_v43  ;;  %v2339_v11 = vadd.f32 %v5414_v23, %v2203_v22 }
 0x32a   : > { %v2532_v50 = vsel %vm2531_vm4, %v2530_v24, %v2525_v32 }
 0x32b   : > { %v2537_v44 = vrot.slane %v2321_v16, %v5523_v58  ;;  %v2629_v56 = vrot.slane %v2339_v11, %v5429_v19 }
 0x32c   : > { %v2155_v28 = vpop.xlane.xlu1 %2154  ;;  %v2209_v48 = vpop.xlane.xlu0 %2208 }
 0x32d   : > { %v5531_v29 = vsel %vm2538_vm5, %v2537_v44, %v2532_v50  ;;  %v2341_v52 = vadd.f32 %v5414_v23, %v2209_v48  ;;  %v2323_v62 = vadd.f32 %v5414_v23, %v2155_v28 }
 0x32f   : > { %v2638_v3 = vrot.slane %v2341_v52, %v5444_v10  ;;  %v2550_v51 = vrot.slane %v2323_v62, %v5429_v19 }
 0x330   : > { %v2158_v5 = vpop.xlane.xlu1 %2157  ;;  %v2167_v40 = vpop.xlane.xlu0 %2166 }
 0x331   : > { %v2324_v61 = vadd.f32 %v5414_v23, %v2158_v5  ;;  %v2327_v25 = vadd.f32 %v5414_v23, %v2167_v40 }
 0x333   : > { %v2554_v39 = vrot.slane %v2324_v61, %v5433_v27  ;;  %v2569_v13 = vrot.slane %v2327_v25, %v5451_v35 }
 0x334   : > { %v2161_v2 = vpop.xlane.xlu1 %2160  ;;  %v2170_v45 = vpop.xlane.xlu0 %2169 }
 0x335   : > { %v2325_v46 = vadd.f32 %v5414_v23, %v2161_v2  ;;  %v2328_v60 = vadd.f32 %v5414_v23, %v2170_v45  ;;  %v2555_v38 = vsel %vm2447_vm8, %v2554_v39, %v2550_v51 }
 0x337   : > { %v2559_v37 = vrot.slane %v2325_v46, %v5444_v10  ;;  %v2574_v0 = vrot.slane %v2328_v60, %v5454_v36 }
 0x338   : > { %v2206_v33 = vpop.xlane.xlu1 %2205  ;;  %v2173_v30 = vpop.xlane.xlu0 %2172 }
 0x339   : > { %v2340_v17 = vadd.f32 %v5414_v23, %v2206_v33  ;;  %v2329_v18 = vadd.f32 %v5414_v23, %v2173_v30  ;;  %v2560_v24 = vsel %vm2454_vm9, %v2559_v37, %v2555_v38 }
 0x33b   : > { %v2633_v57 = vrot.slane %v2340_v17, %v5433_v27  ;;  %v2579_v32 = vrot.slane %v2329_v18, %v5458_v15 }
 0x33c   : > { %v2164_v49 = vpop.xlane.xlu1 %2163  ;;  %v2176_v14 = vpop.xlane.xlu0 %2175 }
 0x33d   : > { %v2634_v9 = vsel %vm2447_vm8, %v2633_v57, %v2629_v56  ;;  %v2326_v7 = vadd.f32 %v5414_v23, %v2164_v49  ;;  %v2330_v42 = vadd.f32 %v5414_v23, %v2176_v14 }
 0x33e   : > { %v2639_v31 = vsel %vm2454_vm9, %v2638_v3, %v2634_v9 }
 0x33f   : > { %v2564_v43 = vrot.slane %v2326_v7, %v5462_v53  ;;  %v2584_v28 = vrot.slane %v2330_v42, %v5466_v54 }
 0x340   : > { %v2212_v63 = vpop.xlane.xlu1 %2211  ;;  %v2179_v22 = vpop.xlane.xlu0 %2178 }
 0x341   : > { %v2565_v16 = vsel %vm2461_vm10, %v2564_v43, %v2560_v24  ;;  %v2331_v44 = vadd.f32 %v5414_v23, %v2179_v22  ;;  %v2342_v62 = vadd.f32 %v5414_v23, %v2212_v63 }
 0x342   : > { %v2570_v50 = vsel %vm2468_vm11, %v2569_v13, %v2565_v16 }
 0x343   : > { %v2575_v48 = vsel %vm2475_vm12, %v2574_v0, %v2570_v50  ;;  %v2589_v40 = vrot.slane %v2331_v44, %v5475_v59  ;;  %v2643_v3 = vrot.slane %v2342_v62, %v5462_v53 }
 0x344   : > { %v2580_v5 = vsel %vm2482_vm13, %v2579_v32, %v2575_v48  ;;  %v2215_v2 = vpop.xlane.xlu1 %2214  ;;  %v2182_v11 = vpop.xlane.xlu0 %2181 }
 0x345   : > { %v2585_v45 = vsel %vm2489_vm14, %v2584_v28, %v2580_v5  ;;  %v2332_v52 = vadd.f32 %v5414_v23, %v2182_v11  ;;  %v2343_v56 = vadd.f32 %v5414_v23, %v2215_v2  ;;  %v2644_v38 = vsel %vm2461_vm10, %v2643_v3, %v2639_v31 }
 0x346   : > { %v2590_v61 = vsel %vm2496_vm15, %v2589_v40, %v2585_v45 }
 0x347   : > { %v2594_v46 = vrot.slane %v2332_v52, %v5483_v4  ;;  %v2648_v49 = vrot.slane %v2343_v56, %v5451_v35 }
 0x348   : > { %v2218_v33 = vpop.xlane.xlu1 %2217  ;;  %v2227_v30 = vpop.xlane.xlu0 %2226 }
 0x349   : > { %v2595_v17 = vsel %vm2503_vm0, %v2594_v46, %v2590_v61  ;;  %v2344_v39 = vadd.f32 %v5414_v23, %v2218_v33  ;;  %v2347_v9 = vadd.f32 %v5414_v23, %v2227_v30  ;;  %v2649_v13 = vsel %vm2468_vm11, %v2648_v49, %v2644_v38 }
 0x34b   : > { %v2653_v60 = vrot.slane %v2344_v39, %v5454_v36  ;;  %v2668_v22 = vrot.slane %v2347_v9, %v5475_v59 }
 0x34c   : > { %v2221_v57 = vpop.xlane.xlu1 %2220  ;;  %v2185_v25 = vpop.xlane.xlu0 %2184 }
 0x34d   : > { %v2345_v37 = vadd.f32 %v5414_v23, %v2221_v57  ;;  %v2333_v51 = vadd.f32 %v5414_v23, %v2185_v25  ;;  %v2654_v0 = vsel %vm2475_vm12, %v2653_v60, %v2649_v13  ;;  %v2540_v25 = vadd.s32 4294967176, %v5420_v55 }
 0x34f   : > { %v2599_v14 = vrot.slane %v2333_v51, %v5489_v26  ;;  %v2658_v7 = vrot.slane %v2345_v37, %v5458_v15 }
 0x350   : > { %v2224_v18 = vpop.xlane.xlu1 %2223  ;;  %v2230_v42 = vpop.xlane.xlu0 %2229 }
 0x351   : > { %v2346_v43 = vadd.f32 %v5414_v23, %v2224_v18  ;;  %v2600_v24 = vsel %vm2510_vm1, %v2599_v14, %v2595_v17  ;;  %v2348_v63 = vadd.f32 %v5414_v23, %v2230_v42  ;;  %v2659_v32 = vsel %vm2482_vm13, %v2658_v7, %v2654_v0 }
 0x352   : > { %v5609_v7 = vsub.s32 %v2540_v25, %v5164_v1 }
 0x353   : > { %v2663_v16 = vrot.slane %v2346_v43, %v5466_v54  ;;  %v2673_v31 = vrot.slane %v2348_v63, %v5483_v4 }
 0x354   : > { %v2236_v50 = vpop.xlane.xlu1 %2235  ;;  %v2188_v28 = vpop.xlane.xlu0 %2187 }
 0x355   : > { %v2664_v44 = vsel %vm2489_vm14, %v2663_v16, %v2659_v32  ;;  %v2334_v5 = vadd.f32 %v5414_v23, %v2188_v28  ;;  %v2350_v37 = vadd.f32 %v5414_v23, %v2236_v50 }
 0x356   : > { %v2669_v48 = vsel %vm2496_vm15, %v2668_v22, %v2664_v44 }
 0x357   : > { %v2674_v40 = vsel %vm2503_vm0, %v2673_v31, %v2669_v48  ;;  %v2604_v2 = vrot.slane %v2334_v5, %v5498_v47  ;;  %v2683_v38 = vrot.slane %v2350_v37, %v5498_v47 }
 0x358   : > { %v2239_v45 = vpop.xlane.xlu1 %2238  ;;  %v2233_v11 = vpop.xlane.xlu0 %2232 }
 0x359   : > { %v2605_v61 = vsel %vm2517_vm2, %v2604_v2, %v2600_v24  ;;  %v2349_v52 = vadd.f32 %v5414_v23, %v2233_v11  ;;  %v2351_v9 = vadd.f32 %v5414_v23, %v2239_v45 }
 0x35b   : > { %v2678_v46 = vrot.slane %v2349_v52, %v5489_v26  ;;  %v2688_v22 = vrot.slane %v2351_v9, %v5515_v12 }
 0x35c   : > { %v2242_v33 = vpop.xlane.xlu1 %2241  ;;  %v2191_v62 = vpop.xlane.xlu0 %2190 }
 0x35d   : > { %v2679_v30 = vsel %vm2510_vm1, %v2678_v46, %v2674_v40  ;;  %v2335_v17 = vadd.f32 %v5414_v23, %v2191_v62  ;;  %v2352_v42 = vadd.f32 %v5414_v23, %v2242_v33 }
 0x35e   : > { %v2684_v24 = vsel %vm2517_vm2, %v2683_v38, %v2679_v30 }
 0x35f   : > { %v2609_v56 = vrot.slane %v2335_v17, %v5515_v12  ;;  %v2693_v31 = vrot.slane %v2352_v42, %v5509_v6  ;;  %v2689_v44 = vsel %vm6004_vm3, %v2688_v22, %v2684_v24 }
 0x360   : > { %v2251_v39 = vpop.xlane.xlu1 %2250  ;;  %v2194_v57 = vpop.xlane.xlu0 %2193 }
 0x361   : > { %v2610_v3 = vsel %vm6004_vm3, %v2609_v56, %v2605_v61  ;;  %v2336_v49 = vadd.f32 %v5414_v23, %v2194_v57  ;;  %v2694_v46 = vsel %vm2531_vm4, %v2693_v31, %v2689_v44  ;;  %vm2786_vm3 = vcmask 1042434  }
 0x362   : > { %v2355_v38 = vadd.f32 %v5414_v23, %v2251_v39 }
 0x363   : > { %v2614_v43 = vrot.slane %v2336_v49, %v5509_v6 }
 0x364   : > { %v2152_v51 = vpop.xlane.xlu1 %2151  ;;  %v2197_v60 = vpop.xlane.xlu0 %2196  ;;  %v2708_v22 = vrot.slane %v2355_v38, %v5429_v19 }
 0x365   : > { %v2337_v14 = vadd.f32 %v5414_v23, %v2197_v60  ;;  %v2322_v18 = vadd.f32 %v5414_v23, %v2152_v51  ;;  %v2615_v28 = vsel %vm2531_vm4, %v2614_v43, %v2610_v3 }
 0x367   : > { %v2619_v63 = vrot.slane %v2337_v14, %v5523_v58  ;;  %v2544_v32 = vrot.slane %v2322_v18, %v5609_v7 }
 0x368   : > { %v2245_v13 = vpop.xlane.xlu1 %2244  ;;  %v2200_v0 = vpop.xlane.xlu0 %2199 }
 0x369   : > { %v2353_v16 = vadd.f32 %v5414_v23, %v2245_v13  ;;  %v2338_v50 = vadd.f32 %v5414_v23, %v2200_v0  ;;  %v2620_v2 = vsel %vm2538_vm5, %v2619_v63, %v2615_v28  ;;  %v2546_v61 = vsel %vm2545_vm7, %v2544_v32, %v5531_v29 }
 0x36b   : > { %v2624_v48 = vrot.slane %v2338_v50, %v5609_v7  ;;  %v2698_v5 = vrot.slane %v2353_v16, %v5523_v58 }
 0x36c   : > { %v2248_v40 = vpop.xlane.xlu1 %2247  ;;  %v2254_v45 = vpop.xlane.xlu0 %2253 }
 0x36d   : > { %v2354_v11 = vadd.f32 %v5414_v23, %v2248_v40  ;;  %v2625_v52 = vsel %vm2545_vm7, %v2624_v48, %v2620_v2  ;;  %v2699_v30 = vsel %vm2538_vm5, %v2698_v5, %v2694_v46  ;;  %v2356_v9 = vadd.f32 %v5414_v23, %v2254_v45 }
 0x36e   : > { %v2785_v62 = vsel %vm2784_vm6, %v2625_v52, %v2546_v61 }
 0x36f   : > { %v2703_v33 = vrot.slane %v2354_v11, %v5609_v7  ;;  %v2712_v13 = vrot.slane %v2356_v9, %v5433_v27 }
 0x370   : > { %v2257_v17 = vpop.xlane.xlu0 %2256 }
 0x371   : > { %v2704_v56 = vsel %vm2545_vm7, %v2703_v33, %v2699_v30  ;;  %v2357_v18 = vadd.f32 %v5414_v23, %v2257_v17  ;;  %v2713_v44 = vsel %vm2447_vm8, %v2712_v13, %v2708_v22  ;;  %vm6045_vm8 = vcmask 851712   ;;  %v4247_v22 = vld [vmem:[%s6046_s30 + $0x20] sm:$0xff]  }
 0x372   : > { %v5637_v57 = vsel %vm2786_vm3, %v2704_v56, %v2785_v62 }
 0x373   : > { %v2717_v0 = vrot.slane %v2357_v18, %v5444_v10  ;;  %v4243_v18 = vld [vmem:[%s6046_s30 + $0x10] sm:$0xff]  }
 0x374   : > { %v2260_v3 = vpop.xlane.xlu0 %2259 }
 0x375   : > { %v2358_v42 = vadd.f32 %v5414_v23, %v2260_v3  ;;  %v2718_v10 = vsel %vm2454_vm9, %v2717_v0, %v2713_v44  ;;  %vm2788_vm9 = vcmask 1043459   ;;  %v4245_v0 = vld [vmem:[%s6046_s30 + $0x18] sm:$0xff]   ;;  %v4252_v44 = vld [vmem:[%s6046_s30 + $0x70] sm:$0xff]  }
 0x377   : > { %v2722_v32 = vrot.slane %v2358_v42, %v5462_v53 }
 0x378   : > { %v2263_v25 = vpop.xlane.xlu0 %2262 }
 0x379   : > { %v2359_v43 = vadd.f32 %v5414_v23, %v2263_v25  ;;  %v2723_v53 = vsel %vm2461_vm10, %v2722_v32, %v2718_v10  ;;  %vm2373_vm10 = vcmp.lt.s32.totalorder %v5420_v55, 16  ;;  %v4240_v55 = vld [vmem:[%s6046_s30 + $0x40] sm:$0xff]  }
 0x37a   : > { %4012 = vmatpush3.bf16.msra.mxu0 %v4240_v55  ;;  %v4248_v32 = vld [vmem:[%s6046_s30 + $0x60] sm:$0xff]  }
 0x37b   : > { %v2727_v39 = vrot.slane %v2359_v43, %v5451_v35  ;;  %4013 = vmatprep.subr.bf16.mxu0 %v4407_v34 }
 0x37c   : > { %v2266_v29 = vpop.xlane.xlu0 %2265 }
 0x37d   : > { %v2360_v24 = vadd.f32 %v5414_v23, %v2266_v29  ;;  %v2728_v2 = vsel %vm2468_vm11, %v2727_v39, %v2723_v53  ;;  %vm2792_vm11 = vcmask 1043456   ;;  %v4250_v39 = vld [vmem:[%s6046_s30 + $0x68] sm:$0xff]  }
 0x37f   : > { %v2732_v27 = vrot.slane %v2360_v24, %v5454_v36 }
 0x380   : > { %v2269_v37 = vpop.xlane.xlu0 %2268 }
 0x381   : > { %v2361_v16 = vadd.f32 %v5414_v23, %v2269_v37  ;;  %v2733_v11 = vsel %vm2475_vm12, %v2732_v27, %v2728_v2  ;;  %v4253_v27 = vld [vmem:[%s6046_s30 + $0x38] sm:$0xff]   ;;  %vm6048_vm12 = vcmask 261120  }
 0x383   : > { %v2737_v5 = vrot.slane %v2361_v16, %v5458_v15  ;;  %v2296_v15 = vpop.xlane.xlu1 %2295  ;;  %v4246_v16 = vld [vmem:[%s6046_s30 + $0x58] sm:$0xff]  }
 0x384   : > { %v2272_v49 = vpop.xlane.xlu0 %2271  ;;  %v2370_v56 = vadd.f32 %v5414_v23, %v2296_v15  ;;  %v4257_v15 = vld [vmem:[%s6046_s30 + $0x88] sm:$0xff]  }
 0x385   : > { %v2362_v50 = vadd.f32 %v5414_v23, %v2272_v49  ;;  %v2738_v46 = vsel %vm2482_vm13, %v2737_v5, %v2733_v11  ;;  %vm6049_vm13 = vmmov %vm6048_vm12 }
 0x387   : > { %v2742_v40 = vrot.slane %v2362_v50, %v5466_v54  ;;  %v4249_v50 = vld [vmem:[%s6046_s30 + $0x28] sm:$0xff]  }
 0x388   : > { %v2275_v51 = vpop.xlane.xlu0 %2274 }
 0x389   : > { %v2363_v31 = vadd.f32 %v5414_v23, %v2275_v51  ;;  %v2743_v62 = vsel %vm2489_vm14, %v2742_v40, %v2738_v46  ;;  %v2782_v51 = vrot.slane %v2370_v56, %v5609_v7  ;;  %v4241_v7 = vld [vmem:[%s6046_s30 + $0x8] sm:$0xff]  }
 0x38a   : > { %v4258_v46 = vld [vmem:[%s6046_s30 + $0xc8] sm:$0xff]  }
 0x38b   : > { %v2747_v45 = vrot.slane %v2363_v31, %v5475_v59  ;;  %v4251_v31 = vld [vmem:[%s6046_s30 + $0x30] sm:$0xff]  }
 0x38c   : > { %v2278_v60 = vpop.xlane.xlu0 %2277 }
 0x38d   : > { %v2364_v28 = vadd.f32 %v5414_v23, %v2278_v60  ;;  %v2748_v59 = vsel %vm2496_vm15, %v2747_v45, %v2743_v62  ;;  %v4255_v45 = vld [vmem:[%s6046_s30 + $0x80] sm:$0xff]   ;;  %v4261_v62 = vld [vmem:[%s6046_s30 + $0x98] sm:$0xff]  }
 0x38f   : > { %v2752_v61 = vrot.slane %v2364_v28, %v5483_v4  ;;  %v4254_v28 = vld [vmem:[%s6046_s30 + $0x78] sm:$0xff]  }
 0x390   : > { %v2281_v14 = vpop.xlane.xlu0 %2280 }
 0x391   : > { %v2365_v19 = vadd.f32 %v5414_v23, %v2281_v14  ;;  %v2753_v4 = vsel %vm2503_vm0, %v2752_v61, %v2748_v59  ;;  %v4256_v61 = vld [vmem:[%s6046_s30 + $0xc0] sm:$0xff]  }
 0x392   : > { %v4263_v59 = vld [vmem:[%s6046_s30 + $0xa0] sm:$0xff]  }
 0x393   : > { %v2757_v33 = vrot.slane %v2365_v19, %v5489_v26 }
 0x394   : > { %v2284_v63 = vpop.xlane.xlu0 %2283 }
 0x395   : > { %v2366_v35 = vadd.f32 %v5414_v23, %v2284_v63  ;;  %v2758_v29 = vsel %vm2510_vm1, %v2757_v33, %v2753_v4  ;;  %v4244_v63 = vld [vmem:[%s6046_s30 + $0x50] sm:$0xff]   ;;  %v4265_v4 = vld [vmem:[%s6046_s30 + $0xa8] sm:$0xff]  }
 0x396   : > { %v4259_v33 = vld [vmem:[%s6046_s30 + $0x90] sm:$0xff]  }
 0x397   : > { %v2762_v30 = vrot.slane %v2366_v35, %v5498_v47 }
 0x398   : > { %v2287_v48 = vpop.xlane.xlu0 %2286 }
 0x399   : > { %v2367_v36 = vadd.f32 %v5414_v23, %v2287_v48  ;;  %v2763_v37 = vsel %vm2517_vm2, %v2762_v30, %v2758_v29  ;;  %v4262_v30 = vld [vmem:[%s6046_s30 + $0xd8] sm:$0xff]   ;;  %v4267_v29 = vld [vmem:[%s6046_s30 + $0xb0] sm:$0xff]  }
 0x39b   : > { %v2767_v17 = vrot.slane %v2367_v36, %v5515_v12 }
 0x39c   : > { %v2290_v52 = vpop.xlane.xlu0 %2289 }
 0x39d   : > { %v2368_v54 = vadd.f32 %v5414_v23, %v2290_v52  ;;  %v2768_v49 = vsel %vm6045_vm8, %v2767_v17, %v2763_v37  ;;  %v4264_v17 = vld [vmem:[%s6046_s30 + $0xe0] sm:$0xff]  }
 0x39f   : > { %v2772_v3 = vrot.slane %v2368_v54, %v5509_v6  ;;  %v4260_v54 = vld [vmem:[%s6046_s30 + $0xd0] sm:$0xff]  }
 0x3a0   : > { %v2293_v25 = vpop.xlane.xlu0 %2292 }
 0x3a1   : > { %v2369_v26 = vadd.f32 %v5414_v23, %v2293_v25  ;;  %v2773_v12 = vsel %vm2531_vm4, %v2772_v3, %v2768_v49  ;;  %v4266_v3 = vld [vmem:[%s6046_s30 + $0xe8] sm:$0xff]  }
 0x3a3   : > { %v2777_v47 = vrot.slane %v2369_v26, %v5523_v58  ;;  %v4239_v58 = vld [vmem:[%s6046_s30] sm:$0xff]   ;;  %v4268_v26 = vld [vmem:[%s6046_s30 + $0xf0] sm:$0xff]  }
 0x3a4   : > { %3992 = vmatpush3.bf16.msra.mxu1 %v4239_v58 }
 0x3a5   : > { %v2778_v6 = vsel %vm2538_vm5, %v2777_v47, %v2773_v12  ;;  %3993 = vmatprep.subr.bf16.mxu1 %v4407_v34  ;;  %v4270_v47 = vld [vmem:[%s6046_s30 + $0xf8] sm:$0xff]   ;;  %v4271_v12 = vld [vmem:[%s5986_s13] sm:$0xff]  }
 0x3a6   : > { %v2783_v60 = vsel %vm2545_vm7, %v2782_v51, %v2778_v6  ;;  %vm6047_vm7 = vmmov 0  }
 0x3a7   : > { %v2789_v23 = vsel %vm2788_vm9, %v2783_v60, %v5637_v57  ;;  %v4242_v57 = vld [vmem:[%s6046_s30 + $0x48] sm:$0xff]  }
 0x3a8   : > { %v2791_v9 = vsel %vm2373_vm10, %v2789_v23, -1e+30  ;;  %3994 = vmatpush3.bf16.msra.mxu1 %v4241_v7  ;;  %4014 = vmatpush3.bf16.msra.mxu0 %v4242_v57  ;;  %v4272_v23 = vld [vmem:[%s5986_s13 + $0x8] sm:$0xff]  }
 0x3a9   : > { %v2793_v14 = vsel %vm2792_vm11, %v2791_v9, -inf  ;;  %3995 = vmatprep.subr.bf16.mxu1 %v4407_v34  ;;  %4015 = vmatprep.subr.bf16.mxu0 %v4407_v34 }
 0x3aa   : > { %2794 = vmax.xlane.f32.xlu0 %v2793_v14  ;;  %v4275_v14 = vld [vmem:[%s5988_s15 + $0x10] sm:$0xff]  }
 0x3ac   : > { %3996 = vmatpush3.bf16.msra.mxu1 %v4243_v18  ;;  %4016 = vmatpush3.bf16.msra.mxu0 %v4244_v63 }
 0x3ad   : > { %3997 = vmatprep.subr.bf16.mxu1 %v4407_v34  ;;  %4017 = vmatprep.subr.bf16.mxu0 %v4407_v34 }
 0x3b0   : > { %3998 = vmatpush3.bf16.msra.mxu1 %v4245_v0  ;;  %4018 = vmatpush3.bf16.msra.mxu0 %v4246_v16 }
 0x3b1   : > { %3999 = vmatprep.subr.bf16.mxu1 %v4407_v34  ;;  %4019 = vmatprep.subr.bf16.mxu0 %v4407_v34 }
 0x3b4   : > { %4000 = vmatpush3.bf16.msra.mxu1 %v4247_v22  ;;  %4020 = vmatpush3.bf16.msra.mxu0 %v4248_v32 }
 0x3b5   : > { %4001 = vmatprep.subr.bf16.mxu1 %v4407_v34  ;;  %4021 = vmatprep.subr.bf16.mxu0 %v4407_v34 }
 0x3b8   : > { %4002 = vmatpush3.bf16.msra.mxu1 %v4249_v50  ;;  %4022 = vmatpush3.bf16.msra.mxu0 %v4250_v39 }
 0x3b9   : > { %4003 = vmatprep.subr.bf16.mxu1 %v4407_v34  ;;  %4023 = vmatprep.subr.bf16.mxu0 %v4407_v34 }
 0x3bc   : > { %4004 = vmatpush3.bf16.msra.mxu1 %v4251_v31  ;;  %4024 = vmatpush3.bf16.msra.mxu0 %v4252_v44 }
 0x3bd   : > { %4005 = vmatprep.subr.bf16.mxu1 %v4407_v34  ;;  %4025 = vmatprep.subr.bf16.mxu0 %v4407_v34 }
 0x3c0   : > { %4006 = vmatpush3.bf16.msra.mxu1 %v4253_v27  ;;  %4026 = vmatpush3.bf16.msra.mxu0 %v4254_v28 }
 0x3c1   : > { %4031 = vmatprep.subr.bf16.mxu1 %v4407_v34  ;;  %4051 = vmatprep.subr.bf16.mxu0 %v4407_v34 }
 0x3c2   : > { %3355 = vrot.lane.b32.xlu0 %v5155_v41, %s4411_s8 }
 0x437   : > { %v2795_v38 = vpop.xlane.xlu0 %2794 }
 0x438   : > { %v2796_v42 = vsub.f32 %v2791_v9, %v2795_v38  ;;  %v4274_v9 = vld [vmem:[%s5988_s15 + $0x8] sm:$0xff]  }
 0x43a   : > { %v2797_v43 = vmul.f32 1.442695, %v2796_v42 }
 0x43c   : > { %4277 = vpow2.f32 %v2797_v43 }
 0x446   : > { %v4278_v13 = vpop.eup %4277 }
 0x447   : > { %v2799_v24 = vsel %vm2792_vm11, %v4278_v13, 0.0 }
 0x448   : > { %2800 = vadd.xlane.f32.xlu1 %v2799_v24 }
 0x4d5   : > { %v2801_v48 = vpop.xlane.xlu1 %2800 }
 0x4d6   : > { %4279 = vrcp.f32 %v2801_v48  ;;  %v3795_v48 = vld [vmem:[%s5987_s14] ss:$0 sm:$0xff] }
 0x4e0   : > { %v4280_v10 = vpop.eup %4279 }
 0x4e1   : > { %v5757_v5 = vmul.f32 %v4280_v10, %v4278_v13 }
 0x4e3   : > { %v2804_v19 = vpack.c.bf16 %v5757_v5, %v5757_v5 }
 0x4e5   : > { %v2812_v53 = vrot.slane %v2804_v19, %v5170_v20 }
 0x4e7   : > { %v2820_v40 = vrot.slane %v2812_v53, %v5170_v20  ;;  %v2813_v56 = vcombine.high %v2812_v53, %v2812_v53 }
 0x4e9   : > { %v3761_v35 = vpack.i.b16 %v2820_v40, %v2820_v40  ;;  %v2829_v2 = vunpack.i.h.s16 %v2820_v40  ;;  %v2827_v25 = vrot.slane %v2813_v56, %v5170_v20  ;;  %v4269_v20 = vld [vmem:[%s6046_s30 + $0xb8] sm:$0xff]   ;;  %s4293_s30 = scalar_lea.vmem %s5892_s21, 64 }
 0x4ea   : > { %p4294_p13 = scmp.ne.s32.totalorder %s5892_s21, %s4293_s30 }
 0x4eb   : > { %v2900_v36 = vrot.slane %v3761_v35, %v5176_v8  ;;  %v2990_v11 = vpack.i.b16 %v2829_v2, %v2829_v2  ;;  %v2831_v37 = vunpack.i.h.s16 %v2827_v25  ;;  %v3778_v49 = vpack.i.b16 %v2827_v25, %v2827_v25  ;;  %v1696_v25 = vld [vmem:[#allocation3] sm:$0xf] }
 0x4ec   : > { %p4295_p0 = pnand %p4294_p13, %p4550_p4 }
 0x4ed   : > { %4008 = vmatmul.mubr.bf16.vlgmr.msra.gmra.mrb[4].mxu1 %v2900_v36  ;;  %v2994_v52 = vrot.slane %v2990_v11, %v5176_v8  ;;  %v3178_v51 = vpack.i.b16 %v2831_v37, %v2831_v37  ;;  %v3088_v6 = vrot.slane %v3778_v49, %v5176_v8 }
 0x4ee   : > { %4032 = vmatpush3.bf16.msra.mxu1 %v4255_v45  ;;  %4047 = vmatprep.mubr.msk.bf16.mxu1 %vm6047_vm7, %v4407_v34  ;;  %p4296_p1 = pneg %p4295_p0 }
 0x4ef   : > { %4028 = vmatmul.mubr.bf16.vlgmr.msra.gmra.mrb[0].mxu0 %v2994_v52  ;;  %4033 = vmatprep.subr.bf16.mxu1 %v4407_v34  ;;  %v3182_v60 = vrot.slane %v3178_v51, %v5176_v8  ;;  %v4273_v8 = vld [vmem:[%s5988_s15] sm:$0xff]   ;;  %v3356_v52 = vpop.permute.xlu0 %3355 }
 0x4f0   : > { %4052 = vmatpush3.bf16.msra.mxu0 %v4256_v61  ;;  %4067 = vmatprep.mubr.msk.bf16.mxu0 %vm6047_vm7, %v4407_v34 }
 0x4f1   : > { %4053 = vmatprep.subr.bf16.mxu0 %v4407_v34 }
 0x4f2   : > { %4034 = vmatpush3.bf16.msra.mxu1 %v4257_v15 }
 0x4f3   : > { %4035 = vmatprep.subr.bf16.mxu1 %v4407_v34 }
 0x4f4   : > { %4054 = vmatpush3.bf16.msra.mxu0 %v4258_v46 }
 0x4f5   : > { %4055 = vmatprep.subr.bf16.mxu0 %v4407_v34 }
 0x4f6   : > { %4036 = vmatpush3.bf16.msra.mxu1 %v4259_v33  ;;  %v3360_v33 = vld [vmem:[%s4575_s26] sm:$0xf]  ;;  %s3809_s26 = sshll.u32 %s4395_s29, 6 }
 0x4f7   : > { %4037 = vmatprep.subr.bf16.mxu1 %v4407_v34  ;;  %s5890_s9 = scalar_lea.hbm %s5990_s17, %s3809_s26 }
 0x4f8   : > { %4056 = vmatpush3.bf16.msra.mxu0 %v4260_v54 }
 0x4f9   : > { %4057 = vmatprep.subr.bf16.mxu0 %v4407_v34 }
 0x4fa   : > { %4038 = vmatpush3.bf16.msra.mxu1 %v4261_v62 }
 0x4fb   : > { %4039 = vmatprep.subr.bf16.mxu1 %v4407_v34 }
 0x4fc   : > { %4058 = vmatpush3.bf16.msra.mxu0 %v4262_v30 }
 0x4fd   : > { %4059 = vmatprep.subr.bf16.mxu0 %v4407_v34 }
 0x4fe   : > { %4040 = vmatpush3.bf16.msra.mxu1 %v4263_v59 }
 0x4ff   : > { %4041 = vmatprep.subr.bf16.mxu1 %v4407_v34 }
 0x500   : > { %4060 = vmatpush3.bf16.msra.mxu0 %v4264_v17 }
 0x501   : > { %4061 = vmatprep.subr.bf16.mxu0 %v4407_v34 }
 0x502   : > { %4042 = vmatpush3.bf16.msra.mxu1 %v4265_v4  ;;  %v3476_v4 = vld [vmem:[%s5975_s2] sm:$0xf] }
 0x503   : > { %4043 = vmatprep.subr.bf16.mxu1 %v4407_v34 }
 0x504   : > { %4062 = vmatpush3.bf16.msra.mxu0 %v4266_v3  ;;  %v3477_v3 = vstv %s4395_s29 }
 0x505   : > { %4063 = vmatprep.subr.bf16.mxu0 %v4407_v34  ;;  %vm3478_vm14 = vcmp.gt.s32.totalorder %v3476_v4, %v3477_v3 }
 0x506   : > { %4044 = vmatpush3.bf16.msra.mxu1 %v4267_v29  ;;  %v3479_v29 = vsel %vm3478_vm14, 1, %v4409_v21 }
 0x507   : > { %4045 = vmatprep.subr.bf16.mxu1 %v4407_v34 }
 0x508   : > { %4064 = vmatpush3.bf16.msra.mxu0 %v4268_v26 }
 0x509   : > { %4065 = vmatprep.subr.bf16.mxu0 %v4407_v34 }
 0x50a   : > { %4046 = vmatpush3.bf16.msra.mxu1 %v4269_v20 }
 0x50b   : > { %4071 = vmatprep.subr.bf16.mxu1 %v4407_v34 }
 0x50c   : > { %4066 = vmatpush3.bf16.msra.mxu0 %v4270_v47 }
 0x50d   : > { %4048 = vmatmul.mubr.bf16.vlgmr.msra.gmra.mrb[8].mxu1 %v3088_v6  ;;  %4079 = vmatprep.subr.bf16.mxu0 %v4407_v34 }
 0x50e   : > { %4072 = vmatpush3.bf16.msra.mxu1 %v4271_v12  ;;  %4075 = vmatprep.mubr.msk.bf16.mxu1 %vm6047_vm7, %v4407_v34 }
 0x50f   : > { %4068 = vmatmul.mubr.bf16.vlgmr.msra.gmra.mrb[4].mxu0 %v3182_v60  ;;  %4073 = vmatprep.subr.bf16.mxu1 %v4407_v34 }
 0x510   : > { %4087 = vmatprep.mubr.msk.bf16.mxu0 %vm6047_vm7, %v4407_v34  ;;  %4080 = vmatpush3.bf16.msra.mxu0 %v4273_v8 }
 0x511   : > { %4081 = vmatprep.subr.bf16.mxu0 %v4407_v34 }
 0x512   : > { %4074 = vmatpush3.bf16.msra.mxu1 %v4272_v23 }
 0x514   : > { %4082 = vmatpush3.bf16.msra.mxu0 %v4274_v9 }
 0x515   : > { %4076 = vmatmul.mubr.msk.bf16.vlgmr.msra.gmra.mrb[12].mxu1 %vm6048_vm12, %v5155_v41  ;;  %4083 = vmatprep.subr.bf16.mxu0 %v4407_v34  ;;  %v4276_v41 = vld [vmem:[%s5988_s15 + $0x18] sm:$0xff]  }
 0x518   : > { %4084 = vmatpush3.bf16.msra.mxu0 %v4275_v14  ;;  %v4413_v14 = vmov 1983009808  }
 0x519   : > { %4085 = vmatprep.subr.bf16.mxu0 %v4407_v34 }
 0x51c   : > { %4086 = vmatpush3.bf16.msra.mxu0 %v4276_v41  ;;  %v3488_v41 = vunpack.c.l.s4 %v4413_v14 }
 0x5c0   : > { %v2984_v58 = vpop.f32.mrb[4].mxu1 }
 0x5c1   : > { %v4009_v55 = vpop.f32.mrb[5].mxu1 }
 0x5c2   : > { %v2987_v7 = vpop.f32.mrb[6].mxu1  ;;  %v3078_v57 = vpop.f32.mrb[0].mxu0 }
 0x5c3   : > { %v3345_v18 = vrot.slane %v3078_v57, 7  ;;  %v4010_v38 = vpop.f32.mrb[7].mxu1  ;;  %v4029_v42 = vpop.f32.mrb[1].mxu0 }
 0x5c4   : > { %v3081_v43 = vpop.f32.mrb[2].mxu0 }
 0x5c5   : > { %v3346_v13 = vsel %vm2784_vm6, %v3345_v18, %v2984_v58  ;;  %v4030_v24 = vpop.f32.mrb[3].mxu0  ;;  %vm3393_vm6 = vcmask 523264   ;;  %v3489_v58 = vunpack.c.0.s8 %v3488_v41 }
 0x5c7   : > { %v3492_v57 = vsub.s32 %v3489_v58, %v5164_v1 }
 0x5e0   : > { %v3172_v63 = vpop.f32.mrb[8].mxu1 }
 0x5e1   : > { %v3347_v0 = vrot.slane %v3172_v63, 6  ;;  %v4049_v16 = vpop.f32.mrb[9].mxu1 }
 0x5e2   : > { %v3175_v22 = vpop.f32.mrb[10].mxu1  ;;  %v3266_v32 = vpop.f32.mrb[4].mxu0 }
 0x5e3   : > { %v3348_v50 = vsel %vm2786_vm3, %v3347_v0, %v3346_v13  ;;  %v3349_v34 = vrot.slane %v3266_v32, 5  ;;  %v4050_v39 = vpop.f32.mrb[11].mxu1  ;;  %v4069_v31 = vpop.f32.mrb[5].mxu0 }
 0x5e4   : > { %v3269_v44 = vpop.f32.mrb[6].mxu0 }
 0x5e5   : > { %v3350_v27 = vsel %vm2788_vm9, %v3349_v34, %v3348_v50  ;;  %v4070_v28 = vpop.f32.mrb[7].mxu0 }
 0x5e8   : > { %v3329_v10 = vpop.f32.mrb[12].mxu1 }
 0x5e9   : > { %v3330_v19 = vadd.f32 %v3795_v48, %v3329_v10  ;;  %v4077_v53 = vpop.f32.mrb[13].mxu1 }
 0x5ea   : > { %v3332_v40 = vpop.f32.mrb[14].mxu1 }
 0x5eb   : > { %v3799_v35 = vmul.f32 -1.442695, %v3330_v19  ;;  %v4078_v2 = vpop.f32.mrb[15].mxu1 }
 0x5ed   : > { %4281 = vpow2.f32 %v3799_v35 }
 0x5f7   : > { %v4282_v45 = vpop.eup %4281 }
 0x5f8   : > { %v3338_v36 = vadd.f32 1.0, %v4282_v45 }
 0x5fa   : > { %4283 = vrcp.f32 %v3338_v36 }
 0x604   : > { %v4284_v11 = vpop.eup %4283 }
 0x605   : > { %v3352_v61 = vmul.f32 %v4284_v11, %v3350_v27 }
 0x607   : > { %v3353_v15 = vpack.c.bf16 %v3352_v61, %v3352_v61 }
 0x609   : > { %v3359_v46 = vsel %vm6049_vm13, %v3353_v15, %v3356_v52 }
 0x60a   : > { %4088 = vmatmul.mubr.msk.bf16.vlgmr.msra.gmra.mrb[8].mxu0 %vm3393_vm6, %v3359_v46 }
 0x6dd   : > { %v3430_v54 = vpop.f32.mrb[8].mxu0 }
 0x6de   : > { %v3436_v62 = vadd.f32 %v3430_v54, %v3360_v33  ;;  %v4089_v30 = vpop.f32.mrb[9].mxu0 }
 0x6df   : > { %v3433_v59 = vpop.f32.mrb[10].mxu0 }
 0x6e0   : > { %4285 = vtanh.f32 %v3436_v62  ;;  %v4090_v17 = vpop.f32.mrb[11].mxu0  ;;  %v3805_v26 = vmul.f32 -1.442695, %v3436_v62 }
 0x6e2   : > { %4287 = vpow2.f32 %v3805_v26 }
 0x6ea   : > { %v4286_v56 = vpop.eup %4285 }
 0x6eb   : > { %3450 = vrot.lane.b32.xlu1 %v4286_v56, %s4412_s0 }
 0x6ec   : > { %v4288_v37 = vpop.eup %4287 }
 0x6ed   : > { %v3440_v20 = vadd.f32 1.0, %v4288_v37 }
 0x6ef   : > { %3445 = vrot.lane.b32.xlu1 %v1696_v25, %s4411_s8  ;;  %4289 = vrcp.f32 %v3440_v20 }
 0x6f3   : > { %3481 = vperm.xlu1 %4235, %v3479_v29  }
 0x6f9   : > { %v4290_v49 = vpop.eup %4289 }
 0x75d   : > { %v3451_v47 = vpop.permute.xlu1 %3450 }
 0x75e   : > { %v3453_v51 = vmul.f32 %v4290_v49, %v3451_v47 }
 0x760   : > { %3455 = vrot.lane.b32.xlu0 %v3453_v51, %s4411_s8 }
 0x761   : > { %v3446_v12 = vpop.permute.xlu1 %3445 }
 0x762   : > { %v3448_v21 = vmul.f32 %v4290_v49, %v3446_v12 }
 0x772   : > { %v3482_v6 = vpop.permute.xlu1 %3481 }
 0x773   : > { %vm3483_vm15 = vcmp.eq.s32.totalorder %v3482_v6, 1 }
 0x774   : > { %v3499_v60 = vsel %vm3483_vm15, %v5757_v5, 0.0 }
 0x775   : > { %3500 = vst [vmem:[%s4579_s23] sm:$0xf] %v3499_v60  ;;  %s4414_s23 = smov [#allocation8]  }
 0x776   : > { %s4297_s27 = sshll.u32 %s4414_s23, 4  ;;  %s4298_s27 = int_to_ptr.vmem [resolvable:$false] %s4297_s27 }
 0x777   : > { %s4299_s28 = scalar_lea.vmem %s4298_s27, 128  ;;  %p4300_p2 = scmp.lt.s32.totalorder %s5892_s21, %s4298_s27 }
 0x778   : > { %p4301_p3 = scmp.lt.s32.totalorder %s4299_s28, %s4293_s30 }
 0x77a   : > { %p4302_p5 = por %p4301_p3, %p4300_p2 }
 0x77c   : > { %p4303_p6 = pnand %p4302_p5, %p4296_p1 }
 0x7d2   : > { %v3456_v23 = vpop.permute.xlu0 %3455 }
 0x7d3   : > { %v3458_v8 = vadd.f32 %v3456_v23, %v3448_v21 }
 0x7d5   : > { %4291 = vtanh.f32 %v3458_v8 }
 0x7df   : > { %v4292_v9 = vpop.eup %4291 }
 0x7e0   : > { %3461 = vrot.lane.b32.xlu0 %v4292_v9, %s4412_s0 }
 0x852   : > { %v3462_v55 = vpop.permute.xlu0 %3461 }
 0x853   : > { %v3464_v7 = vmul.f32 %v4290_v49, %v3462_v55 }
 0x855   : > { %v3484_v5 = vsel %vm3483_vm15, %v3464_v7, 0.0  ;;  %3466 = vrot.lane.b32.xlu0 %v3464_v7, %s4411_s8 }
 0x856   : > { %v3485_v18 = vpack.c.bf16 %v3484_v5, %v3484_v5 }
 0x857   : > { %4306 = shalt.err (!%p4303_p6)
}
 0x858   : > { %s4307_s18 = scalar_lea.hbm %s5890_s9, 64  ;;  %s4311_s19 = scalar_lea.hbm %s5990_s17, 448 }
 0x859   : > { %p4308_p7 = scmp.ne.s32.totalorder %s5890_s9, %s4307_s18  ;;  %p4312_p11 = scmp.lt.u32.totalorder %s5890_s9, %s5990_s17 }
 0x85a   : > { %p4313_p12 = scmp.lt.u32.totalorder %s4311_s19, %s4307_s18  ;;  %p4315_p0 = scmp.lt.u32.totalorder %s4307_s18, %s5890_s9 }
 0x85b   : > { %p4309_p9 = pnand %p4308_p7, %p4550_p4 }
 0x85c   : > { %p4314_p13 = por %p4313_p12, %p4312_p11 }
 0x85d   : > { %p4310_p10 = pneg %p4309_p9 }
 0x85e   : > { %p4316_p1 = por %p4315_p0, %p4314_p13 }
 0x860   : > { %p4317_p2 = pnand %p4316_p1, %p4310_p10 }
 0x862   : > { %4320 = shalt.err (!%p4317_p2)
}
 0x863   : > { %4096 = dma.vmem_to_hbm [thread:$0]  (%p4550_p4), %s5892_s21, 64, %s5890_s9, %s3507_s25   ;;  %v3493_v1 = vrot.slane %v3485_v18, %v3492_v57  ;;  %vm3469_vm0 = vcmask 257024   ;;  %vm3497_vm1 = vcmask 254976  }
 0x864   : > { %s4415_s30 = smov 96   ;;  %s3808_s27 = sshll.u32 %s4395_s29, 5 }
 0x865   : > { %3494 = vrot.lane.b32.xlu1 %v3493_v1, %s4411_s8  ;;  %s3521_s28 = sshll.u32 %s4577_s1, 4  ;;  %s5923_s26 = scalar_lea.hbm %s5989_s16, %s3808_s27  ;;  %s5925_s28 = int_to_ptr.vmem [resolvable:$true] %s3521_s28 }
 0x866   : > { %s3502_s8 = scalar_lea.sflag [#allocation7], %s4566_s24  ;;  %s4321_s21 = scalar_lea.vmem %s5925_s28, 32 }
 0x867   : > { %p4322_p3 = scmp.ne.s32.totalorder %s5925_s28, %s4321_s21  ;;  %s4416_s29 = smov [#allocation6]  }
 0x868   : > { %s4325_s9 = sshll.u32 %s4416_s29, 4  ;;  %s4326_s9 = int_to_ptr.vmem [resolvable:$false] %s4325_s9 }
 0x869   : > { %3472 = vrot.lane.b32.xlu1 %v3458_v8, %s4415_s30  ;;  %p4323_p5 = pnand %p4322_p3, %p4550_p4  ;;  %s4327_s25 = scalar_lea.vmem %s4326_s9, 64 }
 0x86a   : > { %p4328_p7 = scmp.lt.s32.totalorder %s5925_s28, %s4326_s9  ;;  %p4329_p9 = scmp.lt.s32.totalorder %s4327_s25, %s4321_s21 }
 0x86b   : > { %p4324_p6 = pneg %p4323_p5 }
 0x86c   : > { %p4330_p10 = por %p4329_p9, %p4328_p7 }
 0x86e   : > { %p4331_p11 = pnand %p4330_p10, %p4324_p6 }
 0x8c7   : > { %v3467_v38 = vpop.permute.xlu0 %3466 }
 0x8c8   : > { %3470 = vst.msk [vmem:[#allocation2] sm:$0xf] %vm3469_vm0, %v3467_v38 }
 0x8d7   : > { %v3495_v42 = vpop.permute.xlu1 %3494 }
 0x8d8   : > { %3498 = vst.msk [vmem:[%s4577_s1] sm:$0x3] %vm3497_vm1, %v3495_v42 }
 0x8d9   : > { %4334 = shalt.err (!%p4331_p11)
}
 0x8da   : > { %s4335_s24 = scalar_lea.hbm %s5923_s26, 32  ;;  %s4339_s22 = scalar_lea.hbm %s5989_s16, 224 }
 0x8db   : > { %p4336_p12 = scmp.ne.s32.totalorder %s5923_s26, %s4335_s24  ;;  %p4340_p1 = scmp.lt.u32.totalorder %s5923_s26, %s5989_s16 }
 0x8dc   : > { %p4341_p2 = scmp.lt.u32.totalorder %s4339_s22, %s4335_s24  ;;  %p4343_p5 = scmp.lt.u32.totalorder %s4335_s24, %s5923_s26 }
 0x8dd   : > { %p4337_p13 = pnand %p4336_p12, %p4550_p4 }
 0x8de   : > { %p4342_p3 = por %p4341_p2, %p4340_p1 }
 0x8df   : > { %p4338_p0 = pneg %p4337_p13 }
 0x8e0   : > { %p4344_p6 = por %p4343_p5, %p4342_p3 }
 0x8e2   : > { %p4345_p7 = pnand %p4344_p6, %p4338_p0 }
 0x8e4   : > { %4348 = shalt.err (!%p4345_p7)
}
 0x8e5   : > { %4095 = dma.vmem_to_hbm [thread:$0]  (%p4550_p4), %s5925_s28, 32, %s5923_s26, %s3502_s8   ;;  %v3473_v43 = vpop.permute.xlu1 %3472 }
 0x8e6   : > { %3475 = vst.msk [vmem:[#allocation3] sm:$0xf] %vm3469_vm0, %v3473_v43 }
 0x8e7 PF: > { %s6050_s27 = sld [smem:[#allocation16_spill]]  ;;  %s6051_s18 = sld [smem:[#allocation12_spill]] }
 0x8ed   : > { %p4106_p9 = scmp.ge.s32.totalorder %s6050_s27, 2  ;;  %s3547_s21 = sand.u32 1, %s6051_s18  }
 0x8ee   : > { %s3548_s29 = scalar_lea.sflag [#allocation7], %s3547_s21 }
 0x8ef   : > { %p4100_p10 = pnand %p4106_p9, %p4557_p8 }
 0x8f1   : > { %4374 = dma.done.wait (!%p4100_p10), %s3548_s29, 32  }
 0x8f2   : > { %4376 = vsyncadd (!%p4100_p10), %s3548_s29, 4294967264  ;;  %s3557_s9 = scalar_lea.sflag [#allocation9], %s3547_s21 }
 0x8f3   : > { %4378 = dma.done.wait (!%p4100_p10), %s3557_s9, 64  }
 0x8f4   : > { %4380 = vsyncadd (!%p4100_p10), %s3557_s9, 4294967232  ;;  %s36_s30 = sadd.s32 1, %s6050_s27   ;;  %s6053_s26 = sld [smem:[#allocation13_spill]] }
 0x8f5   : > { %p33_p4 = scmp.ge.s32.totalorder %s36_s30, 9   ;;  %s6054_s27 = sld [smem:[#allocation14_spill]] }
 0x8f6   : > { %s6055_s28 = sld [smem:[#allocation19_spill]]  ;;  %s6056_s29 = sld [smem:[#allocation15_spill]] }
 0x8f7   : > { %s6057_s0 = sld [smem:[#allocation17_spill]]  ;;  %35 = sbr.rel (!%p33_p4) target bundleno = 10 (0xa), region = 146 }
 0x8fe   :  { %3562 = vsyncpa [#allocation7], 1 }
 0x8ff   :  { %3564 = vsyncpa [#allocation7 + $0x1], 1 }
 0x900   :  { %3565 = vsyncpa [#allocation9], 1 }
 0x901   :  { %3567 = vsyncpa [#allocation9 + $0x1], 1 }

</bundles_post_ra>
